<compile_context>
chip_gen: v5e
topology: v5e:2x2
jax: 0.10.0
libtpu: 0.0.40
codegen_flags: <defaults>
</compile_context>

<pallas_src>
import jax
import jax.numpy as jnp
import numpy as np
from jax.experimental import pallas as pl
from jax.experimental.pallas import tpu as pltpu


def down_kernel(xs_ref, w1_ref, s1_ref, w2_ref, s2_ref, o_ref,
                a1_ref, h1p_ref, a2_ref):
    # xs_ref: (nb*4, ts+4, W2+2, Cin) bf16 -- the 4 maxpool taps of each image
    # stacked on the leading axis; rows carry a 2-pooled-row halo each side
    # (1 for conv1 + 1 for conv2), columns carry conv1's 1-col zero ring.
    nb4, tsp4, wp, cin = xs_ref.shape
    nb = nb4 // 4
    ts = tsp4 - 4              # output rows of this strip
    ww = wp - 2                # output cols (= W2)
    cmid = w1_ref.shape[1]
    m1 = nb * (ts + 2) * ww    # conv1 rows (strip + 1-row h1 halo per side)
    m2 = nb * ts * ww          # conv2 / output rows

    s_id = pl.program_id(1)
    n_s = pl.num_programs(1)

    # Fused 2x2/stride-2 maxpool: reduce over the 4 stacked taps.  Kept in bf16
    # (v6e/v7x have bf16 VPUs; on v5e the compiler upcasts internally).
    xs = xs_ref[...].reshape(nb, 4, tsp4, wp, cin)
    pooled = jnp.max(xs, axis=1)                        # (nb, ts+4, wp, cin) bf16

    # conv1 as ONE im2col MXU matmul over ts+2 output rows (strip plus the
    # 1-row h1 halo each side conv2 needs).  im2col slabs are stored bf16
    # (halves scratch VMEM + vst traffic); accumulation stays f32.
    for k in range(9):
        dy, dx = k // 3, k % 3
        a1_ref[:, k * cin:(k + 1) * cin] = (
            pooled[:, dy:dy + ts + 2, dx:dx + ww, :].reshape(m1, cin))
    acc1 = jnp.dot(a1_ref[...], w1_ref[...],
                   preferred_element_type=jnp.float32)   # (m1, cmid) f32
    h1 = jnp.maximum(acc1 + s1_ref[...], 0.0)            # BN scale folded in w1

    # conv2 zero padding: border-only writes (no full-scratch memset).  Columns
    # are always zero; the top/bottom h1 halo rows hold real neighbour data for
    # interior strips and must be zeroed only at image-boundary strips.
    zcol = jnp.zeros((nb, ts + 2, 1, cmid), dtype=h1p_ref.dtype)
    h1p_ref[:, :, 0:1, :] = zcol
    h1p_ref[:, :, ww + 1:ww + 2, :] = zcol
    h1p_ref[:, :, 1:ww + 1, :] = (
        h1.reshape(nb, ts + 2, ww, cmid).astype(h1p_ref.dtype))

    @pl.when(s_id == 0)
    def _():
        h1p_ref[:, 0:1, :, :] = jnp.zeros((nb, 1, wp, cmid), dtype=h1p_ref.dtype)

    @pl.when(s_id == n_s - 1)
    def _():
        h1p_ref[:, ts + 1:ts + 2, :, :] = jnp.zeros((nb, 1, wp, cmid),
                                                    dtype=h1p_ref.dtype)

    # conv2, same im2col trick, standard (M,K)x(K,N) orientation: no big-operand
    # transpose can be introduced by the contraction (the old trans-b form
    # risked an XLU vxpose of the whole im2col); (m2, Cout) is lane-dense at
    # real channel counts.
    for k in range(9):
        dy, dx = k // 3, k % 3
        a2_ref[:, k * cmid:(k + 1) * cmid] = (
            h1p_ref[:, dy:dy + ts, dx:dx + ww, :].reshape(m2, cmid))
    acc2 = jnp.dot(a2_ref[...], w2_ref[...],
                   preferred_element_type=jnp.float32)   # (m2, cout) f32
    o_ref[0] = jnp.maximum(acc2 + s2_ref[...], 0.0).astype(o_ref.dtype)


def _vmem_budget_bytes():
    # ~75% of physical VMEM: ~48 MiB on v7x (64 MiB), ~96 MiB on v5e/v6e (128).
    try:
        return int(0.75 * pltpu.get_tpu_info().vmem_capacity_bytes)
    except Exception:
        return 48 * 1024 * 1024


def _pick_tiles(B, H2, W2, Cin, Cmid, Cout, out_bytes, budget):
    """Pick (images per step nb, pooled rows per strip ts) under a VMEM budget."""
    wp = W2 + 2

    def divisors(n):
        return [d for d in range(1, n + 1) if n % d == 0]

    def footprint(nb, ts):
        m1, m2 = nb * (ts + 2) * W2, nb * ts * W2
        return (2 * nb * 4 * (ts + 4) * wp * Cin * 2          # 2x-buffered bf16 input
                + 2 * m2 * Cout * out_bytes                    # 2x-buffered output
                + m1 * 9 * Cin * 2 + m2 * 9 * Cmid * 2         # bf16 im2col scratches
                + nb * (ts + 2) * wp * Cmid * 2                # bf16 padded h1
                + 2 * (9 * Cin * Cmid + 9 * Cmid * Cout) * 2   # 2x-buffered weights
                + (Cmid + Cout) * 4)                           # BN shifts

    cands = [(nb, ts) for nb in divisors(B) for ts in divisors(H2)]
    fitting = [c for c in cands if footprint(*c) <= budget] or cands

    def key(c):
        nb, ts = c
        g, s = B // nb, H2 // ts
        m2 = nb * ts * W2
        return ((g * s) >= 2,            # >=2 grid steps: feeds both v7x TCs
                (g >= 2) or (B < 2),     # prefer image-level parallel steps
                m2 % 256 == 0,           # MXU / lane-friendly matmul M
                min(m2, 2048),           # bigger M (bounded; VMEM binds first)
                -footprint(nb, ts))
    return max(fitting, key=key)


def down_forward(x_nchw, params, *, eps=1e-5, out_dtype=jnp.float32):
    B, Cin, H, W = x_nchw.shape
    assert H % 2 == 0 and W % 2 == 0, "MaxPool2d(2) path assumes even H and W"
    H2, W2 = H // 2, W // 2
    Wp = W2 + 2
    Cmid = params["w1"].shape[0]
    Cout = params["w2"].shape[0]
    out_bytes = jnp.dtype(out_dtype).itemsize

    budget = _vmem_budget_bytes()
    nb, ts = _pick_tiles(B, H2, W2, Cin, Cmid, Cout, out_bytes, budget)
    G, S = B // nb, H2 // ts
    M1 = nb * (ts + 2) * W2
    M2 = nb * ts * W2

    # ---- glue (plain JAX): layout, pool-tap stacking, strip halos, BN fold ----
    x = jnp.transpose(x_nchw, (0, 2, 3, 1)).astype(jnp.bfloat16)       # NHWC bf16
    # Pad rows by 4 / cols by 2: after the fused 2x2 maxpool this yields a
    # pooled plane with a 2-row / 1-col zero ring (conv1 ring + strip halo).
    # Padding is even, so no pool window straddles real data and zeros.
    xp = jnp.pad(x, ((0, 0), (4, 4), (2, 2), (0, 0)))
    xs = xp.reshape(B, H2 + 4, 2, Wp, 2, Cin)
    xs = jnp.transpose(xs, (0, 2, 4, 1, 3, 5)).reshape(B, 4, H2 + 4, Wp, Cin)
    # Row strips of ts pooled rows with a 2-row halo each side (halo rows are
    # duplicated across strips: 4/(2*ts) extra input, negligible at real ts).
    row_idx = jnp.arange(S)[:, None] * ts + jnp.arange(ts + 4)[None, :]
    xs = xs[:, :, row_idx, :, :]                        # (B, 4, S, ts+4, Wp, Cin)
    xs = xs.reshape(G, nb, 4, S, ts + 4, Wp, Cin)
    xs = jnp.transpose(xs, (0, 3, 1, 2, 4, 5, 6))       # (G, S, nb, 4, ...)
    xs = xs.reshape(G * S * nb * 4, ts + 4, Wp, Cin)

    def fold(w, b, g, beta, mean, var):
        # Inference-mode BN folded: scale into the conv weights, shift kept.
        scale = g / jnp.sqrt(var + eps)
        shift = (b - mean) * scale + beta
        co, ci = w.shape[0], w.shape[1]
        wk = jnp.transpose(w, (2, 3, 1, 0)).reshape(9 * ci, co)        # (9*Ci, Co)
        wk = (wk * scale[None, :]).astype(jnp.bfloat16)
        return wk, shift.astype(jnp.float32)

    wk1, sh1 = fold(params["w1"], params["b1"], params["g1"],
                    params["beta1"], params["m1"], params["v1"])
    wk2, sh2 = fold(params["w2"], params["b2"], params["g2"],
                    params["beta2"], params["m2"], params["v2"])
    s1 = sh1.reshape(1, Cmid)
    s2 = sh2.reshape(1, Cout)

    flops = G * S * (2 * M1 * 9 * Cin * Cmid + 2 * M2 * 9 * Cmid * Cout)
    bytes_accessed = (xs.size * 2 + wk1.size * 2 + wk2.size * 2
                      + (Cmid + Cout) * 4 + G * S * M2 * Cout * out_bytes)

    out = pl.pallas_call(
        down_kernel,
        out_shape=jax.ShapeDtypeStruct((G * S, M2, Cout), out_dtype),
        grid_spec=pltpu.PrefetchScalarGridSpec(
            num_scalar_prefetch=0,
            grid=(G, S),
            in_specs=[
                pl.BlockSpec((nb * 4, ts + 4, Wp, Cin),
                             lambda g, s: (g * S + s, 0, 0, 0)),
                pl.BlockSpec((9 * Cin, Cmid), lambda g, s: (0, 0)),
                pl.BlockSpec((1, Cmid), lambda g, s: (0, 0)),
                pl.BlockSpec((9 * Cmid, Cout), lambda g, s: (0, 0)),
                pl.BlockSpec((1, Cout), lambda g, s: (0, 0)),
            ],
            out_specs=pl.BlockSpec((1, M2, Cout), lambda g, s: (g * S + s, 0, 0)),
            scratch_shapes=[
                pltpu.VMEM((M1, 9 * Cin), jnp.bfloat16),           # im2col (conv1)
                pltpu.VMEM((nb, ts + 2, Wp, Cmid), jnp.bfloat16),  # zero-padded h1
                pltpu.VMEM((M2, 9 * Cmid), jnp.bfloat16),          # im2col (conv2)
            ],
        ),
        compiler_params=pltpu.CompilerParams(
            dimension_semantics=("parallel", "parallel"),
            vmem_limit_bytes=budget),
        cost_estimate=pl.CostEstimate(
            flops=flops, transcendentals=0, bytes_accessed=bytes_accessed),
    )(xs, wk1, s1, wk2, s2)

    # (G*S, nb*ts*W2, Cout) -> NCHW.  TODO(synk): if the next layer is another
    # NHWC Pallas kernel, return `out` as-is (optionally bf16 via out_dtype)
    # and skip this transpose entirely.
    out = out.reshape(G, S, nb, ts, W2, Cout)
    out = jnp.transpose(out, (0, 2, 5, 1, 3, 4)).reshape(B, Cout, H2, W2)
    return out


def down_reference(x, params, eps=1e-5):
    """Pure-JAX f32 reference with PyTorch (NCHW) semantics for validation."""
    y = jax.lax.reduce_window(x, -jnp.inf, jax.lax.max,
                              (1, 1, 2, 2), (1, 1, 2, 2), "VALID")

    def cbr(y, w, b, g, beta, mean, var):
        y = jax.lax.conv_general_dilated(
            y, w, (1, 1), ((1, 1), (1, 1)),
            dimension_numbers=("NCHW", "OIHW", "NCHW"),
            precision=jax.lax.Precision.HIGHEST)
        y = y + b[None, :, None, None]
        y = (y - mean[None, :, None, None]) * \
            (g / jnp.sqrt(var + eps))[None, :, None, None] + beta[None, :, None, None]
        return jnp.maximum(y, 0.0)

    y = cbr(y, params["w1"], params["b1"], params["g1"],
            params["beta1"], params["m1"], params["v1"])
    y = cbr(y, params["w2"], params["b2"], params["g2"],
            params["beta2"], params["m2"], params["v2"])
    return y


if __name__ == "__main__":
    B, Cin, H, W = 2, 4, 16, 16
    Cmid = Cout = 8   # Down(in_channels=4, out_channels=8); DoubleConv mid == out

    key = jax.random.PRNGKey(0)
    ks = jax.random.split(key, 13)
    params = dict(
        w1=0.2 * jax.random.normal(ks[0], (Cmid, Cin, 3, 3), jnp.float32),
        b1=0.1 * jax.random.normal(ks[1], (Cmid,), jnp.float32),
        g1=1.0 + 0.1 * jax.random.normal(ks[2], (Cmid,), jnp.float32),
        beta1=0.1 * jax.random.normal(ks[3], (Cmid,), jnp.float32),
        m1=0.1 * jax.random.normal(ks[4], (Cmid,), jnp.float32),
        v1=0.5 + jax.random.uniform(ks[5], (Cmid,), jnp.float32),
        w2=0.2 * jax.random.normal(ks[6], (Cout, Cmid, 3, 3), jnp.float32),
        b2=0.1 * jax.random.normal(ks[7], (Cout,), jnp.float32),
        g2=1.0 + 0.1 * jax.random.normal(ks[8], (Cout,), jnp.float32),
        beta2=0.1 * jax.random.normal(ks[9], (Cout,), jnp.float32),
        m2=0.1 * jax.random.normal(ks[10], (Cout,), jnp.float32),
        v2=0.5 + jax.random.uniform(ks[11], (Cout,), jnp.float32),
    )
    x = jax.random.normal(ks[12], (B, Cin, H, W), jnp.float32)

    out = jax.block_until_ready(down_forward(x, params))
    ref = jax.block_until_ready(down_reference(x, params))
    # Tolerance sized for bf16 MXU operands (activations/weights rounded to
    # bf16, accumulation kept in f32 across two stacked 3x3 convs).
    np.testing.assert_allclose(np.asarray(out), np.asarray(ref),
                               rtol=5e-2, atol=5e-2)
    print("KERNEL_OK")
</pallas_src>

<mosaic_0001>
module attributes {stable_mosaic.version = 11 : i64} {
  func.func @down_kernel(%arg0: i32, %arg1: i32, %arg2: memref<4x12x10x4xbf16, #tpu.memory_space<vmem>>, %arg3: memref<36x8xbf16, #tpu.memory_space<vmem>>, %arg4: memref<1x8xf32, #tpu.memory_space<vmem>>, %arg5: memref<72x8xbf16, #tpu.memory_space<vmem>>, %arg6: memref<1x8xf32, #tpu.memory_space<vmem>>, %arg7: memref<1x64x8xf32, #tpu.memory_space<vmem>>, %arg8: memref<80x36xbf16, #tpu.memory_space<vmem>>, %arg9: memref<1x10x10x8xbf16, #tpu.memory_space<vmem>>, %arg10: memref<64x72xbf16, #tpu.memory_space<vmem>>) attributes {dimension_semantics = [#tpu.dimension_semantics<parallel>, #tpu.dimension_semantics<parallel>], iteration_bounds = array<i64: 2, 1>, scalar_prefetch = 0 : i64, scratch_operands = 3 : i64, tpu.core_type = #tpu.core_type<tc>, window_params = [{transform_indices = @transform_0, window_bounds = array<i64: 4, 12, 10, 4>}, {pipeline_mode = #tpu.pipeline_mode<synchronous>, transform_indices = @transform_1, window_bounds = array<i64: 36, 8>}, {pipeline_mode = #tpu.pipeline_mode<synchronous>, transform_indices = @transform_2, window_bounds = array<i64: 1, 8>}, {pipeline_mode = #tpu.pipeline_mode<synchronous>, transform_indices = @transform_3, window_bounds = array<i64: 72, 8>}, {pipeline_mode = #tpu.pipeline_mode<synchronous>, transform_indices = @transform_4, window_bounds = array<i64: 1, 8>}, {transform_indices = @transform_5, window_bounds = array<i64: 1, 64, 8>}]} {
    %c0 = arith.constant 0 : index
    %c0_0 = arith.constant 0 : index
    %c0_1 = arith.constant 0 : index
    %c0_2 = arith.constant 0 : index
    %0 = vector.load %arg2[%c0, %c0_0, %c0_1, %c0_2] : memref<4x12x10x4xbf16, #tpu.memory_space<vmem>>, vector<4x12x10x4xbf16>
    %1 = vector.shape_cast %0 : vector<4x12x10x4xbf16> to vector<1x4x12x10x4xbf16>
    %cst = arith.constant dense<0xFF80> : vector<1x12x10x4xbf16>
    %2 = vector.multi_reduction <maximumf>, %1, %cst [1] : vector<1x4x12x10x4xbf16> to vector<1x12x10x4xbf16>
    %3 = vector.extract_strided_slice %2 {offsets = [0, 0, 0, 0], sizes = [1, 10, 8, 4], strides = [1, 1, 1, 1]} : vector<1x12x10x4xbf16> to vector<1x10x8x4xbf16>
    %4 = vector.shape_cast %3 : vector<1x10x8x4xbf16> to vector<80x4xbf16>
    %c0_3 = arith.constant 0 : index
    %c0_4 = arith.constant 0 : index
    %5 = vector.load %arg8[%c0_3, %c0_4] : memref<80x36xbf16, #tpu.memory_space<vmem>>, vector<80x4xbf16>
    tpu.vector_store %arg8[%c0_3, %c0_4], %4 {strides = array<i32>} : memref<80x36xbf16, #tpu.memory_space<vmem>>, vector<80x4xbf16>,
    %6 = vector.extract_strided_slice %2 {offsets = [0, 0, 1, 0], sizes = [1, 10, 8, 4], strides = [1, 1, 1, 1]} : vector<1x12x10x4xbf16> to vector<1x10x8x4xbf16>
    %7 = vector.shape_cast %6 : vector<1x10x8x4xbf16> to vector<80x4xbf16>
    %c0_5 = arith.constant 0 : index
    %c4 = arith.constant 4 : index
    %8 = vector.load %arg8[%c0_5, %c4] : memref<80x36xbf16, #tpu.memory_space<vmem>>, vector<80x4xbf16>
    tpu.vector_store %arg8[%c0_5, %c4], %7 {strides = array<i32>} : memref<80x36xbf16, #tpu.memory_space<vmem>>, vector<80x4xbf16>,
    %9 = vector.extract_strided_slice %2 {offsets = [0, 0, 2, 0], sizes = [1, 10, 8, 4], strides = [1, 1, 1, 1]} : vector<1x12x10x4xbf16> to vector<1x10x8x4xbf16>
    %10 = vector.shape_cast %9 : vector<1x10x8x4xbf16> to vector<80x4xbf16>
    %c0_6 = arith.constant 0 : index
    %c8 = arith.constant 8 : index
    %11 = vector.load %arg8[%c0_6, %c8] : memref<80x36xbf16, #tpu.memory_space<vmem>>, vector<80x4xbf16>
    tpu.vector_store %arg8[%c0_6, %c8], %10 {strides = array<i32>} : memref<80x36xbf16, #tpu.memory_space<vmem>>, vector<80x4xbf16>,
    %12 = vector.extract_strided_slice %2 {offsets = [0, 1, 0, 0], sizes = [1, 10, 8, 4], strides = [1, 1, 1, 1]} : vector<1x12x10x4xbf16> to vector<1x10x8x4xbf16>
    %13 = vector.shape_cast %12 : vector<1x10x8x4xbf16> to vector<80x4xbf16>
    %c0_7 = arith.constant 0 : index
    %c12 = arith.constant 12 : index
    %14 = vector.load %arg8[%c0_7, %c12] : memref<80x36xbf16, #tpu.memory_space<vmem>>, vector<80x4xbf16>
    tpu.vector_store %arg8[%c0_7, %c12], %13 {strides = array<i32>} : memref<80x36xbf16, #tpu.memory_space<vmem>>, vector<80x4xbf16>,
    %15 = vector.extract_strided_slice %2 {offsets = [0, 1, 1, 0], sizes = [1, 10, 8, 4], strides = [1, 1, 1, 1]} : vector<1x12x10x4xbf16> to vector<1x10x8x4xbf16>
    %16 = vector.shape_cast %15 : vector<1x10x8x4xbf16> to vector<80x4xbf16>
    %c0_8 = arith.constant 0 : index
    %c16 = arith.constant 16 : index
    %17 = vector.load %arg8[%c0_8, %c16] : memref<80x36xbf16, #tpu.memory_space<vmem>>, vector<80x4xbf16>
    tpu.vector_store %arg8[%c0_8, %c16], %16 {strides = array<i32>} : memref<80x36xbf16, #tpu.memory_space<vmem>>, vector<80x4xbf16>,
    %18 = vector.extract_strided_slice %2 {offsets = [0, 1, 2, 0], sizes = [1, 10, 8, 4], strides = [1, 1, 1, 1]} : vector<1x12x10x4xbf16> to vector<1x10x8x4xbf16>
    %19 = vector.shape_cast %18 : vector<1x10x8x4xbf16> to vector<80x4xbf16>
    %c0_9 = arith.constant 0 : index
    %c20 = arith.constant 20 : index
    %20 = vector.load %arg8[%c0_9, %c20] : memref<80x36xbf16, #tpu.memory_space<vmem>>, vector<80x4xbf16>
    tpu.vector_store %arg8[%c0_9, %c20], %19 {strides = array<i32>} : memref<80x36xbf16, #tpu.memory_space<vmem>>, vector<80x4xbf16>,
    %21 = vector.extract_strided_slice %2 {offsets = [0, 2, 0, 0], sizes = [1, 10, 8, 4], strides = [1, 1, 1, 1]} : vector<1x12x10x4xbf16> to vector<1x10x8x4xbf16>
    %22 = vector.shape_cast %21 : vector<1x10x8x4xbf16> to vector<80x4xbf16>
    %c0_10 = arith.constant 0 : index
    %c24 = arith.constant 24 : index
    %23 = vector.load %arg8[%c0_10, %c24] : memref<80x36xbf16, #tpu.memory_space<vmem>>, vector<80x4xbf16>
    tpu.vector_store %arg8[%c0_10, %c24], %22 {strides = array<i32>} : memref<80x36xbf16, #tpu.memory_space<vmem>>, vector<80x4xbf16>,
    %24 = vector.extract_strided_slice %2 {offsets = [0, 2, 1, 0], sizes = [1, 10, 8, 4], strides = [1, 1, 1, 1]} : vector<1x12x10x4xbf16> to vector<1x10x8x4xbf16>
    %25 = vector.shape_cast %24 : vector<1x10x8x4xbf16> to vector<80x4xbf16>
    %c0_11 = arith.constant 0 : index
    %c28 = arith.constant 28 : index
    %26 = vector.load %arg8[%c0_11, %c28] : memref<80x36xbf16, #tpu.memory_space<vmem>>, vector<80x4xbf16>
    tpu.vector_store %arg8[%c0_11, %c28], %25 {strides = array<i32>} : memref<80x36xbf16, #tpu.memory_space<vmem>>, vector<80x4xbf16>,
    %27 = vector.extract_strided_slice %2 {offsets = [0, 2, 2, 0], sizes = [1, 10, 8, 4], strides = [1, 1, 1, 1]} : vector<1x12x10x4xbf16> to vector<1x10x8x4xbf16>
    %28 = vector.shape_cast %27 : vector<1x10x8x4xbf16> to vector<80x4xbf16>
    %c0_12 = arith.constant 0 : index
    %c32 = arith.constant 32 : index
    %29 = vector.load %arg8[%c0_12, %c32] : memref<80x36xbf16, #tpu.memory_space<vmem>>, vector<80x4xbf16>
    tpu.vector_store %arg8[%c0_12, %c32], %28 {strides = array<i32>} : memref<80x36xbf16, #tpu.memory_space<vmem>>, vector<80x4xbf16>,
    %c0_13 = arith.constant 0 : index
    %c0_14 = arith.constant 0 : index
    %30 = vector.load %arg8[%c0_13, %c0_14] : memref<80x36xbf16, #tpu.memory_space<vmem>>, vector<80x36xbf16>
    %c0_15 = arith.constant 0 : index
    %c0_16 = arith.constant 0 : index
    %31 = vector.load %arg3[%c0_15, %c0_16] : memref<36x8xbf16, #tpu.memory_space<vmem>>, vector<36x8xbf16>
    %cst_17 = arith.constant dense<0.000000e+00> : vector<80x8xf32>
    %32 = tpu.matmul %30, %31, %cst_17 {dimension_numbers = #tpu.dot_dimension_numbers<[1], [0], [0], [1], [0, 0, 1, 1], [], []>} : vector<80x36xbf16>, vector<36x8xbf16>, vector<80x8xf32> -> vector<80x8xf32>
    %c0_18 = arith.constant 0 : index
    %c0_19 = arith.constant 0 : index
    %33 = vector.load %arg4[%c0_18, %c0_19] : memref<1x8xf32, #tpu.memory_space<vmem>>, vector<1x8xf32>
    %34 = vector.broadcast %33 : vector<1x8xf32> to vector<80x8xf32>
    %35 = arith.addf %32, %34 : vector<80x8xf32>
    %cst_20 = arith.constant 0.000000e+00 : f32
    %36 = vector.broadcast %cst_20 : f32 to vector<80x8xf32>
    %37 = arith.maximumf %35, %36 : vector<80x8xf32>
    %cst_21 = arith.constant 0.000000e+00 : bf16
    %38 = vector.broadcast %cst_21 : bf16 to vector<1x10x1x8xbf16>
    %c0_22 = arith.constant 0 : index
    %c0_23 = arith.constant 0 : index
    %c0_24 = arith.constant 0 : index
    %c0_25 = arith.constant 0 : index
    %39 = vector.load %arg9[%c0_22, %c0_23, %c0_24, %c0_25] : memref<1x10x10x8xbf16, #tpu.memory_space<vmem>>, vector<1x10x1x8xbf16>
    tpu.vector_store %arg9[%c0_22, %c0_23, %c0_24, %c0_25], %38 {strides = array<i32>} : memref<1x10x10x8xbf16, #tpu.memory_space<vmem>>, vector<1x10x1x8xbf16>,
    %c0_26 = arith.constant 0 : index
    %c0_27 = arith.constant 0 : index
    %c9 = arith.constant 9 : index
    %c0_28 = arith.constant 0 : index
    %40 = vector.load %arg9[%c0_26, %c0_27, %c9, %c0_28] : memref<1x10x10x8xbf16, #tpu.memory_space<vmem>>, vector<1x10x1x8xbf16>
    tpu.vector_store %arg9[%c0_26, %c0_27, %c9, %c0_28], %38 {strides = array<i32>} : memref<1x10x10x8xbf16, #tpu.memory_space<vmem>>, vector<1x10x1x8xbf16>,
    %41 = vector.shape_cast %37 : vector<80x8xf32> to vector<1x10x8x8xf32>
    %42 = arith.truncf %41 : vector<1x10x8x8xf32> to vector<1x10x8x8xbf16>
    %c0_29 = arith.constant 0 : index
    %c0_30 = arith.constant 0 : index
    %c1 = arith.constant 1 : index
    %c0_31 = arith.constant 0 : index
    %43 = vector.load %arg9[%c0_29, %c0_30, %c1, %c0_31] : memref<1x10x10x8xbf16, #tpu.memory_space<vmem>>, vector<1x10x8x8xbf16>
    tpu.vector_store %arg9[%c0_29, %c0_30, %c1, %c0_31], %42 {strides = array<i32>} : memref<1x10x10x8xbf16, #tpu.memory_space<vmem>>, vector<1x10x8x8xbf16>,
    %c0_i32 = arith.constant 0 : i32
    %44 = arith.cmpi eq, %arg1, %c0_i32 : i32
    %45 = arith.extui %44 : i1 to i32
    %c0_i32_32 = arith.constant 0 : i32
    %46 = arith.cmpi ne, %45, %c0_i32_32 : i32
    scf.if %46 {
      %cst_95 = arith.constant 0.000000e+00 : bf16
      %88 = vector.broadcast %cst_95 : bf16 to vector<1x1x10x8xbf16>
      %c0_96 = arith.constant 0 : index
      %c0_97 = arith.constant 0 : index
      %c0_98 = arith.constant 0 : index
      %c0_99 = arith.constant 0 : index
      %89 = vector.load %arg9[%c0_96, %c0_97, %c0_98, %c0_99] : memref<1x10x10x8xbf16, #tpu.memory_space<vmem>>, vector<1x1x10x8xbf16>
      tpu.vector_store %arg9[%c0_96, %c0_97, %c0_98, %c0_99], %88 {strides = array<i32>} : memref<1x10x10x8xbf16, #tpu.memory_space<vmem>>, vector<1x1x10x8xbf16>,
    } else {
    }
    %c0_i32_33 = arith.constant 0 : i32
    %47 = arith.cmpi eq, %arg1, %c0_i32_33 : i32
    %48 = arith.extui %47 : i1 to i32
    %c0_i32_34 = arith.constant 0 : i32
    %49 = arith.cmpi ne, %48, %c0_i32_34 : i32
    scf.if %49 {
      %cst_95 = arith.constant 0.000000e+00 : bf16
      %88 = vector.broadcast %cst_95 : bf16 to vector<1x1x10x8xbf16>
      %c0_96 = arith.constant 0 : index
      %c9_97 = arith.constant 9 : index
      %c0_98 = arith.constant 0 : index
      %c0_99 = arith.constant 0 : index
      %89 = vector.load %arg9[%c0_96, %c9_97, %c0_98, %c0_99] : memref<1x10x10x8xbf16, #tpu.memory_space<vmem>>, vector<1x1x10x8xbf16>
      tpu.vector_store %arg9[%c0_96, %c9_97, %c0_98, %c0_99], %88 {strides = array<i32>} : memref<1x10x10x8xbf16, #tpu.memory_space<vmem>>, vector<1x1x10x8xbf16>,
    } else {
    }
    %c0_35 = arith.constant 0 : index
    %c0_36 = arith.constant 0 : index
    %c0_37 = arith.constant 0 : index
    %c0_38 = arith.constant 0 : index
    %50 = vector.load %arg9[%c0_35, %c0_36, %c0_37, %c0_38] : memref<1x10x10x8xbf16, #tpu.memory_space<vmem>>, vector<1x8x8x8xbf16>
    %51 = vector.shape_cast %50 : vector<1x8x8x8xbf16> to vector<64x8xbf16>
    %c0_39 = arith.constant 0 : index
    %c0_40 = arith.constant 0 : index
    %52 = vector.load %arg10[%c0_39, %c0_40] : memref<64x72xbf16, #tpu.memory_space<vmem>>, vector<64x8xbf16>
    tpu.vector_store %arg10[%c0_39, %c0_40], %51 {strides = array<i32>} : memref<64x72xbf16, #tpu.memory_space<vmem>>, vector<64x8xbf16>,
    %c0_41 = arith.constant 0 : index
    %c0_42 = arith.constant 0 : index
    %c1_43 = arith.constant 1 : index
    %c0_44 = arith.constant 0 : index
    %53 = vector.load %arg9[%c0_41, %c0_42, %c1_43, %c0_44] : memref<1x10x10x8xbf16, #tpu.memory_space<vmem>>, vector<1x8x8x8xbf16>
    %54 = vector.shape_cast %53 : vector<1x8x8x8xbf16> to vector<64x8xbf16>
    %c0_45 = arith.constant 0 : index
    %c8_46 = arith.constant 8 : index
    %55 = vector.load %arg10[%c0_45, %c8_46] : memref<64x72xbf16, #tpu.memory_space<vmem>>, vector<64x8xbf16>
    tpu.vector_store %arg10[%c0_45, %c8_46], %54 {strides = array<i32>} : memref<64x72xbf16, #tpu.memory_space<vmem>>, vector<64x8xbf16>,
    %c0_47 = arith.constant 0 : index
    %c0_48 = arith.constant 0 : index
    %c2 = arith.constant 2 : index
    %c0_49 = arith.constant 0 : index
    %56 = vector.load %arg9[%c0_47, %c0_48, %c2, %c0_49] : memref<1x10x10x8xbf16, #tpu.memory_space<vmem>>, vector<1x8x8x8xbf16>
    %57 = vector.shape_cast %56 : vector<1x8x8x8xbf16> to vector<64x8xbf16>
    %c0_50 = arith.constant 0 : index
    %c16_51 = arith.constant 16 : index
    %58 = vector.load %arg10[%c0_50, %c16_51] : memref<64x72xbf16, #tpu.memory_space<vmem>>, vector<64x8xbf16>
    tpu.vector_store %arg10[%c0_50, %c16_51], %57 {strides = array<i32>} : memref<64x72xbf16, #tpu.memory_space<vmem>>, vector<64x8xbf16>,
    %c0_52 = arith.constant 0 : index
    %c1_53 = arith.constant 1 : index
    %c0_54 = arith.constant 0 : index
    %c0_55 = arith.constant 0 : index
    %59 = vector.load %arg9[%c0_52, %c1_53, %c0_54, %c0_55] : memref<1x10x10x8xbf16, #tpu.memory_space<vmem>>, vector<1x8x8x8xbf16>
    %60 = vector.shape_cast %59 : vector<1x8x8x8xbf16> to vector<64x8xbf16>
    %c0_56 = arith.constant 0 : index
    %c24_57 = arith.constant 24 : index
    %61 = vector.load %arg10[%c0_56, %c24_57] : memref<64x72xbf16, #tpu.memory_space<vmem>>, vector<64x8xbf16>
    tpu.vector_store %arg10[%c0_56, %c24_57], %60 {strides = array<i32>} : memref<64x72xbf16, #tpu.memory_space<vmem>>, vector<64x8xbf16>,
    %c0_58 = arith.constant 0 : index
    %c1_59 = arith.constant 1 : index
    %c1_60 = arith.constant 1 : index
    %c0_61 = arith.constant 0 : index
    %62 = vector.load %arg9[%c0_58, %c1_59, %c1_60, %c0_61] : memref<1x10x10x8xbf16, #tpu.memory_space<vmem>>, vector<1x8x8x8xbf16>
    %63 = vector.shape_cast %62 : vector<1x8x8x8xbf16> to vector<64x8xbf16>
    %c0_62 = arith.constant 0 : index
    %c32_63 = arith.constant 32 : index
    %64 = vector.load %arg10[%c0_62, %c32_63] : memref<64x72xbf16, #tpu.memory_space<vmem>>, vector<64x8xbf16>
    tpu.vector_store %arg10[%c0_62, %c32_63], %63 {strides = array<i32>} : memref<64x72xbf16, #tpu.memory_space<vmem>>, vector<64x8xbf16>,
    %c0_64 = arith.constant 0 : index
    %c1_65 = arith.constant 1 : index
    %c2_66 = arith.constant 2 : index
    %c0_67 = arith.constant 0 : index
    %65 = vector.load %arg9[%c0_64, %c1_65, %c2_66, %c0_67] : memref<1x10x10x8xbf16, #tpu.memory_space<vmem>>, vector<1x8x8x8xbf16>
    %66 = vector.shape_cast %65 : vector<1x8x8x8xbf16> to vector<64x8xbf16>
    %c0_68 = arith.constant 0 : index
    %c40 = arith.constant 40 : index
    %67 = vector.load %arg10[%c0_68, %c40] : memref<64x72xbf16, #tpu.memory_space<vmem>>, vector<64x8xbf16>
    tpu.vector_store %arg10[%c0_68, %c40], %66 {strides = array<i32>} : memref<64x72xbf16, #tpu.memory_space<vmem>>, vector<64x8xbf16>,
    %c0_69 = arith.constant 0 : index
    %c2_70 = arith.constant 2 : index
    %c0_71 = arith.constant 0 : index
    %c0_72 = arith.constant 0 : index
    %68 = vector.load %arg9[%c0_69, %c2_70, %c0_71, %c0_72] : memref<1x10x10x8xbf16, #tpu.memory_space<vmem>>, vector<1x8x8x8xbf16>
    %69 = vector.shape_cast %68 : vector<1x8x8x8xbf16> to vector<64x8xbf16>
    %c0_73 = arith.constant 0 : index
    %c48 = arith.constant 48 : index
    %70 = vector.load %arg10[%c0_73, %c48] : memref<64x72xbf16, #tpu.memory_space<vmem>>, vector<64x8xbf16>
    tpu.vector_store %arg10[%c0_73, %c48], %69 {strides = array<i32>} : memref<64x72xbf16, #tpu.memory_space<vmem>>, vector<64x8xbf16>,
    %c0_74 = arith.constant 0 : index
    %c2_75 = arith.constant 2 : index
    %c1_76 = arith.constant 1 : index
    %c0_77 = arith.constant 0 : index
    %71 = vector.load %arg9[%c0_74, %c2_75, %c1_76, %c0_77] : memref<1x10x10x8xbf16, #tpu.memory_space<vmem>>, vector<1x8x8x8xbf16>
    %72 = vector.shape_cast %71 : vector<1x8x8x8xbf16> to vector<64x8xbf16>
    %c0_78 = arith.constant 0 : index
    %c56 = arith.constant 56 : index
    %73 = vector.load %arg10[%c0_78, %c56] : memref<64x72xbf16, #tpu.memory_space<vmem>>, vector<64x8xbf16>
    tpu.vector_store %arg10[%c0_78, %c56], %72 {strides = array<i32>} : memref<64x72xbf16, #tpu.memory_space<vmem>>, vector<64x8xbf16>,
    %c0_79 = arith.constant 0 : index
    %c2_80 = arith.constant 2 : index
    %c2_81 = arith.constant 2 : index
    %c0_82 = arith.constant 0 : index
    %74 = vector.load %arg9[%c0_79, %c2_80, %c2_81, %c0_82] : memref<1x10x10x8xbf16, #tpu.memory_space<vmem>>, vector<1x8x8x8xbf16>
    %75 = vector.shape_cast %74 : vector<1x8x8x8xbf16> to vector<64x8xbf16>
    %c0_83 = arith.constant 0 : index
    %c64 = arith.constant 64 : index
    %76 = vector.load %arg10[%c0_83, %c64] : memref<64x72xbf16, #tpu.memory_space<vmem>>, vector<64x8xbf16>
    tpu.vector_store %arg10[%c0_83, %c64], %75 {strides = array<i32>} : memref<64x72xbf16, #tpu.memory_space<vmem>>, vector<64x8xbf16>,
    %c0_84 = arith.constant 0 : index
    %c0_85 = arith.constant 0 : index
    %77 = vector.load %arg10[%c0_84, %c0_85] : memref<64x72xbf16, #tpu.memory_space<vmem>>, vector<64x72xbf16>
    %c0_86 = arith.constant 0 : index
    %c0_87 = arith.constant 0 : index
    %78 = vector.load %arg5[%c0_86, %c0_87] : memref<72x8xbf16, #tpu.memory_space<vmem>>, vector<72x8xbf16>
    %cst_88 = arith.constant dense<0.000000e+00> : vector<64x8xf32>
    %79 = tpu.matmul %77, %78, %cst_88 {dimension_numbers = #tpu.dot_dimension_numbers<[1], [0], [0], [1], [0, 0, 1, 1], [], []>} : vector<64x72xbf16>, vector<72x8xbf16>, vector<64x8xf32> -> vector<64x8xf32>
    %c0_89 = arith.constant 0 : index
    %c0_90 = arith.constant 0 : index
    %80 = vector.load %arg6[%c0_89, %c0_90] : memref<1x8xf32, #tpu.memory_space<vmem>>, vector<1x8xf32>
    %81 = vector.broadcast %80 : vector<1x8xf32> to vector<64x8xf32>
    %82 = arith.addf %79, %81 : vector<64x8xf32>
    %cst_91 = arith.constant 0.000000e+00 : f32
    %83 = vector.broadcast %cst_91 : f32 to vector<64x8xf32>
    %84 = arith.maximumf %82, %83 : vector<64x8xf32>
    %c0_92 = arith.constant 0 : index
    %c0_93 = arith.constant 0 : index
    %c0_94 = arith.constant 0 : index
    %85 = vector.load %arg7[%c0_92, %c0_93, %c0_94] : memref<1x64x8xf32, #tpu.memory_space<vmem>>, vector<1x64x8xf32>
    %86 = vector.shape_cast %85 : vector<1x64x8xf32> to vector<64x8xf32>
    %87 = vector.shape_cast %84 : vector<64x8xf32> to vector<1x64x8xf32>
    tpu.vector_store %arg7[%c0_92, %c0_93, %c0_94], %87 {strides = array<i32>} : memref<1x64x8xf32, #tpu.memory_space<vmem>>, vector<1x64x8xf32>,
    return
  }
  func.func @transform_0(%arg0: i32, %arg1: i32) -> (i32, i32, i32, i32) {
    %c1_i32 = arith.constant 1 : i32
    %0 = arith.muli %arg0, %c1_i32 : i32
    %1 = arith.addi %0, %arg1 : i32
    %c0_i32 = arith.constant 0 : i32
    %c0_i32_0 = arith.constant 0 : i32
    %c0_i32_1 = arith.constant 0 : i32
    %c0_i32_2 = arith.constant 0 : i32
    return %1, %c0_i32, %c0_i32_0, %c0_i32_1 : i32, i32, i32, i32
  }
  func.func @transform_1(%arg0: i32, %arg1: i32) -> (i32, i32) {
    %c0_i32 = arith.constant 0 : i32
    %c0_i32_0 = arith.constant 0 : i32
    %c0_i32_1 = arith.constant 0 : i32
    return %c0_i32, %c0_i32_0 : i32, i32
  }
  func.func @transform_2(%arg0: i32, %arg1: i32) -> (i32, i32) {
    %c0_i32 = arith.constant 0 : i32
    %c0_i32_0 = arith.constant 0 : i32
    %c0_i32_1 = arith.constant 0 : i32
    return %c0_i32, %c0_i32_0 : i32, i32
  }
  func.func @transform_3(%arg0: i32, %arg1: i32) -> (i32, i32) {
    %c0_i32 = arith.constant 0 : i32
    %c0_i32_0 = arith.constant 0 : i32
    %c0_i32_1 = arith.constant 0 : i32
    return %c0_i32, %c0_i32_0 : i32, i32
  }
  func.func @transform_4(%arg0: i32, %arg1: i32) -> (i32, i32) {
    %c0_i32 = arith.constant 0 : i32
    %c0_i32_0 = arith.constant 0 : i32
    %c0_i32_1 = arith.constant 0 : i32
    return %c0_i32, %c0_i32_0 : i32, i32
  }
  func.func @transform_5(%arg0: i32, %arg1: i32) -> (i32, i32, i32) {
    %c1_i32 = arith.constant 1 : i32
    %0 = arith.muli %arg0, %c1_i32 : i32
    %1 = arith.addi %0, %arg1 : i32
    %c0_i32 = arith.constant 0 : i32
    %c0_i32_0 = arith.constant 0 : i32
    %c0_i32_1 = arith.constant 0 : i32
    return %1, %c0_i32, %c0_i32_0 : i32, i32, i32
  }
}

</mosaic_0001>

<bundles_post_ra>
// kernel: tpu_custom_call.1
= control target key start
LH: loop header
LB: loop body
LE: loop exit
PB: predicated region body
PF: predicated region fallthrough
CT: control target
= control target key end

     0   :  { %s2933_s18 = smov 0   ;;  %s2935_s19 = smov 0   ;;  %s4027_s0 = inlined_call_operand.vmem [shape: bf16[8,12,10,4], index: 0, kind: input, shape index: {}]   ;;  %s4028_s1 = inlined_call_operand.vmem [shape: bf16[36,8], index: 1, kind: input, shape index: {}]   ;;  %s4029_s2 = inlined_call_operand.vmem [shape: f32[1,8], index: 2, kind: input, shape index: {}]   ;;  %s4030_s3 = inlined_call_operand.vmem [shape: bf16[72,8], index: 3, kind: input, shape index: {}]   ;;  %s4031_s4 = inlined_call_operand.vmem [shape: f32[1,8], index: 4, kind: input, shape index: {}]   ;;  %s4032_s5 = inlined_call_operand.vmem [shape: f32[2,64,8], index: 5, kind: output, shape index: {}]  }
   0x1   :  { %s2937_s20 = smov 0  }
   0x2 LB: > { %s27_s21 = sadd.s32 1, %s2884_s19  ;;  %p2690_p0 = scmp.ge.s32.totalorder %s2888_s20, 1  ;;  %s2888_s20 = sphi %s2937_s20, %s15_s20   ;;  %s2884_s19 = sphi %s2935_s19, %s4044_s19   ;;  %s2880_s18 = sphi %s2933_s18, %s4043_s18  }
   0x3   : > { %p29_p1 = scmp.ge.s32.totalorder %s27_s21, 2  ;;  %p207_p2 = scmp.lt.s32.totalorder %s2888_s20, 3 }
   0x5   : > { %s4046_s21 = smov (%p29_p1, %s27_s21), 0  ;;  %p208_p3 = pnand %p2690_p0, %p207_p2 }
   0x6   : > { %s2691_s22 = sshll.u32 (!%p208_p3), %s2880_s18, 2  ;;  %s2890_s27 = smov (!%p208_p3), 24  }
   0x7   : > { %211 = sbr.rel (%p208_p3) target bundleno = 893 (0x37d), region = 40  ;;  %p240_p4 = scmp.lt.s32.totalorder (!%p208_p3), %s2691_s22, 7 }
   0x8   : > { %s2891_s28 = smov (!%p208_p3), 20   ;;  %s2892_s29 = smov (!%p208_p3), 8  }
   0x9   : > { %s2893_s30 = smov (!%p208_p3), 12   ;;  %s2894_s6 = smov (!%p208_p3), 4  }
   0xa   : > { %s2895_s7 = smov (!%p208_p3), 16   ;;  %s2896_s8 = smov (!%p208_p3), 28  }
   0xb   : > { %s2897_s9 = smov (!%p208_p3), 32   ;;  %s2901_s24 = smov (!%p208_p3), 64  }
   0xc   : > { %s4048_s22 = smov (!%p240_p4, %s2691_s22), 7  ;;  %vm447_vm0 = vcmask 31744   ;;  %vm455_vm1 = vcmask 25600   ;;  %vm856_vm2 = vcmask 1042432   ;;  %vm857_vm3 = vcmask 1046532   ;;  %s2902_s25 = smov 56  }
   0xd   : > { %s2826_s23 = smul.u32 96, %s4048_s22  ;;  %vm652_vm4 = vsmask.f32 3328  ;;  %vm653_vm5 = vsmask.f32 7440  ;;  %vm3008_vm6 = vmor %vm856_vm2, %vm857_vm3  ;;  %vm641_vm8 = vcmask 27648  }
   0xe   : > { %vm3044_vm7 = vmor %vm652_vm4, %vm653_vm5  ;;  %vm1301_vm9 = vcmask 1041408   ;;  %vm825_vm10 = vcmask 60448   ;;  %vm929_vm11 = vcmask 93248   ;;  %vm971_vm12 = vcmask 126048   ;;  %s2899_s22 = smov 48   ;;  %p248_p5 = scmp.lt.s32.totalorder %s2880_s18, 1 }
   0xf   : > { %s2957_s26 = scalar_lea.vmem %s4027_s0, %s2826_s23  ;;  %vm1026_vm13 = vcmask 158848   ;;  %vm1072_vm14 = vcmask 191648   ;;  %vm1114_vm15 = vcmask 224448   ;;  %vm1169_vm2 = vcmask 257248   ;;  %s2900_s23 = smov 40  }
  0x10   : > { %v259_v0 = vld [vmem:[%s2957_s26 + $0x10] sm:$0xf]  ;;  %v260_v7 = vld [vmem:[%s2957_s26 + $0x14] sm:$0x1]  ;;  %v255_v14 = vld [vmem:[%s2957_s26] sm:$0xf] }
  0x11   : > { %v283_v1 = vld [vmem:[%s2957_s26 + $0x70] sm:$0xf]  ;;  %v355_v4 = vunpack.c.l.bf16 %v259_v0  ;;  %v284_v8 = vld [vmem:[%s2957_s26 + $0x74] sm:$0x1]  ;;  %v356_v12 = vunpack.c.l.bf16 %v260_v7  ;;  %v256_v19 = vld [vmem:[%s2957_s26 + $0x4] sm:$0x1]  ;;  %v351_v30 = vunpack.c.l.bf16 %v255_v14 }
  0x12   : > { %v307_v2 = vld [vmem:[%s2957_s26 + $0xd0] sm:$0xf]  ;;  %v379_v5 = vunpack.c.l.bf16 %v283_v1  ;;  %v308_v10 = vld [vmem:[%s2957_s26 + $0xd4] sm:$0x1]  ;;  %v380_v13 = vunpack.c.l.bf16 %v284_v8  ;;  %v279_v24 = vld [vmem:[%s2957_s26 + $0x60] sm:$0xf]  ;;  %v352_v31 = vunpack.c.l.bf16 %v256_v19 }
  0x13   : > { %v331_v3 = vld [vmem:[%s2957_s26 + $0x130] sm:$0xf]  ;;  %v403_v6 = vunpack.c.l.bf16 %v307_v2  ;;  %v332_v11 = vld [vmem:[%s2957_s26 + $0x134] sm:$0x1]  ;;  %v477_v15 = vsel %vm447_vm0, %v355_v4, -inf  ;;  %v404_v18 = vunpack.c.l.bf16 %v308_v10  ;;  %v484_v23 = vsel %vm455_vm1, %v356_v12, -inf }
  0x14   : > { %v427_v9 = vunpack.c.l.bf16 %v331_v3  ;;  %v478_v16 = vsel %vm447_vm0, %v379_v5, -inf  ;;  %v428_v22 = vunpack.c.l.bf16 %v332_v11  ;;  %v280_v25 = vld [vmem:[%s2957_s26 + $0x64] sm:$0x1]  ;;  %v485_v26 = vsel %vm455_vm1, %v380_v13, -inf  ;;  %v303_v28 = vld [vmem:[%s2957_s26 + $0xc0] sm:$0xf] }
  0x15   : > { %v480_v17 = vsel %vm447_vm0, %v403_v6, -inf  ;;  %v479_v20 = vmax.f32 %v477_v15, %v478_v16  ;;  %v487_v27 = vsel %vm455_vm1, %v404_v18, -inf  ;;  %v304_v29 = vld [vmem:[%s2957_s26 + $0xc4] sm:$0x1]  ;;  %v486_v33 = vmax.f32 %v484_v23, %v485_v26  ;;  %v327_v35 = vld [vmem:[%s2957_s26 + $0x120] sm:$0xf] }
  0x16   : > { %v482_v21 = vsel %vm447_vm0, %v427_v9, -inf  ;;  %v489_v34 = vsel %vm455_vm1, %v428_v22, -inf  ;;  %v328_v36 = vld [vmem:[%s2957_s26 + $0x124] sm:$0x1]  ;;  %v375_v37 = vunpack.c.l.bf16 %v279_v24  ;;  %v376_v38 = vunpack.c.l.bf16 %v280_v25  ;;  %v257_v46 = vld [vmem:[%s2957_s26 + $0x8] sm:$0xf] }
  0x17   : > { %v481_v32 = vmax.f32 %v479_v20, %v480_v17  ;;  %v399_v39 = vunpack.c.l.bf16 %v303_v28  ;;  %v400_v40 = vunpack.c.l.bf16 %v304_v29  ;;  %v423_v41 = vunpack.c.l.bf16 %v327_v35  ;;  %v258_v47 = vld [vmem:[%s2957_s26 + $0xc] sm:$0x1]  ;;  %v281_v52 = vld [vmem:[%s2957_s26 + $0x68] sm:$0xf]  ;;  %s4050_s18 = smov (!%p248_p5, %s2880_s18), 1 }
  0x18   : > { %v488_v43 = vmax.f32 %v486_v33, %v487_v27  ;;  %v424_v44 = vunpack.c.l.bf16 %v328_v36  ;;  %v448_v45 = vsel %vm447_vm0, %v351_v30, -inf  ;;  %v449_v48 = vsel %vm447_vm0, %v375_v37, -inf  ;;  %v282_v57 = vld [vmem:[%s2957_s26 + $0x6c] sm:$0x1]  ;;  %v305_v58 = vld [vmem:[%s2957_s26 + $0xc8] sm:$0xf] }
  0x19   : > { %v483_v42 = vmax.f32 %v481_v32, %v482_v21  ;;  %v451_v49 = vsel %vm447_vm0, %v399_v39, -inf  ;;  %v453_v50 = vsel %vm447_vm0, %v423_v41, -inf  ;;  %v456_v51 = vsel %vm455_vm1, %v352_v31, -inf  ;;  %v306_v62 = vld [vmem:[%s2957_s26 + $0xcc] sm:$0x1]  ;;  %s2802_s13 = sshll.u32 %s4050_s18, 6 }
  0x1a   : > { %v490_v54 = vmax.f32 %v488_v43, %v489_v34  ;;  %v450_v55 = vmax.f32 %v448_v45, %v449_v48  ;;  %v457_v56 = vsel %vm455_vm1, %v376_v38, -inf  ;;  %v459_v60 = vsel %vm455_vm1, %v400_v40, -inf  ;;  %v329_v63 = vld [vmem:[%s2957_s26 + $0x128] sm:$0xf]  ;;  %v330_v4 = vld [vmem:[%s2957_s26 + $0x12c] sm:$0x1]  ;;  %s4000_s16 = scalar_lea.vmem %s4032_s5, %s2802_s13 }
  0x1b   : > { %v2991_v53 = vpack.c.bf16 %v483_v42, %v483_v42  ;;  %v458_v59 = vmax.f32 %v456_v51, %v457_v56  ;;  %v461_v61 = vsel %vm455_vm1, %v424_v44, -inf  ;;  %v353_v0 = vunpack.c.l.bf16 %v257_v46  ;;  %v261_v39 = vld [vmem:[%s2957_s26 + $0x18] sm:$0xf]  ;;  %v262_v43 = vld [vmem:[%s2957_s26 + $0x1c] sm:$0x1] }
  0x1c   : > { %v3002_v1 = vpack.c.bf16 %v490_v54, %v490_v54  ;;  %v452_v3 = vmax.f32 %v450_v55, %v451_v49  ;;  %v354_v5 = vunpack.c.l.bf16 %v258_v47  ;;  %v377_v8 = vunpack.c.l.bf16 %v281_v52  ;;  %v285_v48 = vld [vmem:[%s2957_s26 + $0x78] sm:$0xf]  ;;  %v286_v54 = vld [vmem:[%s2957_s26 + $0x7c] sm:$0x1] }
  0x1d   : > { %1084 = vrot.lane.b32.xlu1 %v2991_v53, %s2890_s27  ;;  %v2697_v2 = vrot.slane %v2991_v53, 9  ;;  %v460_v7 = vmax.f32 %v458_v59, %v459_v60  ;;  %v378_v9 = vunpack.c.l.bf16 %v282_v57  ;;  %v401_v10 = vunpack.c.l.bf16 %v305_v58  ;;  %v309_v59 = vld [vmem:[%s2957_s26 + $0xd8] sm:$0xf]  ;;  %644 = vst.msk [vmem:[#allocation2 + $0x8] sm:$0xf] %vm641_vm8, %v2991_v53 }
  0x1e   : > { %v869_v11 = vrot.slane %v3002_v1, 5  ;;  %v454_v12 = vmax.f32 %v452_v3, %v453_v50  ;;  %v402_v13 = vunpack.c.l.bf16 %v306_v62  ;;  %v425_v14 = vunpack.c.l.bf16 %v329_v63 }
  0x1f   : > { %v462_v15 = vmax.f32 %v460_v7, %v461_v61  ;;  %v426_v16 = vunpack.c.l.bf16 %v330_v4  ;;  %v463_v17 = vsel %vm447_vm0, %v353_v0, -inf  ;;  %v464_v18 = vsel %vm447_vm0, %v377_v8, -inf  ;;  %v310_v0 = vld [vmem:[%s2957_s26 + $0xdc] sm:$0x1] }
  0x20   : > { %v3017_v19 = vsel %vm3008_vm6, %v2697_v2, %v869_v11  ;;  %v3019_v20 = vpack.c.bf16 %v454_v12, %v454_v12  ;;  %v465_v21 = vmax.f32 %v463_v17, %v464_v18  ;;  %v466_v22 = vsel %vm447_vm0, %v401_v10, -inf  ;;  %v334_v7 = vld [vmem:[%s2957_s26 + $0x13c] sm:$0x1] }
  0x21   : > { %1044 = vrot.lane.b32.xlu0 %v3017_v19, %s2891_s28  ;;  %v618_v23 = vpack.c.bf16 %v462_v15, %v462_v15  ;;  %v468_v24 = vsel %vm447_vm0, %v425_v14, -inf  ;;  %v470_v25 = vsel %vm455_vm1, %v354_v5, -inf  ;;  %v471_v26 = vsel %vm455_vm1, %v378_v9, -inf }
  0x22   : > { %v2695_v27 = vrot.slane %v3019_v20, 9  ;;  %v656_v28 = vshrl.u32 %v3019_v20, 16  ;;  %v659_v29 = vshll.u32 %v3019_v20, 16  ;;  %v467_v30 = vmax.f32 %v465_v21, %v466_v22  ;;  %642 = vst.msk [vmem:[#allocation2] sm:$0xf] %vm641_vm8, %v3019_v20 }
  0x23   : > { %v861_v31 = vrot.slane %v618_v23, 5  ;;  %v665_v32 = vshll.u32 %v618_v23, 16  ;;  %v472_v33 = vmax.f32 %v470_v25, %v471_v26  ;;  %v473_v34 = vsel %vm455_vm1, %v402_v13, -inf }
  0x24   : > { %v658_v35 = vrot.slane %v656_v28, 4  ;;  %v661_v36 = vrot.slane %v659_v29, 5  ;;  %v469_v37 = vmax.f32 %v467_v30, %v468_v24  ;;  %v475_v38 = vsel %vm455_vm1, %v426_v16, -inf }
  0x25   : > { %v862_v40 = vsel %vm3008_vm6, %v2695_v27, %v861_v31  ;;  %v474_v41 = vmax.f32 %v472_v33, %v473_v34  ;;  %v684_v42 = vshrl.u32 %v2991_v53, 16  ;;  %v667_v45 = vrot.slane %v665_v32, 5 }
  0x26   : > { %899 = vrot.lane.b32.xlu1 %v862_v40, %s2892_s29  ;;  %v662_v44 = vor.u32 %v661_v36, %v658_v35  ;;  %v3038_v46 = vpack.c.bf16 %v469_v37, %v469_v37  ;;  %v687_v47 = vshll.u32 %v2991_v53, 16  ;;  %v693_v52 = vshll.u32 %v3002_v1, 16  ;;  %v333_v1 = vld [vmem:[%s2957_s26 + $0x138] sm:$0xf] }
  0x27   : > { %v476_v50 = vmax.f32 %v474_v41, %v475_v38  ;;  %v686_v51 = vrot.slane %v684_v42, 4  ;;  %v357_v55 = vunpack.c.l.bf16 %v261_v39  ;;  %v358_v60 = vunpack.c.l.bf16 %v262_v43  ;;  %v263_v41 = vld [vmem:[%s2957_s26 + $0x20] sm:$0xf] }
  0x28   : > { %v663_v56 = vrot.slane %v662_v44, 4  ;;  %v670_v57 = vshrl.u32 %v3038_v46, 16  ;;  %v673_v58 = vshll.u32 %v3038_v46, 16  ;;  %941 = vrot.lane.b32.xlu2 %v3038_v46, %s2893_s30  ;;  %v2696_v62 = vrot.slane %v3038_v46, 9  ;;  %v287_v42 = vld [vmem:[%s2957_s26 + $0x80] sm:$0xf] }
  0x29   : > { %v620_v61 = vpack.c.bf16 %v476_v50, %v476_v50  ;;  %v689_v63 = vrot.slane %v687_v47, 5  ;;  %v381_v2 = vunpack.c.l.bf16 %v285_v48  ;;  %v382_v8 = vunpack.c.l.bf16 %v286_v54  ;;  %v311_v54 = vld [vmem:[%s2957_s26 + $0xe0] sm:$0xf]  ;;  %643 = vst.msk [vmem:[#allocation2 + $0x4] sm:$0xf] %vm641_vm8, %v3038_v46 }
  0x2a   : > { %v668_v3 = vsel %vm3044_vm7, %v663_v56, %v667_v45  ;;  %v672_v4 = vrot.slane %v670_v57, 4  ;;  %v675_v5 = vrot.slane %v673_v58, 5  ;;  %v405_v12 = vunpack.c.l.bf16 %v309_v59 }
  0x2b   : > { %795 = vrot.lane.b32.xlu0 %v668_v3, %s2894_s6  ;;  %v865_v9 = vrot.slane %v620_v61, 5  ;;  %v679_v10 = vshll.u32 %v620_v61, 16  ;;  %v690_v11 = vor.u32 %v689_v63, %v686_v51  ;;  %v406_v14 = vunpack.c.l.bf16 %v310_v0  ;;  %v264_v61 = vld [vmem:[%s2957_s26 + $0x24] sm:$0x1]  ;;  %v335_v63 = vld [vmem:[%s2957_s26 + $0x140] sm:$0xf] }
  0x2c   : > { %v676_v13 = vor.u32 %v675_v5, %v672_v4  ;;  %v429_v15 = vunpack.c.l.bf16 %v333_v1  ;;  %v430_v18 = vunpack.c.l.bf16 %v334_v7  ;;  %v491_v21 = vsel %vm447_vm0, %v357_v55, -inf  ;;  %v312_v7 = vld [vmem:[%s2957_s26 + $0xe4] sm:$0x1] }
  0x2d   : > { %v866_v16 = vsel %vm3008_vm6, %v2696_v62, %v865_v9  ;;  %v681_v17 = vrot.slane %v679_v10, 5  ;;  %v695_v23 = vrot.slane %v693_v52, 5  ;;  %v492_v24 = vsel %vm447_vm0, %v381_v2, -inf  ;;  %v288_v62 = vld [vmem:[%s2957_s26 + $0x84] sm:$0x1] }
  0x2e   : > { %901 = vrot.lane.b32.xlu1 %v866_v16, %s2892_s29  ;;  %v677_v22 = vrot.slane %v676_v13, 4  ;;  %v494_v25 = vsel %vm447_vm0, %v405_v12, -inf  ;;  %v691_v26 = vrot.slane %v690_v11, 4  ;;  %v493_v27 = vmax.f32 %v491_v21, %v492_v24  ;;  %v289_v24 = vld [vmem:[%s2957_s26 + $0x88] sm:$0xf] }
  0x2f   : > { %v498_v28 = vsel %vm455_vm1, %v358_v60, -inf  ;;  %v499_v29 = vsel %vm455_vm1, %v382_v8, -inf  ;;  %v496_v31 = vsel %vm447_vm0, %v429_v15, -inf  ;;  %v501_v33 = vsel %vm455_vm1, %v406_v14, -inf  ;;  %v336_v15 = vld [vmem:[%s2957_s26 + $0x144] sm:$0x1] }
  0x30   : > { %v682_v30 = vsel %vm3044_vm7, %v677_v22, %v681_v17  ;;  %v500_v32 = vmax.f32 %v498_v28, %v499_v29  ;;  %943 = vrot.lane.b32.xlu2 %v2991_v53, %s2893_s30  ;;  %v495_v34 = vmax.f32 %v493_v27, %v494_v25  ;;  %v503_v35 = vsel %vm455_vm1, %v430_v18, -inf  ;;  %v313_v28 = vld [vmem:[%s2957_s26 + $0xe8] sm:$0xf] }
  0x31   : > { %v696_v37 = vsel %vm3044_vm7, %v691_v26, %v695_v23  ;;  %v359_v48 = vunpack.c.l.bf16 %v263_v41  ;;  %v383_v50 = vunpack.c.l.bf16 %v287_v42  ;;  %v407_v57 = vunpack.c.l.bf16 %v311_v54  ;;  %v265_v23 = vld [vmem:[%s2957_s26 + $0x28] sm:$0xf] }
  0x32   : > { %v502_v36 = vmax.f32 %v500_v32, %v501_v33  ;;  %v497_v38 = vmax.f32 %v495_v34, %v496_v31  ;;  %v360_v3 = vunpack.c.l.bf16 %v264_v61  ;;  %v384_v4 = vunpack.c.l.bf16 %v288_v62  ;;  %v266_v31 = vld [vmem:[%s2957_s26 + $0x2c] sm:$0x1]  ;;  %v270_v62 = vld [vmem:[%s2957_s26 + $0x3c] sm:$0x1] }
  0x33   : > { %797 = vrot.lane.b32.xlu0 %v682_v30, %s2894_s6  ;;  %v505_v58 = vsel %vm447_vm0, %v359_v48, -inf  ;;  %v506_v59 = vsel %vm447_vm0, %v383_v50, -inf  ;;  %v508_v2 = vsel %vm447_vm0, %v407_v57, -inf  ;;  %v431_v5 = vunpack.c.l.bf16 %v335_v63  ;;  %v290_v32 = vld [vmem:[%s2957_s26 + $0x8c] sm:$0x1] }
  0x34   : > { %v504_v39 = vmax.f32 %v502_v36, %v503_v35  ;;  %v3080_v40 = vpack.c.bf16 %v497_v38, %v497_v38  ;;  %v507_v1 = vmax.f32 %v505_v58, %v506_v59  ;;  %v408_v11 = vunpack.c.l.bf16 %v312_v7  ;;  %v269_v35 = vld [vmem:[%s2957_s26 + $0x38] sm:$0xf]  ;;  %v338_v58 = vld [vmem:[%s2957_s26 + $0x14c] sm:$0x1]  ;;  %v294_v63 = vld [vmem:[%s2957_s26 + $0x9c] sm:$0x1] }
  0x35   : > { %v512_v12 = vsel %vm455_vm1, %v360_v3, -inf  ;;  %v513_v13 = vsel %vm455_vm1, %v384_v4, -inf  ;;  %v510_v14 = vsel %vm447_vm0, %v431_v5, -inf  ;;  %v432_v21 = vunpack.c.l.bf16 %v336_v15  ;;  %v293_v36 = vld [vmem:[%s2957_s26 + $0x98] sm:$0xf] }
  0x36   : > { %998 = vrot.lane.b32.xlu1 %v696_v37, %s2895_s7  ;;  %v624_v43 = vpack.c.bf16 %v504_v39, %v504_v39  ;;  %v698_v44 = vshrl.u32 %v3080_v40, 16  ;;  %v701_v45 = vshll.u32 %v3080_v40, 16  ;;  %v2698_v8 = vrot.slane %v3080_v40, 9  ;;  %v341_v7 = vld [vmem:[%s2957_s26 + $0x158] sm:$0xf] }
  0x37   : > { %v509_v9 = vmax.f32 %v507_v1, %v508_v2  ;;  %v515_v22 = vsel %vm455_vm1, %v408_v11, -inf  ;;  %v517_v27 = vsel %vm455_vm1, %v432_v21, -inf  ;;  %v361_v29 = vunpack.c.l.bf16 %v265_v23  ;;  %v291_v23 = vld [vmem:[%s2957_s26 + $0x90] sm:$0xf]  ;;  %645 = vst.msk [vmem:[#allocation2 + $0xc] sm:$0xf] %vm641_vm8, %v3080_v40 }
  0x38   : > { %v707_v47 = vshll.u32 %v624_v43, 16  ;;  %1042 = vrot.lane.b32.xlu2 %v866_v16, %s2891_s28  ;;  %v700_v51 = vrot.slane %v698_v44, 4  ;;  %v703_v52 = vrot.slane %v701_v45, 5  ;;  %v873_v10 = vrot.slane %v624_v43, 5  ;;  %v337_v44 = vld [vmem:[%s2957_s26 + $0x148] sm:$0xf] }
  0x39   : > { %v514_v16 = vmax.f32 %v512_v12, %v513_v13  ;;  %v511_v18 = vmax.f32 %v509_v9, %v510_v14  ;;  %v409_v38 = vunpack.c.l.bf16 %v313_v28  ;;  %v519_v39 = vsel %vm447_vm0, %v361_v29, -inf  ;;  %v314_v45 = vld [vmem:[%s2957_s26 + $0xec] sm:$0x1] }
  0x3a   : > { %v704_v55 = vor.u32 %v703_v52, %v700_v51  ;;  %v709_v56 = vrot.slane %v707_v47, 5  ;;  %v3114_v17 = vsel %vm3008_vm6, %v2698_v8, %v873_v10  ;;  %v362_v42 = vunpack.c.l.bf16 %v266_v31  ;;  %v317_v52 = vld [vmem:[%s2957_s26 + $0xf8] sm:$0xf]  ;;  %v268_v31 = vld [vmem:[%s2957_s26 + $0x34] sm:$0x1] }
  0x3b   : > { %996 = vrot.lane.b32.xlu0 %v682_v30, %s2895_s7  ;;  %v516_v25 = vmax.f32 %v514_v16, %v515_v22  ;;  %v3123_v26 = vpack.c.bf16 %v511_v18, %v511_v18  ;;  %v385_v30 = vunpack.c.l.bf16 %v289_v24  ;;  %v386_v43 = vunpack.c.l.bf16 %v290_v32  ;;  %v267_v22 = vld [vmem:[%s2957_s26 + $0x30] sm:$0xf]  ;;  %v292_v32 = vld [vmem:[%s2957_s26 + $0x94] sm:$0x1] }
  0x3c   : > { %v705_v60 = vrot.slane %v704_v55, 4  ;;  %v365_v47 = vunpack.c.l.bf16 %v269_v35  ;;  %v389_v48 = vunpack.c.l.bf16 %v293_v36  ;;  %v433_v57 = vunpack.c.l.bf16 %v337_v44 }
  0x3d   : > { %v712_v33 = vshrl.u32 %v3123_v26, 16  ;;  %v715_v34 = vshll.u32 %v3123_v26, 16  ;;  %v520_v41 = vsel %vm447_vm0, %v385_v30, -inf  ;;  %v410_v59 = vunpack.c.l.bf16 %v314_v45  ;;  %646 = vst.msk [vmem:[#allocation2 + $0x10] sm:$0xf] %vm641_vm8, %v3123_v26 }
  0x3e   : > { %v3097_v0 = vsel %vm3044_vm7, %v705_v60, %v709_v56  ;;  %v521_v55 = vmax.f32 %v519_v39, %v520_v41  ;;  %v522_v56 = vsel %vm447_vm0, %v409_v38, -inf  ;;  %v526_v60 = vsel %vm455_vm1, %v362_v42, -inf  ;;  %v315_v41 = vld [vmem:[%s2957_s26 + $0xf0] sm:$0xf]  ;;  %v342_v42 = vld [vmem:[%s2957_s26 + $0x15c] sm:$0x1] }
  0x3f   : > { %1141 = vrot.lane.b32.xlu1 %v3097_v0, %s2896_s8  ;;  %v714_v50 = vrot.slane %v712_v33, 4  ;;  %v717_v51 = vrot.slane %v715_v34, 5  ;;  %v527_v61 = vsel %vm455_vm1, %v386_v43, -inf  ;;  %v413_v1 = vunpack.c.l.bf16 %v317_v52 }
  0x40   : > { %1086 = vrot.lane.b32.xlu2 %v3080_v40, %s2890_s27  ;;  %v547_v2 = vsel %vm447_vm0, %v365_v47, -inf  ;;  %v548_v3 = vsel %vm447_vm0, %v389_v48, -inf  ;;  %v523_v8 = vmax.f32 %v521_v55, %v522_v56  ;;  %v434_v9 = vunpack.c.l.bf16 %v338_v58 }
  0x41   : > { %v718_v4 = vor.u32 %v717_v51, %v714_v50  ;;  %v528_v10 = vmax.f32 %v526_v60, %v527_v61  ;;  %v366_v11 = vunpack.c.l.bf16 %v270_v62  ;;  %v524_v12 = vsel %vm447_vm0, %v433_v57, -inf  ;;  %v316_v51 = vld [vmem:[%s2957_s26 + $0xf4] sm:$0x1] }
  0x42   : > { %v529_v13 = vsel %vm455_vm1, %v410_v59, -inf  ;;  %v390_v14 = vunpack.c.l.bf16 %v294_v63  ;;  %v549_v15 = vmax.f32 %v547_v2, %v548_v3  ;;  %v437_v18 = vunpack.c.l.bf16 %v341_v7  ;;  %v339_v59 = vld [vmem:[%s2957_s26 + $0x150] sm:$0xf]  ;;  %v340_v3 = vld [vmem:[%s2957_s26 + $0x154] sm:$0x1] }
  0x43   : > { %1139 = vrot.lane.b32.xlu0 %v696_v37, %s2896_s8  ;;  %v550_v21 = vsel %vm447_vm0, %v413_v1, -inf  ;;  %v719_v24 = vrot.slane %v718_v4, 4  ;;  %v530_v28 = vmax.f32 %v528_v10, %v529_v13  ;;  %v531_v29 = vsel %vm455_vm1, %v434_v9, -inf }
  0x44   : > { %v554_v30 = vsel %vm455_vm1, %v366_v11, -inf  ;;  %v551_v33 = vmax.f32 %v549_v15, %v550_v21  ;;  %v555_v34 = vsel %vm455_vm1, %v390_v14, -inf  ;;  %v363_v35 = vunpack.c.l.bf16 %v267_v22 }
  0x45   : > { %v387_v36 = vunpack.c.l.bf16 %v291_v23  ;;  %v552_v39 = vsel %vm447_vm0, %v437_v18, -inf  ;;  %v364_v43 = vunpack.c.l.bf16 %v268_v31  ;;  %v388_v44 = vunpack.c.l.bf16 %v292_v32  ;;  %v271_v31 = vld [vmem:[%s2957_s26 + $0x40] sm:$0xf] }
  0x46   : > { %v532_v48 = vmax.f32 %v530_v28, %v531_v29  ;;  %v556_v50 = vmax.f32 %v554_v30, %v555_v34  ;;  %v553_v52 = vmax.f32 %v551_v33, %v552_v39  ;;  %v533_v55 = vsel %vm447_vm0, %v363_v35, -inf  ;;  %v295_v35 = vld [vmem:[%s2957_s26 + $0xa0] sm:$0xf] }
  0x47   : > { %799 = vrot.lane.b32.xlu1 %v696_v37, %s2894_s6  ;;  %v518_v37 = vmax.f32 %v516_v25, %v517_v27  ;;  %v525_v27 = vmax.f32 %v523_v8, %v524_v12  ;;  %v534_v56 = vsel %vm447_vm0, %v387_v36, -inf  ;;  %v438_v57 = vunpack.c.l.bf16 %v342_v42 }
  0x48   : > { %1185 = vrot.lane.b32.xlu2 %v3017_v19, %s2897_s9  ;;  %v412_v62 = vunpack.c.l.bf16 %v316_v51  ;;  %v540_v63 = vsel %vm455_vm1, %v364_v43, -inf  ;;  %v541_v1 = vsel %vm455_vm1, %v388_v44, -inf  ;;  %v628_v2 = vpack.c.bf16 %v532_v48, %v532_v48  ;;  %v319_v43 = vld [vmem:[%s2957_s26 + $0x100] sm:$0xf] }
  0x49   : > { %v626_v54 = vpack.c.bf16 %v518_v37, %v518_v37  ;;  %v3182_v47 = vpack.c.bf16 %v525_v27, %v525_v27  ;;  %v3200_v8 = vpack.c.bf16 %v553_v52, %v553_v52  ;;  %v435_v9 = vunpack.c.l.bf16 %v339_v59 }
  0x4a   : > { %v559_v11 = vsel %vm455_vm1, %v438_v57, -inf  ;;  %v542_v12 = vmax.f32 %v540_v63, %v541_v1  ;;  %v735_v14 = vshll.u32 %v628_v2, 16  ;;  %v436_v15 = vunpack.c.l.bf16 %v340_v3  ;;  %v343_v63 = vld [vmem:[%s2957_s26 + $0x160] sm:$0xf]  ;;  %v272_v3 = vld [vmem:[%s2957_s26 + $0x44] sm:$0x1] }
  0x4b   : > { %1187 = vrot.lane.b32.xlu0 %v3114_v17, %s2897_s9  ;;  %v721_v5 = vshll.u32 %v626_v54, 16  ;;  %v877_v16 = vrot.slane %v626_v54, 5  ;;  %v411_v54 = vunpack.c.l.bf16 %v315_v41  ;;  %v726_v60 = vshrl.u32 %v3182_v47, 16  ;;  %647 = vst.msk [vmem:[#allocation2 + $0x14] sm:$0xf] %vm641_vm8, %v3182_v47 }
  0x4c   : > { %v729_v61 = vshll.u32 %v3182_v47, 16  ;;  %v754_v22 = vshrl.u32 %v3200_v8, 16  ;;  %v757_v23 = vshll.u32 %v3200_v8, 16  ;;  %v737_v28 = vrot.slane %v735_v14, 5  ;;  %649 = vst.msk [vmem:[#allocation2 + $0x1c] sm:$0xf] %vm641_vm8, %v3200_v8 }
  0x4d   : > { %v723_v25 = vrot.slane %v721_v5, 5  ;;  %v728_v4 = vrot.slane %v726_v60, 4  ;;  %v536_v10 = vsel %vm447_vm0, %v411_v54, -inf  ;;  %v545_v29 = vsel %vm455_vm1, %v436_v15, -inf }
  0x4e   : > { %v731_v5 = vrot.slane %v729_v61, 5  ;;  %v756_v33 = vrot.slane %v754_v22, 4  ;;  %v759_v34 = vrot.slane %v757_v23, 5  ;;  %v367_v41 = vunpack.c.l.bf16 %v271_v31  ;;  %v273_v31 = vld [vmem:[%s2957_s26 + $0x48] sm:$0xf] }
  0x4f   : > { %905 = vrot.lane.b32.xlu1 %v3114_v17, %s2892_s29  ;;  %v3180_v45 = vsel %vm3044_vm7, %v719_v24, %v723_v25  ;;  %v538_v24 = vsel %vm447_vm0, %v435_v9, -inf  ;;  %v881_v25 = vrot.slane %v628_v2, 5  ;;  %v391_v44 = vunpack.c.l.bf16 %v295_v35 }
  0x50   : > { %801 = vrot.lane.b32.xlu2 %v3097_v0, %s2894_s6  ;;  %v732_v13 = vor.u32 %v731_v5, %v728_v4  ;;  %v760_v48 = vor.u32 %v759_v34, %v756_v33  ;;  %v368_v14 = vunpack.c.l.bf16 %v272_v3  ;;  %v369_v33 = vunpack.c.l.bf16 %v273_v31 }
  0x51   : > { %v562_v60 = vsel %vm447_vm0, %v391_v44, -inf  ;;  %vm1215_vm3 = vcmask 290048   ;;  %vm1285_vm4 = vcmask 293888  }
  0x52   : > { %v733_v27 = vrot.slane %v732_v13, 4  ;;  %v761_v61 = vrot.slane %v760_v48, 4  ;;  %v575_v48 = vsel %vm447_vm0, %v369_v33, -inf }
  0x53   : > { %903 = vrot.lane.b32.xlu0 %v3017_v19, %s2892_s29  ;;  %v2699_v19 = vrot.slane %v3123_v26, 9 }
  0x54   : > { %v3224_v39 = vsel %vm3044_vm7, %v733_v27, %v737_v28 }
  0x55   : > { %v3173_v37 = vsel %vm3008_vm6, %v2699_v19, %v877_v16  ;;  %v535_v19 = vmax.f32 %v533_v55, %v534_v56  ;;  %v543_v16 = vsel %vm455_vm1, %v412_v62, -inf  ;;  %v415_v55 = vunpack.c.l.bf16 %v319_v43  ;;  %v321_v43 = vld [vmem:[%s2957_s26 + $0x108] sm:$0xf] }
  0x56   : > { %v561_v56 = vsel %vm447_vm0, %v367_v41, -inf  ;;  %v417_v44 = vunpack.c.l.bf16 %v321_v43 }
  0x57   : > { %1000 = vrot.lane.b32.xlu1 %v3097_v0, %s2895_s7  ;;  %v318_v0 = vld [vmem:[%s2957_s26 + $0xfc] sm:$0x1]  ;;  %v537_v18 = vmax.f32 %v535_v19, %v536_v10  ;;  %v296_v19 = vld [vmem:[%s2957_s26 + $0xa4] sm:$0x1]  ;;  %v563_v4 = vmax.f32 %v561_v56, %v562_v60  ;;  %v564_v9 = vsel %vm447_vm0, %v415_v55, -inf }
  0x58   : > { %945 = vrot.lane.b32.xlu2 %v3080_v40, %s2893_s30  ;;  %v414_v38 = vunpack.c.l.bf16 %v318_v0  ;;  %v544_v0 = vmax.f32 %v542_v12, %v543_v16  ;;  %v392_v15 = vunpack.c.l.bf16 %v296_v19  ;;  %v320_v16 = vld [vmem:[%s2957_s26 + $0x104] sm:$0x1] }
  0x59   : > { %v539_v30 = vmax.f32 %v537_v18, %v538_v24  ;;  %v416_v23 = vunpack.c.l.bf16 %v320_v16  ;;  %v568_v24 = vsel %vm455_vm1, %v368_v14, -inf }
  0x5a   : > { %v557_v58 = vsel %vm455_vm1, %v414_v38, -inf  ;;  %v546_v38 = vmax.f32 %v544_v0, %v545_v29  ;;  %v344_v0 = vld [vmem:[%s2957_s26 + $0x164] sm:$0x1] }
  0x5b   : > { %947 = vrot.lane.b32.xlu0 %v3123_v26, %s2893_s30  ;;  %v558_v7 = vmax.f32 %v556_v50, %v557_v58  ;;  %v3226_v42 = vpack.c.bf16 %v539_v30, %v539_v30  ;;  %v440_v46 = vunpack.c.l.bf16 %v344_v0  ;;  %v571_v29 = vsel %vm455_vm1, %v416_v23, -inf  ;;  %v322_v23 = vld [vmem:[%s2957_s26 + $0x10c] sm:$0x1] }
  0x5c   : > { %v630_v51 = vpack.c.bf16 %v546_v38, %v546_v38  ;;  %v418_v0 = vunpack.c.l.bf16 %v322_v23  ;;  %v324_v23 = vld [vmem:[%s2957_s26 + $0x114] sm:$0x1] }
  0x5d   : > { %v560_v21 = vmax.f32 %v558_v7, %v559_v11  ;;  %v740_v52 = vshrl.u32 %v3226_v42, 16  ;;  %v743_v54 = vshll.u32 %v3226_v42, 16  ;;  %v439_v7 = vunpack.c.l.bf16 %v343_v63  ;;  %648 = vst.msk [vmem:[#allocation2 + $0x18] sm:$0xf] %vm641_vm8, %v3226_v42 }
  0x5e   : > { %v749_v59 = vshll.u32 %v630_v51, 16  ;;  %v2702_v11 = vrot.slane %v3200_v8, 9  ;;  %v2701_v18 = vrot.slane %v3226_v42, 9  ;;  %v573_v30 = vsel %vm455_vm1, %v440_v46, -inf  ;;  %v346_v46 = vld [vmem:[%s2957_s26 + $0x16c] sm:$0x1] }
  0x5f   : > { %1048 = vrot.lane.b32.xlu1 %v3173_v37, %s2891_s28  ;;  %v632_v32 = vpack.c.bf16 %v560_v21, %v560_v21  ;;  %v742_v57 = vrot.slane %v740_v52, 4  ;;  %v745_v58 = vrot.slane %v743_v54, 5  ;;  %v885_v21 = vrot.slane %v630_v51, 5  ;;  %v345_v52 = vld [vmem:[%s2957_s26 + $0x168] sm:$0xf] }
  0x60   : > { %1002 = vrot.lane.b32.xlu2 %v3180_v45, %s2895_s7  ;;  %v751_v2 = vrot.slane %v749_v59, 5  ;;  %v441_v55 = vunpack.c.l.bf16 %v345_v52  ;;  %v578_v59 = vsel %vm447_vm0, %v417_v44, -inf  ;;  %v442_v31 = vunpack.c.l.bf16 %v346_v46 }
  0x61   : > { %v763_v50 = vshll.u32 %v632_v32, 16  ;;  %v746_v1 = vor.u32 %v745_v58, %v742_v57  ;;  %v889_v12 = vrot.slane %v632_v32, 5  ;;  %v3280_v20 = vsel %vm3008_vm6, %v2701_v18, %v885_v21  ;;  %v297_v32 = vld [vmem:[%s2957_s26 + $0xa8] sm:$0xf] }
  0x62   : > { %v393_v34 = vunpack.c.l.bf16 %v297_v32  ;;  %v585_v32 = vsel %vm455_vm1, %v418_v0, -inf }
  0x63   : > { %1046 = vrot.lane.b32.xlu0 %v3114_v17, %s2891_s28  ;;  %v2700_v17 = vrot.slane %v3182_v47, 9  ;;  %v765_v62 = vrot.slane %v763_v50, 5  ;;  %v747_v5 = vrot.slane %v746_v1, 4  ;;  %v3265_v22 = vsel %vm3008_vm6, %v2702_v11, %v889_v12  ;;  %v1240_v11 = vld [vmem:[%s4028_s1 + $0x10] sm:$0x3] }
  0x64   : > { %v576_v50 = vsel %vm447_vm0, %v393_v34, -inf  ;;  %v1279_v12 = vunpack.c.l.b16 %v1240_v11  ;;  %v2808_v34 = vld [vmem:[%s4028_s1] sm:$0xff] }
  0x65   : > { %v3220_v36 = vsel %vm3008_vm6, %v2700_v17, %v881_v25  ;;  %v3247_v10 = vsel %vm3044_vm7, %v761_v61, %v765_v62  ;;  %v3252_v13 = vsel %vm3044_vm7, %v747_v5, %v751_v2  ;;  %v565_v17 = vmax.f32 %v563_v4, %v564_v9  ;;  %v298_v9 = vld [vmem:[%s2957_s26 + $0xac] sm:$0x1] }
  0x66   : > { %v569_v25 = vsel %vm455_vm1, %v392_v15, -inf  ;;  %v577_v54 = vmax.f32 %v575_v48, %v576_v50  ;;  %v580_v61 = vsel %vm447_vm0, %v441_v55, -inf  ;;  %v1282_v18 = vpack.c.b16 %v1279_v12, %v1279_v12  ;;  %v347_v12 = vld [vmem:[%s2957_s26 + $0x170] sm:$0xf] }
  0x67   : > { %1143 = vrot.lane.b32.xlu1 %v3180_v45, %s2896_s8  ;;  %v570_v28 = vmax.f32 %v568_v24, %v569_v25 }
  0x68   : > { %1088 = vrot.lane.b32.xlu2 %v3123_v26, %s2890_s27  ;;  %v579_v60 = vmax.f32 %v577_v54, %v578_v59 }
  0x69   : > { %v572_v26 = vmax.f32 %v570_v28, %v571_v29  ;;  %v2809_v29 = vld [vmem:[%s4028_s1 + $0x8] sm:$0xff] }
  0x6a   : > { %v581_v63 = vmax.f32 %v579_v60, %v580_v61 }
  0x6b   : > { %1090 = vrot.lane.b32.xlu0 %v3182_v47, %s2890_s27  ;;  %v574_v35 = vmax.f32 %v572_v26, %v573_v30 }
  0x6c   : > { %v3324_v2 = vpack.c.bf16 %v581_v63, %v581_v63 }
  0x6d   : > { %v634_v56 = vpack.c.bf16 %v574_v35, %v574_v35 }
  0x6e   : > { %651 = vst.msk [vmem:[#allocation2 + $0x24] sm:$0xf] %vm641_vm8, %v3324_v2  ;;  %v782_v44 = vshrl.u32 %v3324_v2, 16  ;;  %v785_v48 = vshll.u32 %v3324_v2, 16 }
  0x6f   : > { %1191 = vrot.lane.b32.xlu1 %v3220_v36, %s2897_s9  ;;  %v777_v1 = vshll.u32 %v634_v56, 16  ;;  %v893_v16 = vrot.slane %v634_v56, 5 }
  0x70   : > { %1145 = vrot.lane.b32.xlu2 %v3224_v39, %s2896_s8  ;;  %v787_v52 = vrot.slane %v785_v48, 5 }
  0x71   : > { %v779_v5 = vrot.slane %v777_v1, 5 }
  0x73   : > { %1189 = vrot.lane.b32.xlu0 %v3173_v37, %s2897_s9 }
  0x77   : > { %803 = vrot.lane.b32.xlu1 %v3180_v45, %s2894_s6  ;;  %v566_v45 = vsel %vm447_vm0, %v439_v7, -inf  ;;  %v274_v7 = vld [vmem:[%s2957_s26 + $0x4c] sm:$0x1] }
  0x78   : > { %807 = vrot.lane.b32.xlu2 %v3252_v13, %s2894_s6  ;;  %v567_v27 = vmax.f32 %v565_v17, %v566_v45  ;;  %v370_v17 = vunpack.c.l.bf16 %v274_v7  ;;  %v394_v45 = vunpack.c.l.bf16 %v298_v9 }
  0x7a   : > { %v3287_v53 = vpack.c.bf16 %v567_v27, %v567_v27  ;;  %v582_v27 = vsel %vm455_vm1, %v370_v17, -inf  ;;  %v583_v28 = vsel %vm455_vm1, %v394_v45, -inf }
  0x7b   : > { %809 = vrot.lane.b32.xlu0 %v3247_v10, %s2894_s6  ;;  %v584_v30 = vmax.f32 %v582_v27, %v583_v28  ;;  %v420_v28 = vunpack.c.l.bf16 %v324_v23 }
  0x7c   : > { %650 = vst.msk [vmem:[#allocation2 + $0x20] sm:$0xf] %vm641_vm8, %v3287_v53  ;;  %v768_v38 = vshrl.u32 %v3287_v53, 16  ;;  %v771_v41 = vshll.u32 %v3287_v53, 16  ;;  %v2703_v15 = vrot.slane %v3287_v53, 9 }
  0x7d   : > { %v586_v35 = vmax.f32 %v584_v30, %v585_v32  ;;  %vm1382_vm8 = vsmask.f32 7938 }
  0x7e   : > { %v770_v57 = vrot.slane %v768_v38, 4  ;;  %v773_v58 = vrot.slane %v771_v41, 5  ;;  %v3355_v24 = vsel %vm3008_vm6, %v2703_v15, %v893_v16  ;;  %v587_v38 = vsel %vm455_vm1, %v442_v31, -inf  ;;  %v300_v15 = vld [vmem:[%s2957_s26 + $0xb4] sm:$0x1] }
  0x7f   : > { %913 = vrot.lane.b32.xlu1 %v3265_v22, %s2892_s29  ;;  %v588_v43 = vmax.f32 %v586_v35, %v587_v38 }
  0x80   : > { %805 = vrot.lane.b32.xlu2 %v3224_v39, %s2894_s6 }
  0x82   : > { %v3289_v40 = vpop.permute.xlu2 %941 }
  0x83   : > { %911 = vrot.lane.b32.xlu0 %v3280_v20, %s2892_s29 }
  0x87   : > { %953 = vrot.lane.b32.xlu1 %v3200_v8, %s2893_s30 }
  0x88   : > { %907 = vrot.lane.b32.xlu2 %v3173_v37, %s2892_s29  ;;  %v774_v37 = vor.u32 %v773_v58, %v770_v57 }
  0x8a   : > { %v3311_v51 = vpop.permute.xlu2 %943  ;;  %v775_v4 = vrot.slane %v774_v37, 4  ;;  %v299_v37 = vld [vmem:[%s2957_s26 + $0xb0] sm:$0xf] }
  0x8b   : > { %909 = vrot.lane.b32.xlu0 %v3220_v36, %s2892_s29 }
  0x8f   : > { %v3320_v62 = vpop.permute.xlu1 %1084  ;;  %951 = vrot.lane.b32.xlu1 %v3226_v42, %s2893_s30 }
  0x90   : > { %955 = vrot.lane.b32.xlu2 %v3287_v53, %s2893_s30 }
  0x92   : > { %v3326_v3 = vpop.permute.xlu2 %1042 }
  0x93   : > { %949 = vrot.lane.b32.xlu0 %v3182_v47, %s2893_s30  ;;  %v3332_v19 = vpop.permute.xlu0 %1044  ;;  %v3345_v47 = vsel %vm3044_vm7, %v775_v4, %v779_v5  ;;  %v395_v4 = vunpack.c.l.bf16 %v299_v37  ;;  %v323_v5 = vld [vmem:[%s2957_s26 + $0x110] sm:$0xf]  ;;  %v350_v37 = vld [vmem:[%s2957_s26 + $0x17c] sm:$0x1] }
  0x94   : > { %v419_v7 = vunpack.c.l.bf16 %v323_v5 }
  0x95   : > { %v590_v11 = vsel %vm447_vm0, %v395_v4, -inf }
  0x97   : > { %1004 = vrot.lane.b32.xlu1 %v3224_v39, %s2895_s7  ;;  %v1303_v39 = vsel %vm1301_vm9, %v1282_v18, 0  ;;  %v396_v18 = vunpack.c.l.bf16 %v300_v15 }
  0x98   : > { %v900_v14 = vpop.permute.xlu1 %899  ;;  %1008 = vrot.lane.b32.xlu2 %v3247_v10, %s2895_s7  ;;  %1310 = vmatpush.bf16.msra.mxu0 %v1303_v39 }
  0x99   : > { %2818 = vmatpush.bf16.msra.mxu2 %v1303_v39  ;;  %v443_v39 = vunpack.c.l.bf16 %v347_v12  ;;  %v597_v46 = vsel %vm455_vm1, %v396_v18, -inf  ;;  %v349_v12 = vld [vmem:[%s2957_s26 + $0x178] sm:$0xf] }
  0x9a   : > { %v1087_v21 = vpop.permute.xlu2 %1086 }
  0x9b   : > { %1010 = vrot.lane.b32.xlu0 %v3345_v47, %s2895_s7  ;;  %v594_v30 = vsel %vm447_vm0, %v443_v39, -inf }
  0x9c   : > { %1311 = vmatpush.bf16.msra.mxu0 %v2809_v29 }
  0x9d   : > { %v796_v25 = vpop.permute.xlu0 %795  ;;  %2819 = vmatpush.bf16.msra.mxu2 %v2809_v29 }
  0x9e   : > { %826 = vst.msk [vmem:[#allocation2] sm:$0xf] %vm825_vm10, %v796_v25  ;;  %v592_v25 = vsel %vm447_vm0, %v419_v7, -inf }
  0x9f   : > { %930 = vst.msk [vmem:[#allocation2] sm:$0xf] %vm929_vm11, %v900_v14  ;;  %1056 = vrot.lane.b32.xlu1 %v3355_v24, %s2891_s28  ;;  %v276_v14 = vld [vmem:[%s2957_s26 + $0x54] sm:$0x1] }
  0xa0   : > { %v902_v26 = vpop.permute.xlu1 %901  ;;  %972 = vst.msk [vmem:[#allocation2] sm:$0xf] %vm971_vm12, %v3289_v40  ;;  %1006 = vrot.lane.b32.xlu2 %v3252_v13, %s2895_s7  ;;  %1312 = vmatpush.bf16.msra.mxu0 %v2808_v34  ;;  %v372_v45 = vunpack.c.l.bf16 %v276_v14 }
  0xa1   : > { %2820 = vmatpush.bf16.msra.mxu2 %v2808_v34  ;;  %v599_v34 = vsel %vm455_vm1, %v420_v28, -inf }
  0xa2   : > { %v1186_v33 = vpop.permute.xlu2 %1185 }
  0xa3   : > { %1054 = vrot.lane.b32.xlu0 %v3265_v22, %s2891_s28 }
  0xa5   : > { %v798_v40 = vpop.permute.xlu0 %797 }
  0xa6   : > { %827 = vst.msk [vmem:[#allocation2 + $0x4] sm:$0xf] %vm825_vm10, %v798_v40 }
  0xa7   : > { %931 = vst.msk [vmem:[#allocation2 + $0x4] sm:$0xf] %vm929_vm11, %v902_v26  ;;  %1096 = vrot.lane.b32.xlu1 %v3287_v53, %s2890_s27  ;;  %v636_v53 = vpack.c.bf16 %v588_v43, %v588_v43  ;;  %v348_v26 = vld [vmem:[%s2957_s26 + $0x174] sm:$0x1]  ;;  %v277_v43 = vld [vmem:[%s2957_s26 + $0x58] sm:$0xf] }
  0xa8   : > { %v999_v41 = vpop.permute.xlu1 %998  ;;  %973 = vst.msk [vmem:[#allocation2 + $0x4] sm:$0xf] %vm971_vm12, %v3311_v51  ;;  %1050 = vrot.lane.b32.xlu2 %v3220_v36, %s2891_s28  ;;  %v784_v51 = vrot.slane %v782_v44, 4 }
  0xa9   : > { %1028 = vst.msk [vmem:[#allocation2 + $0x4] sm:$0xf] %vm1026_vm13, %v999_v41  ;;  %v791_v55 = vshll.u32 %v636_v53, 16  ;;  %v897_v61 = vrot.slane %v636_v53, 5  ;;  %v278_v53 = vld [vmem:[%s2957_s26 + $0x5c] sm:$0x1] }
  0xaa   : > { %1074 = vst.msk [vmem:[#allocation2 + $0x4] sm:$0xf] %vm1072_vm14, %v3332_v19  ;;  %v802_v50 = vpop.permute.xlu2 %801  ;;  %v788_v36 = vor.u32 %v787_v52, %v784_v51  ;;  %v302_v51 = vld [vmem:[%s2957_s26 + $0xbc] sm:$0x1] }
  0xab   : > { %1052 = vrot.lane.b32.xlu0 %v3280_v20, %s2891_s28  ;;  %1116 = vst.msk [vmem:[#allocation2 + $0x4] sm:$0xf] %vm1114_vm15, %v1087_v21 }
  0xac   : > { %829 = vst.msk [vmem:[#allocation2 + $0xc] sm:$0xf] %vm825_vm10, %v802_v50  ;;  %v789_v58 = vrot.slane %v788_v36, 4  ;;  %v398_v36 = vunpack.c.l.bf16 %v302_v51 }
  0xad   : > { %v997_v54 = vpop.permute.xlu0 %996 }
  0xae   : > { %1027 = vst.msk [vmem:[#allocation2] sm:$0xf] %vm1026_vm13, %v997_v54  ;;  %v374_v54 = vunpack.c.l.bf16 %v278_v53 }
  0xaf   : > { %1073 = vst.msk [vmem:[#allocation2] sm:$0xf] %vm1072_vm14, %v3326_v3  ;;  %1094 = vrot.lane.b32.xlu1 %v3200_v8, %s2890_s27  ;;  %v793_v8 = vrot.slane %v791_v55, 5  ;;  %v326_v55 = vld [vmem:[%s2957_s26 + $0x11c] sm:$0x1] }
  0xb0   : > { %1115 = vst.msk [vmem:[#allocation2] sm:$0xf] %vm1114_vm15, %v3320_v62  ;;  %1098 = vrot.lane.b32.xlu2 %v3324_v2, %s2890_s27 }
  0xb1   : > { %v1142_v56 = vpop.permute.xlu1 %1141  ;;  %v3413_v60 = vsel %vm3044_vm7, %v789_v58, %v793_v8 }
  0xb2   : > { %v946_v57 = vpop.permute.xlu2 %945  ;;  %1171 = vst.msk [vmem:[#allocation2 + $0x4] sm:$0xf] %vm1169_vm2, %v1142_v56 }
  0xb3   : > { %1092 = vrot.lane.b32.xlu0 %v3226_v42, %s2890_s27  ;;  %v2704_v42 = vrot.slane %v3324_v2, 9 }
  0xb5   : > { %v1140_v59 = vpop.permute.xlu0 %1139  ;;  %v3425_v3 = vsel %vm3008_vm6, %v2704_v42, %v897_v61 }
  0xb6   : > { %1170 = vst.msk [vmem:[#allocation2] sm:$0xf] %vm1169_vm2, %v1140_v59 }
  0xb7   : > { %1216 = vst.msk [vmem:[#allocation2] sm:$0xf] %vm1215_vm3, %v1186_v33  ;;  %1147 = vrot.lane.b32.xlu1 %v3252_v13, %s2896_s8  ;;  %v275_v13 = vld [vmem:[%s2957_s26 + $0x50] sm:$0xf]  ;;  %v444_v33 = vunpack.c.l.bf16 %v348_v26 }
  0xb8   : > { %1151 = vrot.lane.b32.xlu2 %v3345_v47, %s2896_s8  ;;  %v371_v19 = vunpack.c.l.bf16 %v275_v13  ;;  %v610_v13 = vsel %vm455_vm1, %v374_v54, -inf }
  0xb9   : > { %v800_v62 = vpop.permute.xlu1 %799  ;;  %v601_v41 = vsel %vm455_vm1, %v444_v33, -inf }
  0xba   : > { %v1003_v63 = vpop.permute.xlu2 %1002  ;;  %828 = vst.msk [vmem:[#allocation2 + $0x8] sm:$0xf] %vm825_vm10, %v800_v62  ;;  %v589_v9 = vsel %vm447_vm0, %v371_v19, -inf  ;;  %v325_v62 = vld [vmem:[%s2957_s26 + $0x118] sm:$0xf] }
  0xbb   : > { %1153 = vrot.lane.b32.xlu0 %v3413_v60, %s2896_s8  ;;  %v591_v21 = vmax.f32 %v589_v9, %v590_v11  ;;  %v421_v19 = vunpack.c.l.bf16 %v325_v62 }
  0xbd   : > { %v1188_v1 = vpop.permute.xlu0 %1187  ;;  %v593_v29 = vmax.f32 %v591_v21, %v592_v25  ;;  %v606_v18 = vsel %vm447_vm0, %v421_v19, -inf }
  0xbe   : > { %1217 = vst.msk [vmem:[#allocation2 + $0x4] sm:$0xf] %vm1215_vm3, %v1188_v1 }
  0xbf   : > { %1199 = vrot.lane.b32.xlu1 %v3425_v3, %s2897_s9 }
  0xc0   : > { %1149 = vrot.lane.b32.xlu2 %v3247_v10, %s2896_s8  ;;  %v596_v10 = vsel %vm455_vm1, %v372_v45, -inf  ;;  %v445_v45 = vunpack.c.l.bf16 %v349_v12  ;;  %v1352_v12 = vld [vmem:[#allocation3] sm:$0x1] }
  0xc1   : > { %v906_v16 = vpop.permute.xlu1 %905  ;;  %v598_v31 = vmax.f32 %v596_v10, %v597_v46 }
  0xc2   : > { %v3436_v17 = vpop.permute.xlu2 %1088  ;;  %933 = vst.msk [vmem:[#allocation2 + $0xc] sm:$0xf] %vm929_vm11, %v906_v16  ;;  %v446_v16 = vunpack.c.l.bf16 %v350_v37  ;;  %v608_v10 = vsel %vm447_vm0, %v445_v45, -inf }
  0xc3   : > { %1197 = vrot.lane.b32.xlu0 %v3355_v24, %s2897_s9  ;;  %v600_v38 = vmax.f32 %v598_v31, %v599_v34 }
  0xc5   : > { %v904_v0 = vpop.permute.xlu0 %903  ;;  %v2803_v27 = vld [vmem:[#allocation2] sm:$0xff]  ;;  %v602_v44 = vmax.f32 %v600_v38, %v601_v41 }
  0xc6   : > { %932 = vst.msk [vmem:[#allocation2 + $0x8] sm:$0xf] %vm929_vm11, %v904_v0  ;;  %2735 = vmatmul.msk.bf16.vlgmr.msra.gmra.mxu0 %vm1285_vm4, %v2803_v27  ;;  %v615_v27 = vsel %vm455_vm1, %v446_v16, -inf }
  0xc7   : > { %974 = vst.msk [vmem:[#allocation2 + $0x8] sm:$0xf] %vm971_vm12, %v946_v57  ;;  %811 = vrot.lane.b32.xlu1 %v3345_v47, %s2894_s6  ;;  %v595_v47 = vmax.f32 %v593_v29, %v594_v30  ;;  %v373_v57 = vunpack.c.l.bf16 %v277_v43  ;;  %v638_v59 = vpack.c.bf16 %v602_v44, %v602_v44 }
  0xc8   : > { %1193 = vrot.lane.b32.xlu2 %v3280_v20, %s2897_s9 }
  0xc9   : > { %v1001_v32 = vpop.permute.xlu1 %1000  ;;  %v3465_v20 = vpack.c.bf16 %v595_v47, %v595_v47  ;;  %v603_v4 = vsel %vm447_vm0, %v373_v57, -inf  ;;  %v1040_v7 = vrot.slane %v638_v59, 5  ;;  %v992_v11 = vshll.u32 %v638_v59, 16 }
  0xca   : > { %1029 = vst.msk [vmem:[#allocation2 + $0x8] sm:$0xf] %vm1026_vm13, %v1001_v32  ;;  %v3460_v35 = vpop.permute.xlu2 %1145 }
  0xcb   : > { %1195 = vrot.lane.b32.xlu0 %v3265_v22, %s2897_s9  ;;  %v301_v22 = vld [vmem:[%s2957_s26 + $0xb8] sm:$0xf]  ;;  %v983_v48 = vshrl.u32 %v3465_v20, 16  ;;  %v986_v50 = vshll.u32 %v3465_v20, 16  ;;  %v2705_v1 = vrot.slane %v3465_v20, 9  ;;  %v994_v0 = vrot.slane %v992_v11, 5 }
  0xcc   : > { %v397_v58 = vunpack.c.l.bf16 %v301_v22 }
  0xcd   : > { %v948_v40 = vpop.permute.xlu0 %947  ;;  %v985_v42 = vrot.slane %v983_v48, 4  ;;  %v988_v61 = vrot.slane %v986_v50, 5  ;;  %v1041_v39 = vsel %vm3008_vm6, %v2705_v1, %v1040_v7 }
  0xce   : > { %975 = vst.msk [vmem:[#allocation2 + $0xc] sm:$0xf] %vm971_vm12, %v948_v40  ;;  %v604_v5 = vsel %vm447_vm0, %v397_v58, -inf  ;;  %vm1349_vm0 = vcmask 57344  }
  0xcf   : > { %1030 = vst.msk [vmem:[#allocation2 + $0xc] sm:$0xf] %vm1026_vm13, %v1003_v63  ;;  %917 = vrot.lane.b32.xlu1 %v3425_v3, %s2892_s29  ;;  %v422_v63 = vunpack.c.l.bf16 %v326_v55  ;;  %v989_v9 = vor.u32 %v988_v61, %v985_v42  ;;  %vm3563_vm9 = vmand %vm1349_vm0, %vm1382_vm8 }
  0xd0   : > { %813 = vrot.lane.b32.xlu2 %v3413_v60, %s2894_s6 }
  0xd1   : > { %v1049_v52 = vpop.permute.xlu1 %1048  ;;  %v990_v25 = vrot.slane %v989_v9, 4 }
  0xd2   : > { %1076 = vst.msk [vmem:[#allocation2 + $0xc] sm:$0xf] %vm1072_vm14, %v1049_v52  ;;  %v808_v56 = vpop.permute.xlu2 %807 }
  0xd3   : > { %915 = vrot.lane.b32.xlu0 %v3355_v24, %s2892_s29  ;;  %832 = vst.msk [vmem:[#allocation2 + $0x18] sm:$0xf] %vm825_vm10, %v808_v56  ;;  %v611_v24 = vsel %vm455_vm1, %v398_v36, -inf  ;;  %v995_v46 = vsel %vm3044_vm7, %v990_v25, %v994_v0 }
  0xd4   : > { %v612_v14 = vmax.f32 %v610_v13, %v611_v24 }
  0xd5   : > { %v1047_v8 = vpop.permute.xlu0 %1046 }
  0xd6   : > { %1075 = vst.msk [vmem:[#allocation2 + $0x8] sm:$0xf] %vm1072_vm14, %v1047_v8 }
  0xd7   : > { %1117 = vst.msk [vmem:[#allocation2 + $0x8] sm:$0xf] %vm1114_vm15, %v3436_v17  ;;  %1012 = vrot.lane.b32.xlu1 %v3413_v60, %s2895_s7  ;;  %v613_v17 = vsel %vm455_vm1, %v422_v63, -inf  ;;  %v605_v60 = vmax.f32 %v603_v4, %v604_v5  ;;  %vm1350_vm1 = vsmask.f32 256 }
  0xd8   : > { %957 = vrot.lane.b32.xlu2 %v3324_v2, %s2893_s30  ;;  %v614_v2 = vmax.f32 %v612_v14, %v613_v17  ;;  %vm3555_vm5 = vmand %vm1349_vm0, %vm1350_vm1  ;;  %v1384_v14 = vld [vmem:[#allocation3 + $0x4] sm:$0x1]  ;;  %vm2610_vm1 = vcmask 64512  }
  0xd9   : > { %v1144_v15 = vpop.permute.xlu1 %1143  ;;  %v607_v28 = vmax.f32 %v605_v60, %v606_v18  ;;  %v1385_v17 = vsel %vm3563_vm9, 0, %v1384_v14 }
  0xda   : > { %1172 = vst.msk [vmem:[#allocation2 + $0x8] sm:$0xf] %vm1169_vm2, %v1144_v15  ;;  %v806_v21 = vpop.permute.xlu2 %805  ;;  %v616_v29 = vmax.f32 %v614_v2, %v615_v27  ;;  %v1353_v15 = vsel %vm3555_vm5, 0, %v1352_v12 }
  0xdb   : > { %959 = vrot.lane.b32.xlu0 %v3465_v20, %s2893_s30  ;;  %831 = vst.msk [vmem:[#allocation2 + $0x14] sm:$0xf] %vm825_vm10, %v806_v21  ;;  %v609_v30 = vmax.f32 %v607_v28, %v608_v10  ;;  %v1355_v21 = vld [vmem:[#allocation3 + $0x8] sm:$0x1] }
  0xdc   : > { %v640_v33 = vpack.c.bf16 %v616_v29, %v616_v29  ;;  %1354 = vst [vmem:[#allocation3] sm:$0x1] %v1353_v15 }
  0xdd   : > { %v1091_v23 = vpop.permute.xlu0 %1090  ;;  %v639_v34 = vpack.c.bf16 %v609_v30, %v609_v30  ;;  %1386 = vst [vmem:[#allocation3 + $0x4] sm:$0x1] %v1385_v17  ;;  %v1393_v17 = vld [vmem:[#allocation3 + $0x1c] sm:$0x1] }
  0xde   : > { %1118 = vst.msk [vmem:[#allocation2 + $0xc] sm:$0xf] %vm1114_vm15, %v1091_v23  ;;  %v1135_v51 = vshll.u32 %v640_v33, 16  ;;  %v1356_v23 = vsel %vm3555_vm5, 0, %v1355_v21 }
  0xdf   : > { %1173 = vst.msk [vmem:[#allocation2 + $0xc] sm:$0xf] %vm1169_vm2, %v3460_v35  ;;  %1060 = vrot.lane.b32.xlu1 %v1041_v39, %s2891_s28  ;;  %v2706_v47 = vrot.slane %v639_v34, 9  ;;  %v1183_v35 = vrot.slane %v640_v33, 5  ;;  %v1126_v22 = vshrl.u32 %v639_v34, 16  ;;  %v1129_v44 = vshll.u32 %v639_v34, 16 }
  0xe0   : > { %1014 = vrot.lane.b32.xlu2 %v995_v46, %s2895_s7  ;;  %v1137_v36 = vrot.slane %v1135_v51, 5  ;;  %1357 = vst [vmem:[#allocation3 + $0x8] sm:$0x1] %v1356_v23 }
  0xe1   : > { %v1192_v26 = vpop.permute.xlu1 %1191  ;;  %v1184_v43 = vsel %vm3008_vm6, %v2706_v47, %v1183_v35  ;;  %v1131_v48 = vrot.slane %v1129_v44, 5 }
  0xe2   : > { %1219 = vst.msk [vmem:[#allocation2 + $0xc] sm:$0xf] %vm1215_vm3, %v1192_v26  ;;  %v908_v31 = vpop.permute.xlu2 %907  ;;  %v3585_v26 = vld [vmem:[%s4029_s2] ss:$0 sm:$0xff] }
  0xe3   : > { %1058 = vrot.lane.b32.xlu0 %v3425_v3, %s2891_s28 }
  0xe5   : > { %v1190_v32 = vpop.permute.xlu0 %1189 }
  0xe6   : > { %1218 = vst.msk [vmem:[#allocation2 + $0x8] sm:$0xf] %vm1215_vm3, %v1190_v32 }
  0xe7   : > { %1155 = vrot.lane.b32.xlu1 %v995_v46, %s2896_s8 }
  0xe8   : > { %1100 = vrot.lane.b32.xlu2 %v3465_v20, %s2890_s27  ;;  %v1128_v20 = vrot.slane %v1126_v22, 4 }
  0xe9   : > { %v804_v40 = vpop.permute.xlu1 %803 }
  0xea   : > { %830 = vst.msk [vmem:[#allocation2 + $0x10] sm:$0xf] %vm825_vm10, %v804_v40  ;;  %v956_v3 = vpop.permute.xlu2 %955  ;;  %v1132_v53 = vor.u32 %v1131_v48, %v1128_v20 }
  0xeb   : > { %1102 = vrot.lane.b32.xlu0 %v639_v34, %s2890_s27  ;;  %934 = vst.msk [vmem:[#allocation2 + $0x10] sm:$0xf] %vm929_vm11, %v908_v31 }
  0xec   : > { %v1133_v54 = vrot.slane %v1132_v53, 4  ;;  %v1529_v53 = vld [vmem:[#allocation3 + $0x4] sm:$0x1] }
  0xed   : > { %v810_v38 = vpop.permute.xlu0 %809  ;;  %v2804_v41 = vld [vmem:[#allocation2 + $0x8] sm:$0xff] }
  0xee   : > { %833 = vst.msk [vmem:[#allocation2 + $0x1c] sm:$0xf] %vm825_vm10, %v810_v38  ;;  %2736 = vmatmul.msk.bf16.gmra.mxu0 %vm1285_vm4, %v2804_v41  ;;  %v1138_v56 = vsel %vm3044_vm7, %v1133_v54, %v1137_v36  ;;  %v1358_v36 = vld [vmem:[#allocation3 + $0x10] sm:$0x1] }
  0xef   : > { %1203 = vrot.lane.b32.xlu1 %v1184_v43, %s2897_s9 }
  0xf0   : > { %1157 = vrot.lane.b32.xlu2 %v1138_v56, %s2896_s8 }
  0xf1   : > { %v914_v50 = vpop.permute.xlu1 %913 }
  0xf2   : > { %937 = vst.msk [vmem:[#allocation2 + $0x1c] sm:$0xf] %vm929_vm11, %v914_v50  ;;  %v1009_v52 = vpop.permute.xlu2 %1008  ;;  %v1526_v50 = vld [vmem:[#allocation3] sm:$0xf] }
  0xf3   : > { %1201 = vrot.lane.b32.xlu0 %v1041_v39, %s2897_s9  ;;  %979 = vst.msk [vmem:[#allocation2 + $0x1c] sm:$0xf] %vm971_vm12, %v956_v3  ;;  %v1387_v39 = vld [vmem:[#allocation3 + $0xc] sm:$0x1] }
  0xf4   : > { %v1388_v0 = vsel %vm3563_vm9, 0, %v1387_v39 }
  0xf5   : > { %v912_v55 = vpop.permute.xlu0 %911  ;;  %1389 = vst [vmem:[#allocation3 + $0xc] sm:$0x1] %v1388_v0 }
  0xf6   : > { %936 = vst.msk [vmem:[#allocation2 + $0x18] sm:$0xf] %vm929_vm11, %v912_v55  ;;  %v1359_v55 = vsel %vm3555_vm5, 0, %v1358_v36 }
  0xf7   : > { %1360 = vst [vmem:[#allocation3 + $0x10] sm:$0x1] %v1359_v55  ;;  %v1370_v55 = vld [vmem:[#allocation3 + $0x30] sm:$0x1] }
  0xf9   : > { %v954_v57 = vpop.permute.xlu1 %953 }
  0xfa   : > { %978 = vst.msk [vmem:[#allocation2 + $0x18] sm:$0xf] %vm971_vm12, %v954_v57  ;;  %v1007_v58 = vpop.permute.xlu2 %1006 }
  0xfb   : > { %1033 = vst.msk [vmem:[#allocation2 + $0x18] sm:$0xf] %vm1026_vm13, %v1009_v52 }
  0xfd   : > { %v910_v8 = vpop.permute.xlu0 %909 }
  0xfe   : > { %935 = vst.msk [vmem:[#allocation2 + $0x14] sm:$0xf] %vm929_vm11, %v910_v8 }
 0x101   : > { %v952_v59 = vpop.permute.xlu1 %951 }
 0x102   : > { %977 = vst.msk [vmem:[#allocation2 + $0x14] sm:$0xf] %vm971_vm12, %v952_v59  ;;  %v1051_v42 = vpop.permute.xlu2 %1050 }
 0x103   : > { %1032 = vst.msk [vmem:[#allocation2 + $0x14] sm:$0xf] %vm1026_vm13, %v1007_v58 }
 0x105   : > { %v950_v61 = vpop.permute.xlu0 %949 }
 0x106   : > { %976 = vst.msk [vmem:[#allocation2 + $0x10] sm:$0xf] %vm971_vm12, %v950_v61  ;;  %v1390_v61 = vld [vmem:[#allocation3 + $0x14] sm:$0x1] }
 0x109   : > { %v1005_v62 = vpop.permute.xlu1 %1004 }
 0x10a   : > { %1031 = vst.msk [vmem:[#allocation2 + $0x10] sm:$0xf] %vm1026_vm13, %v1005_v62  ;;  %v1099_v13 = vpop.permute.xlu2 %1098  ;;  %v2898_v62 = vmov 0  }
 0x10b   : > { %1077 = vst.msk [vmem:[#allocation2 + $0x10] sm:$0xf] %vm1072_vm14, %v1051_v42 }
 0x10d   : > { %v1011_v63 = vpop.permute.xlu0 %1010 }
 0x10e   : > { %1034 = vst.msk [vmem:[#allocation2 + $0x1c] sm:$0xf] %vm1026_vm13, %v1011_v63 }
 0x111   : > { %v1057_v24 = vpop.permute.xlu1 %1056 }
 0x112   : > { %1080 = vst.msk [vmem:[#allocation2 + $0x1c] sm:$0xf] %vm1072_vm14, %v1057_v24  ;;  %v1152_v1 = vpop.permute.xlu2 %1151  ;;  %v1532_v24 = vld [vmem:[#allocation3 + $0x8] sm:$0xf] }
 0x113   : > { %1122 = vst.msk [vmem:[#allocation2 + $0x1c] sm:$0xf] %vm1114_vm15, %v1099_v13 }
 0x115   : > { %v1055_v37 = vpop.permute.xlu0 %1054 }
 0x116   : > { %1079 = vst.msk [vmem:[#allocation2 + $0x18] sm:$0xf] %vm1072_vm14, %v1055_v37 }
 0x119   : > { %v1097_v19 = vpop.permute.xlu1 %1096 }
 0x11a   : > { %1121 = vst.msk [vmem:[#allocation2 + $0x18] sm:$0xf] %vm1114_vm15, %v1097_v19  ;;  %v1150_v5 = vpop.permute.xlu2 %1149  ;;  %v1391_v19 = vsel %vm3563_vm9, 0, %v1390_v61  ;;  %v1405_v61 = vld [vmem:[#allocation3 + $0x3c] sm:$0x1] }
 0x11b   : > { %1176 = vst.msk [vmem:[#allocation2 + $0x18] sm:$0xf] %vm1169_vm2, %v1152_v1  ;;  %v1535_v1 = vld [vmem:[#allocation3 + $0xc] sm:$0x1] }
 0x11c   : > { %1392 = vst [vmem:[#allocation3 + $0x14] sm:$0x1] %v1391_v19  ;;  %v1364_v19 = vld [vmem:[#allocation3 + $0x20] sm:$0x1] }
 0x11d   : > { %v1053_v4 = vpop.permute.xlu0 %1052 }
 0x11e   : > { %1078 = vst.msk [vmem:[#allocation2 + $0x14] sm:$0xf] %vm1072_vm14, %v1053_v4 }
 0x121   : > { %v1095_v7 = vpop.permute.xlu1 %1094 }
 0x122   : > { %1120 = vst.msk [vmem:[#allocation2 + $0x14] sm:$0xf] %vm1114_vm15, %v1095_v7  ;;  %v1194_v60 = vpop.permute.xlu2 %1193  ;;  %v1361_v7 = vld [vmem:[#allocation3 + $0x18] sm:$0x1] }
 0x123   : > { %1175 = vst.msk [vmem:[#allocation2 + $0x14] sm:$0xf] %vm1169_vm2, %v1150_v5  ;;  %v1362_v15 = vsel %vm3555_vm5, 0, %v1361_v7  ;;  %v1365_v7 = vsel %vm3555_vm5, 0, %v1364_v19 }
 0x124   : > { %1363 = vst [vmem:[#allocation3 + $0x18] sm:$0x1] %v1362_v15 }
 0x125   : > { %v1093_v9 = vpop.permute.xlu0 %1092  ;;  %1366 = vst [vmem:[#allocation3 + $0x20] sm:$0x1] %v1365_v7 }
 0x126   : > { %1119 = vst.msk [vmem:[#allocation2 + $0x10] sm:$0xf] %vm1114_vm15, %v1093_v9 }
 0x129   : > { %v1148_v45 = vpop.permute.xlu1 %1147 }
 0x12a   : > { %1174 = vst.msk [vmem:[#allocation2 + $0x10] sm:$0xf] %vm1169_vm2, %v1148_v45  ;;  %v814_v2 = vpop.permute.xlu2 %813 }
 0x12b   : > { %1220 = vst.msk [vmem:[#allocation2 + $0x10] sm:$0xf] %vm1215_vm3, %v1194_v60 }
 0x12c   : > { %835 = vst.msk [vmem:[#allocation2 + $0x24] sm:$0xf] %vm825_vm10, %v814_v2 }
 0x12d   : > { %v1154_v18 = vpop.permute.xlu0 %1153 }
 0x12e   : > { %1177 = vst.msk [vmem:[#allocation2 + $0x1c] sm:$0xf] %vm1169_vm2, %v1154_v18  ;;  %v1394_v18 = vsel %vm3563_vm9, 0, %v1393_v17 }
 0x12f   : > { %1395 = vst [vmem:[#allocation3 + $0x1c] sm:$0x1] %v1394_v18 }
 0x131   : > { %v1200_v25 = vpop.permute.xlu1 %1199 }
 0x132   : > { %1223 = vst.msk [vmem:[#allocation2 + $0x1c] sm:$0xf] %vm1215_vm3, %v1200_v25  ;;  %v958_v29 = vpop.permute.xlu2 %957 }
 0x135   : > { %v1198_v27 = vpop.permute.xlu0 %1197 }
 0x136   : > { %1222 = vst.msk [vmem:[#allocation2 + $0x18] sm:$0xf] %vm1215_vm3, %v1198_v27 }
 0x139   : > { %v812_v28 = vpop.permute.xlu1 %811 }
 0x13a   : > { %834 = vst.msk [vmem:[#allocation2 + $0x20] sm:$0xf] %vm825_vm10, %v812_v28  ;;  %v1015_v35 = vpop.permute.xlu2 %1014  ;;  %vm1524_vm10 = vcmask 60416  }
 0x13d   : > { %v2806_v10 = vld [vmem:[#allocation2 + $0x18] sm:$0xff]  ;;  %v1196_v46 = vpop.permute.xlu0 %1195 }
 0x13e   : > { %1221 = vst.msk [vmem:[#allocation2 + $0x14] sm:$0xf] %vm1215_vm3, %v1196_v46  ;;  %2738 = vmatmul.msk.bf16.vlgmr.msra.gmra.mxu2 %vm1285_vm4, %v2806_v10 }
 0x141   : > { %v918_v30 = vpop.permute.xlu1 %917 }
 0x142   : > { %939 = vst.msk [vmem:[#allocation2 + $0x24] sm:$0xf] %vm929_vm11, %v918_v30  ;;  %v1101_v59 = vpop.permute.xlu2 %1100 }
 0x143   : > { %v1314_v31 = vpop.f32.mrf.mxu0 }
 0x144   : > { %v1315_v32 = vadd.f32 %v3585_v26, %v1314_v31 }
 0x145   : > { %v916_v33 = vpop.permute.xlu0 %915  ;;  %v2805_v34 = vld [vmem:[#allocation2 + $0x10] sm:$0xff] }
 0x146   : > { %938 = vst.msk [vmem:[#allocation2 + $0x20] sm:$0xf] %vm929_vm11, %v916_v33  ;;  %v1339_v47 = vmax.f32 %v1315_v32, 0.0  ;;  %2737 = vmatmul.msk.bf16.gmra.mxu0 %vm1285_vm4, %v2805_v34  ;;  %vm3596_vm11 = vmand %vm1524_vm10, %vm1382_vm8  ;;  %v1538_v32 = vld [vmem:[#allocation3 + $0x10] sm:$0xf] }
 0x147   : > { %980 = vst.msk [vmem:[#allocation2 + $0x20] sm:$0xf] %vm971_vm12, %v958_v29  ;;  %v1541_v33 = vld [vmem:[#allocation3 + $0x14] sm:$0x1] }
 0x148   : > { %v1414_v40 = vpack.c.bf16 %v1339_v47, %v1339_v47 }
 0x149   : > { %v1013_v3 = vpop.permute.xlu1 %1012 }
 0x14a   : > { %v1425_v38 = vshrl.u32 %v1414_v40, 16  ;;  %1035 = vst.msk [vmem:[#allocation2 + $0x20] sm:$0xf] %vm1026_vm13, %v1013_v3  ;;  %v1428_v22 = vshll.u32 %v1414_v40, 16  ;;  %v1158_v60 = vpop.permute.xlu2 %1157 }
 0x14b   : > { %v1316_v41 = vpop.f32.mrf.mxu0 }
 0x14c   : > { %v1427_v43 = vrot.slane %v1425_v38, 7  ;;  %v1317_v44 = vadd.f32 %v3585_v26, %v1316_v41 }
 0x14d   : > { %v960_v20 = vpop.permute.xlu0 %959 }
 0x14e   : > { %981 = vst.msk [vmem:[#allocation2 + $0x24] sm:$0xf] %vm971_vm12, %v960_v20  ;;  %v1430_v51 = vor.u32 %v1428_v22, %v1427_v43  ;;  %v1431_v52 = vrot.slane %v1427_v43, 4  ;;  %v1340_v54 = vmax.f32 %v1317_v44, 0.0  ;;  %v1544_v44 = vld [vmem:[#allocation3 + $0x18] sm:$0xf] }
 0x14f   : > { %1036 = vst.msk [vmem:[#allocation2 + $0x24] sm:$0xf] %vm1026_vm13, %v1015_v35  ;;  %v1547_v20 = vld [vmem:[#allocation3 + $0x1c] sm:$0x1]  ;;  %vm1766_vm12 = vcmask 126016   ;;  %vm1863_vm13 = vcmask 191616  }
 0x150   : > { %v1527_v56 = vsel %vm3596_vm11, %v1430_v51, %v1526_v50  ;;  %v1530_v57 = vsel %vm3555_vm5, %v1431_v52, %v1529_v53  ;;  %v1415_v58 = vpack.c.bf16 %v1340_v54, %v1340_v54 }
 0x151   : > { %1528 = vst [vmem:[#allocation3] sm:$0xf] %v1527_v56  ;;  %v1061_v8 = vpop.permute.xlu1 %1060  ;;  %v1402_v56 = vld [vmem:[#allocation3 + $0x34] sm:$0x1] }
 0x152   : > { %1531 = vst [vmem:[#allocation3 + $0x4] sm:$0x1] %v1530_v57  ;;  %v1433_v42 = vshrl.u32 %v1415_v58, 16  ;;  %v1436_v13 = vshll.u32 %v1415_v58, 16  ;;  %v1371_v57 = vsel %vm3555_vm5, 0, %v1370_v55  ;;  %v1403_v58 = vsel %vm3563_vm9, 0, %v1402_v56 }
 0x153   : > { %1591 = vst.msk [vmem:[#allocation3] sm:$0xf] %vm1524_vm10, %v2898_v62 }
 0x154   : > { %1593 = vst.msk [vmem:[#allocation3 + $0x4] sm:$0x1] %vm1349_vm0, %v2898_v62  ;;  %v1435_v63 = vrot.slane %v1433_v42, 7  ;;  %v1373_v42 = vld [vmem:[#allocation3 + $0x38] sm:$0x1] }
 0x155   : > { %v1059_v37 = vpop.permute.xlu0 %1058  ;;  %1082 = vst.msk [vmem:[#allocation2 + $0x24] sm:$0xf] %vm1072_vm14, %v1061_v8 }
 0x156   : > { %v1438_v4 = vor.u32 %v1436_v13, %v1435_v63  ;;  %v1439_v5 = vrot.slane %v1435_v63, 4  ;;  %1081 = vst.msk [vmem:[#allocation2 + $0x20] sm:$0xf] %vm1072_vm14, %v1059_v37  ;;  %v1374_v63 = vsel %vm3555_vm5, 0, %v1373_v42  ;;  %v1406_v13 = vsel %vm3563_vm9, 0, %v1405_v61 }
 0x157   : > { %1123 = vst.msk [vmem:[#allocation2 + $0x20] sm:$0xf] %vm1114_vm15, %v1101_v59  ;;  %vm1913_vm14 = vcmask 257216  }
 0x158   : > { %v1533_v9 = vsel %vm3596_vm11, %v1438_v4, %v1532_v24  ;;  %v1536_v12 = vsel %vm3555_vm5, %v1439_v5, %v1535_v1  ;;  %1372 = vst [vmem:[#allocation3 + $0x30] sm:$0x1] %v1371_v57  ;;  %v1396_v4 = vld [vmem:[#allocation3 + $0x24] sm:$0x1]  ;;  %v1367_v5 = vld [vmem:[#allocation3 + $0x28] sm:$0x1] }
 0x159   : > { %1534 = vst [vmem:[#allocation3 + $0x8] sm:$0xf] %v1533_v9  ;;  %v1156_v14 = vpop.permute.xlu1 %1155  ;;  %v1397_v9 = vsel %vm3563_vm9, 0, %v1396_v4 }
 0x15a   : > { %1537 = vst [vmem:[#allocation3 + $0xc] sm:$0x1] %v1536_v12  ;;  %v1775_v8 = vld [vmem:[#allocation3] sm:$0xe]  ;;  %v1368_v12 = vsel %vm3555_vm5, 0, %v1367_v5 }
 0x15b   : > { %1178 = vst.msk [vmem:[#allocation2 + $0x20] sm:$0xf] %vm1169_vm2, %v1156_v14  ;;  %v1776_v59 = vld [vmem:[#allocation3 + $0x4] sm:$0x1]  ;;  %v2740_v24 = vrot.slane %v1775_v8, 9 }
 0x15c   : > { %1404 = vst [vmem:[#allocation3 + $0x34] sm:$0x1] %v1403_v58  ;;  %v1809_v37 = vrot.slane %v1776_v59, 5  ;;  %v1399_v14 = vld [vmem:[#allocation3 + $0x2c] sm:$0x1] }
 0x15d   : > { %v1103_v45 = vpop.permute.xlu0 %1102  ;;  %1375 = vst [vmem:[#allocation3 + $0x38] sm:$0x1] %v1374_v63  ;;  %v1400_v15 = vsel %vm3563_vm9, 0, %v1399_v14  ;;  %v1614_v56 = vld [vmem:[#allocation3] sm:$0xf] }
 0x15e   : > { %1124 = vst.msk [vmem:[#allocation2 + $0x24] sm:$0xf] %vm1114_vm15, %v1103_v45  ;;  %v1810_v1 = vsel %vm3008_vm6, %v2740_v24, %v1809_v37  ;;  %v1631_v37 = vshrl.u32 %v1614_v56, 16  ;;  %vm2074_vm15 = vcmask 322816  }
 0x15f   : > { %1179 = vst.msk [vmem:[#allocation2 + $0x24] sm:$0xf] %vm1169_vm2, %v1158_v60  ;;  %1839 = vrot.lane.b32.xlu0 %v1810_v1, %s2895_s7  ;;  %vm2171_vm2 = vcmask 388416  }
 0x160   : > { %v1598_v39 = vld [vmem:[#allocation3 + $0x8] sm:$0xf]  ;;  %1407 = vst [vmem:[#allocation3 + $0x3c] sm:$0x1] %v1406_v13 }
 0x161   : > { %v1204_v21 = vpop.permute.xlu1 %1203  ;;  %1607 = vst.msk [vmem:[#allocation4 + $0x4] sm:$0xf] %vm1524_vm10, %v1598_v39 }
 0x162   : > { %1225 = vst.msk [vmem:[#allocation2 + $0x24] sm:$0xf] %vm1215_vm3, %v1204_v21 }
 0x163   : > { %1398 = vst [vmem:[#allocation3 + $0x24] sm:$0x1] %v1397_v9 }
 0x164   : > { %1369 = vst [vmem:[#allocation3 + $0x28] sm:$0x1] %v1368_v12  ;;  %v1568_v57 = vld [vmem:[#allocation3 + $0x38] sm:$0xf] }
 0x165   : > { %v1202_v23 = vpop.permute.xlu0 %1201  ;;  %1401 = vst [vmem:[#allocation3 + $0x2c] sm:$0x1] %v1400_v15 }
 0x166   : > { %1224 = vst.msk [vmem:[#allocation2 + $0x20] sm:$0xf] %vm1215_vm3, %v1202_v23  ;;  %vm2221_vm3 = vcmask 454016  }
 0x167   : > { %v1571_v58 = vld [vmem:[#allocation3 + $0x3c] sm:$0x1] }
 0x16b   : > { %v1319_v25 = vpop.f32.mrf.mxu0  ;;  %v1556_v13 = vld [vmem:[#allocation3 + $0x28] sm:$0xf] }
 0x16c   : > { %v1320_v0 = vadd.f32 %v3585_v26, %v1319_v25  ;;  %v1559_v24 = vld [vmem:[#allocation3 + $0x2c] sm:$0x1] }
 0x16d   : > { %v2807_v2 = vld [vmem:[#allocation2 + $0x20] sm:$0xff] }
 0x16e   : > { %v1341_v27 = vmax.f32 %v1320_v0, 0.0  ;;  %2739 = vmatmul.msk.bf16.gmra.mxu2 %vm1285_vm4, %v2807_v2  ;;  %vm2479_vm4 = vcmask 585216  }
 0x170   : > { %v1416_v28 = vpack.c.bf16 %v1341_v27, %v1341_v27 }
 0x172   : > { %v1441_v10 = vshrl.u32 %v1416_v28, 16  ;;  %v1444_v30 = vshll.u32 %v1416_v28, 16 }
 0x173   : > { %v1321_v46 = vpop.f32.mrf.mxu0 }
 0x174   : > { %v1443_v29 = vrot.slane %v1441_v10, 7  ;;  %v1322_v31 = vadd.f32 %v3585_v26, %v1321_v46 }
 0x176   : > { %v1446_v34 = vor.u32 %v1444_v30, %v1443_v29  ;;  %v1447_v47 = vrot.slane %v1443_v29, 4  ;;  %v1342_v35 = vmax.f32 %v1322_v31, 0.0  ;;  %v1562_v30 = vld [vmem:[#allocation3 + $0x30] sm:$0xf]  ;;  %v1565_v31 = vld [vmem:[#allocation3 + $0x34] sm:$0x1] }
 0x178   : > { %v1539_v40 = vsel %vm3596_vm11, %v1446_v34, %v1538_v32  ;;  %v1542_v3 = vsel %vm3555_vm5, %v1447_v47, %v1541_v33  ;;  %v1417_v38 = vpack.c.bf16 %v1342_v35, %v1342_v35 }
 0x179   : > { %1540 = vst [vmem:[#allocation3 + $0x10] sm:$0xf] %v1539_v40  ;;  %v1550_v40 = vld [vmem:[#allocation3 + $0x20] sm:$0xf] }
 0x17a   : > { %1543 = vst [vmem:[#allocation3 + $0x14] sm:$0x1] %v1542_v3  ;;  %v1449_v41 = vshrl.u32 %v1417_v38, 16  ;;  %v1452_v22 = vshll.u32 %v1417_v38, 16 }
 0x17c   : > { %v1451_v43 = vrot.slane %v1449_v41, 7 }
 0x17e   : > { %v1454_v50 = vor.u32 %v1452_v22, %v1451_v43  ;;  %v1455_v53 = vrot.slane %v1451_v43, 4 }
 0x180   : > { %v1545_v51 = vsel %vm3596_vm11, %v1454_v50, %v1544_v44  ;;  %v1548_v52 = vsel %vm3555_vm5, %v1455_v53, %v1547_v20  ;;  %v1599_v54 = vld [vmem:[#allocation3 + $0x10] sm:$0xf]  ;;  %v1553_v44 = vld [vmem:[#allocation3 + $0x24] sm:$0x1] }
 0x181   : > { %1546 = vst [vmem:[#allocation3 + $0x18] sm:$0xf] %v1545_v51 }
 0x182   : > { %1549 = vst [vmem:[#allocation3 + $0x1c] sm:$0x1] %v1548_v52 }
 0x183   : > { %1608 = vst.msk [vmem:[#allocation4 + $0x8] sm:$0xf] %vm1524_vm10, %v1599_v54 }
 0x188   : > { %v1600_v36 = vld [vmem:[#allocation3 + $0x18] sm:$0xf] }
 0x189   : > { %1609 = vst.msk [vmem:[#allocation4 + $0xc] sm:$0xf] %vm1524_vm10, %v1600_v36 }
 0x1c1   : > { %v1329_v17 = vpop.f32.mrf.mxu2 }
 0x1c2   : > { %v1330_v60 = vadd.f32 %v3585_v26, %v1329_v17 }
 0x1c3   : > { %v1324_v45 = vpop.f32.mrf.mxu0 }
 0x1c4   : > { %v1345_v18 = vmax.f32 %v1330_v60, 0.0  ;;  %v1325_v21 = vadd.f32 %v3585_v26, %v1324_v45  ;;  %v1634_v45 = vshll.u32 %v1614_v56, 16  ;;  %v1376_v56 = vld [vmem:[#allocation3 + $0x40] sm:$0x1] }
 0x1c6   : > { %v1420_v23 = vpack.c.bf16 %v1345_v18, %v1345_v18  ;;  %v1343_v39 = vmax.f32 %v1325_v21, 0.0 }
 0x1c8   : > { %v1473_v25 = vshrl.u32 %v1420_v23, 16  ;;  %v1418_v0 = vpack.c.bf16 %v1343_v39, %v1343_v39  ;;  %v1476_v2 = vshll.u32 %v1420_v23, 16  ;;  %v1616_v39 = vld [vmem:[#allocation3 + $0x8] sm:$0xf] }
 0x1c9   : > { %v1331_v27 = vpop.f32.mrf.mxu2 }
 0x1ca   : > { %v1475_v28 = vrot.slane %v1473_v25, 7  ;;  %v1332_v10 = vadd.f32 %v3585_v26, %v1331_v27  ;;  %v1457_v46 = vshrl.u32 %v1418_v0, 16  ;;  %v1460_v29 = vshll.u32 %v1418_v0, 16 }
 0x1cb   : > { %v1326_v32 = vpop.f32.mrf.mxu0 }
 0x1cc   : > { %v1478_v33 = vor.u32 %v1476_v2, %v1475_v28  ;;  %v1479_v34 = vrot.slane %v1475_v28, 4  ;;  %v1346_v47 = vmax.f32 %v1332_v10, 0.0  ;;  %v1459_v35 = vrot.slane %v1457_v46, 7  ;;  %v1777_v28 = vld [vmem:[#allocation3 + $0x8] sm:$0xe] }
 0x1cd   : > { %v1327_v3 = vadd.f32 %v3585_v26, %v1326_v32  ;;  %v1778_v46 = vld [vmem:[#allocation3 + $0xc] sm:$0x1]  ;;  %v1615_v32 = vld [vmem:[#allocation3 + $0x4] sm:$0x1] }
 0x1ce   : > { %v1563_v38 = vsel %vm3596_vm11, %v1478_v33, %v1562_v30  ;;  %v1566_v41 = vsel %vm3555_vm5, %v1479_v34, %v1565_v31  ;;  %v1421_v43 = vpack.c.bf16 %v1346_v47, %v1346_v47  ;;  %v1462_v22 = vor.u32 %v1460_v29, %v1459_v35 }
 0x1cf   : > { %1564 = vst [vmem:[#allocation3 + $0x30] sm:$0xf] %v1563_v38  ;;  %v1463_v20 = vrot.slane %v1459_v35, 4  ;;  %v1344_v50 = vmax.f32 %v1327_v3, 0.0  ;;  %v1633_v33 = vrot.slane %v1631_v37, 4  ;;  %v1636_v34 = vrot.slane %v1634_v45, 5 }
 0x1d0   : > { %1567 = vst [vmem:[#allocation3 + $0x34] sm:$0x1] %v1566_v41  ;;  %v1481_v53 = vshrl.u32 %v1421_v43, 16  ;;  %v1551_v51 = vsel %vm3596_vm11, %v1462_v22, %v1550_v40  ;;  %v1484_v55 = vshll.u32 %v1421_v43, 16  ;;  %v1645_v40 = vshrl.u32 %v1616_v39, 16 }
 0x1d1   : > { %1552 = vst [vmem:[#allocation3 + $0x20] sm:$0xf] %v1551_v51  ;;  %v1554_v52 = vsel %vm3555_vm5, %v1463_v20, %v1553_v44  ;;  %v1419_v54 = vpack.c.bf16 %v1344_v50, %v1344_v50  ;;  %v1648_v3 = vshll.u32 %v1616_v39, 16  ;;  %v1873_v38 = vld [vmem:[#allocation3 + $0x8] sm:$0xf]  ;;  %v2741_v20 = vrot.slane %v1777_v28, 9 }
 0x1d2   : > { %v1483_v36 = vrot.slane %v1481_v53, 7  ;;  %1555 = vst [vmem:[#allocation3 + $0x24] sm:$0x1] %v1554_v52  ;;  %v1640_v50 = vshll.u32 %v1615_v32, 16  ;;  %v1813_v53 = vrot.slane %v1778_v46, 5 }
 0x1d3   : > { %v1465_v8 = vshrl.u32 %v1419_v54, 16  ;;  %v1468_v59 = vshll.u32 %v1419_v54, 16  ;;  %v1637_v54 = vor.u32 %v1636_v34, %v1633_v33  ;;  %v1379_v37 = vld [vmem:[#allocation3 + $0x48] sm:$0x1]  ;;  %v2083_v45 = vld [vmem:[#allocation3 + $0x8] sm:$0xe] }
 0x1d4   : > { %v1486_v42 = vor.u32 %v1484_v55, %v1483_v36  ;;  %v1487_v61 = vrot.slane %v1483_v36, 4  ;;  %v1647_v36 = vrot.slane %v1645_v40, 4  ;;  %v1650_v55 = vrot.slane %v1648_v3, 5 }
 0x1d5   : > { %v1467_v63 = vrot.slane %v1465_v8, 7 }
 0x1d6   : > { %v1569_v1 = vsel %vm3596_vm11, %v1486_v42, %v1568_v57  ;;  %v1572_v19 = vsel %vm3555_vm5, %v1487_v61, %v1571_v58  ;;  %v1878_v4 = vld [vmem:[#allocation3 + $0x30] sm:$0xf]  ;;  %v1408_v57 = vld [vmem:[#allocation3 + $0x44] sm:$0x1]  ;;  %v1642_v61 = vrot.slane %v1640_v50, 5 }
 0x1d7   : > { %v2185_v5 = vld [vmem:[#allocation3 + $0x30] sm:$0xf]  ;;  %1570 = vst [vmem:[#allocation3 + $0x38] sm:$0xf] %v1569_v1  ;;  %v1470_v9 = vor.u32 %v1468_v59, %v1467_v63  ;;  %v1471_v12 = vrot.slane %v1467_v63, 4  ;;  %1899 = vrot.lane.b32.xlu1 %v1878_v4, %s2890_s27  ;;  %v1377_v59 = vsel %vm3555_vm5, 0, %v1376_v56  ;;  %v1814_v1 = vsel %vm3008_vm6, %v2741_v20, %v1813_v53 }
 0x1d8   : > { %v2093_v7 = vld [vmem:[#allocation3 + $0x30] sm:$0xe]  ;;  %2205 = vrot.lane.b32.xlu0 %v2185_v5, %s2899_s22  ;;  %v2094_v14 = vld [vmem:[#allocation3 + $0x34] sm:$0x1]  ;;  %1573 = vst [vmem:[#allocation3 + $0x3c] sm:$0x1] %v1572_v19  ;;  %v1651_v4 = vor.u32 %v1650_v55, %v1647_v36 }
 0x1d9   : > { %v2753_v15 = vrot.slane %v2093_v7, 9  ;;  %v2137_v17 = vrot.slane %v2094_v14, 5  ;;  %v1787_v60 = vld [vmem:[#allocation3 + $0x30] sm:$0xe]  ;;  %v1557_v18 = vsel %vm3596_vm11, %v1470_v9, %v1556_v13  ;;  %v1560_v21 = vsel %vm3555_vm5, %v1471_v12, %v1559_v24  ;;  %v1788_v23 = vld [vmem:[#allocation3 + $0x34] sm:$0x1] }
 0x1da   : > { %1558 = vst [vmem:[#allocation3 + $0x28] sm:$0xf] %v1557_v18  ;;  %v2746_v0 = vrot.slane %v1787_v60, 9  ;;  %v1833_v2 = vrot.slane %v1788_v23, 5  ;;  %v2399_v27 = vld [vmem:[#allocation3 + $0x30] sm:$0xe] }
 0x1db   : > { %v2138_v25 = vsel %vm3008_vm6, %v2753_v15, %v2137_v17  ;;  %1561 = vst [vmem:[#allocation3 + $0x2c] sm:$0x1] %v1560_v21  ;;  %v2400_v10 = vld [vmem:[#allocation3 + $0x34] sm:$0x1]  ;;  %v1932_v29 = vld [vmem:[#allocation3 + $0x30] sm:$0xf] }
 0x1dc   : > { %2157 = vrot.lane.b32.xlu2 %v2138_v25, %s2900_s23  ;;  %v2009_v30 = vshrl.u32 %v1932_v29, 16  ;;  %v2012_v31 = vshll.u32 %v1932_v29, 16  ;;  %v2760_v47 = vrot.slane %v2399_v27, 9  ;;  %v1933_v35 = vld [vmem:[#allocation3 + $0x34] sm:$0x1]  ;;  %v1834_v41 = vsel %vm3008_vm6, %v2746_v0, %v1833_v2 }
 0x1dd   : > { %v2441_v43 = vrot.slane %v2400_v10, 5  ;;  %v2018_v52 = vshll.u32 %v1933_v35, 16  ;;  %v1409_v42 = vsel %vm3563_vm9, 0, %v1408_v57  ;;  %v2238_v63 = vld [vmem:[#allocation3 + $0x30] sm:$0xf]  ;;  %v1638_v24 = vrot.slane %v1637_v54, 4 }
 0x1de   : > { %v2011_v22 = vrot.slane %v2009_v30, 4  ;;  %v2014_v44 = vrot.slane %v2012_v31, 5  ;;  %1378 = vst [vmem:[#allocation3 + $0x40] sm:$0x1] %v1377_v59  ;;  %v1617_v19 = vld [vmem:[#allocation3 + $0xc] sm:$0x1] }
 0x1df   : > { %1889 = vrot.lane.b32.xlu1 %v1873_v38, %s2890_s27  ;;  %v2442_v58 = vsel %vm3008_vm6, %v2760_v47, %v2441_v43  ;;  %v2020_v13 = vrot.slane %v2018_v52, 5  ;;  %1410 = vst [vmem:[#allocation3 + $0x44] sm:$0x1] %v1409_v42  ;;  %v1380_v5 = vsel %vm3555_vm5, 0, %v1379_v37  ;;  %v1411_v7 = vld [vmem:[#allocation3 + $0x4c] sm:$0x1]  ;;  %v1643_v17 = vsel %vm3044_vm7, %v1638_v24, %v1642_v61 }
 0x1e0   : > { %1851 = vrot.lane.b32.xlu0 %v1834_v41, %s2895_s7  ;;  %v2015_v51 = vor.u32 %v2014_v44, %v2011_v22  ;;  %v2303_v12 = vshrl.u32 %v2238_v63, 16  ;;  %v2306_v14 = vshll.u32 %v2238_v63, 16  ;;  %1381 = vst [vmem:[#allocation3 + $0x48] sm:$0x1] %v1380_v5  ;;  %v1412_v15 = vsel %vm3563_vm9, 0, %v1411_v7 }
 0x1e1   : > { %1413 = vst [vmem:[#allocation3 + $0x4c] sm:$0x1] %v1412_v15  ;;  %v1654_v60 = vshll.u32 %v1617_v19, 16  ;;  %v2084_v18 = vld [vmem:[#allocation3 + $0xc] sm:$0x1]  ;;  %v1652_v21 = vrot.slane %v1651_v4, 4 }
 0x1e2   : > { %v2016_v8 = vrot.slane %v2015_v51, 4  ;;  %v2305_v23 = vrot.slane %v2303_v12, 4  ;;  %v2308_v39 = vrot.slane %v2306_v14, 5  ;;  %v1922_v25 = vld [vmem:[#allocation3 + $0x8] sm:$0xf]  ;;  %v2748_v2 = vrot.slane %v2083_v45, 9 }
 0x1e3   : > { %v1626_v0 = vld [vmem:[#allocation3 + $0x30] sm:$0xf]  ;;  %v1656_v16 = vrot.slane %v1654_v60, 5  ;;  %v2117_v27 = vrot.slane %v2084_v18, 5  ;;  %v2186_v28 = vld [vmem:[#allocation3 + $0x38] sm:$0xf] }
 0x1e4   : > { %2463 = vrot.lane.b32.xlu2 %v2442_v58, %s2901_s24  ;;  %v2021_v9 = vsel %vm3044_vm7, %v2016_v8, %v2020_v13  ;;  %v2239_v10 = vld [vmem:[#allocation3 + $0x34] sm:$0x1]  ;;  %v1939_v46 = vshrl.u32 %v1922_v25, 16  ;;  %v1942_v29 = vshll.u32 %v1922_v25, 16  ;;  %v2309_v31 = vor.u32 %v2308_v39, %v2305_v23  ;;  %v2401_v32 = vld [vmem:[#allocation3 + $0x38] sm:$0xe] }
 0x1e5   : > { %v1657_v30 = vsel %vm3044_vm7, %v1652_v21, %v1656_v16  ;;  %v2402_v33 = vld [vmem:[#allocation3 + $0x3c] sm:$0x1]  ;;  %v1715_v34 = vshrl.u32 %v1626_v0, 16  ;;  %v1718_v47 = vshll.u32 %v1626_v0, 16  ;;  %v2118_v35 = vsel %vm3008_vm6, %v2748_v2, %v2117_v27  ;;  %v1923_v54 = vld [vmem:[#allocation3 + $0xc] sm:$0x1] }
 0x1e6   : > { %v2312_v40 = vshll.u32 %v2239_v10, 16  ;;  %v2761_v3 = vrot.slane %v2401_v32, 9  ;;  %v2445_v38 = vrot.slane %v2402_v33, 5  ;;  %v1941_v43 = vrot.slane %v1939_v46, 4  ;;  %v1627_v36 = vld [vmem:[#allocation3 + $0x34] sm:$0x1] }
 0x1e7   : > { %1841 = vrot.lane.b32.xlu1 %v1814_v1, %s2895_s7  ;;  %v1944_v22 = vrot.slane %v1942_v29, 5  ;;  %v2310_v44 = vrot.slane %v2309_v31, 4  ;;  %v1717_v50 = vrot.slane %v1715_v34, 4  ;;  %v1720_v53 = vrot.slane %v1718_v47, 5  ;;  %v1879_v37 = vld [vmem:[#allocation3 + $0x38] sm:$0xf] }
 0x1e8   : > { %2060 = vrot.lane.b32.xlu0 %v2021_v9, %s2897_s9  ;;  %v2314_v51 = vrot.slane %v2312_v40, 5  ;;  %v2446_v57 = vsel %vm3008_vm6, %v2761_v3, %v2445_v38  ;;  %v1948_v59 = vshll.u32 %v1923_v54, 16  ;;  %v1724_v63 = vshll.u32 %v1627_v36, 16  ;;  %v1574_v5 = vld [vmem:[#allocation3 + $0x40] sm:$0xf] }
 0x1e9   : > { %v1945_v55 = vor.u32 %v1944_v22, %v1941_v43  ;;  %v1721_v8 = vor.u32 %v1720_v53, %v1717_v50  ;;  %v1577_v7 = vld [vmem:[#allocation3 + $0x44] sm:$0x1]  ;;  %v1603_v23 = vld [vmem:[#allocation3 + $0x30] sm:$0xf]  ;;  %v2095_v39 = vld [vmem:[#allocation3 + $0x38] sm:$0xe] }
 0x1ea   : > { %v2315_v56 = vsel %vm3044_vm7, %v2310_v44, %v2314_v51  ;;  %v1950_v9 = vrot.slane %v1948_v59, 5  ;;  %v1726_v15 = vrot.slane %v1724_v63, 5  ;;  %v2096_v25 = vld [vmem:[#allocation3 + $0x3c] sm:$0x1]  ;;  %v1874_v0 = vld [vmem:[#allocation3 + $0x10] sm:$0xf] }
 0x1eb   : > { %v1946_v13 = vrot.slane %v1945_v55, 4  ;;  %v1722_v19 = vrot.slane %v1721_v8, 4  ;;  %v2391_v27 = vld [vmem:[#allocation3 + $0x10] sm:$0xe]  ;;  %1612 = vst.msk [vmem:[#allocation4 + $0x18] sm:$0xf] %vm1524_vm10, %v1603_v23 }
 0x1ec   : > { %1742 = vrot.lane.b32.xlu2 %v1643_v17, %s2892_s29  ;;  %v2754_v46 = vrot.slane %v2095_v39, 9  ;;  %v2141_v29 = vrot.slane %v2096_v25, 5  ;;  %v1580_v31 = vld [vmem:[#allocation3 + $0x48] sm:$0xf]  ;;  %v1583_v32 = vld [vmem:[#allocation3 + $0x4c] sm:$0x1] }
 0x1ed   : > { %v1951_v60 = vsel %vm3044_vm7, %v1946_v13, %v1950_v9  ;;  %v2756_v47 = vrot.slane %v2391_v27, 9  ;;  %v2085_v40 = vld [vmem:[#allocation3 + $0x10] sm:$0xe]  ;;  %v2086_v3 = vld [vmem:[#allocation3 + $0x14] sm:$0x1] }
 0x1ee   : > { %v2181_v22 = vld [vmem:[#allocation3 + $0x10] sm:$0xf]  ;;  %v2142_v44 = vsel %vm3008_vm6, %v2754_v46, %v2141_v29  ;;  %v1789_v53 = vld [vmem:[#allocation3 + $0x38] sm:$0xe]  ;;  %v1790_v51 = vld [vmem:[#allocation3 + $0x3c] sm:$0x1] }
 0x1ef   : > { %2207 = vrot.lane.b32.xlu1 %v2186_v28, %s2899_s22  ;;  %v2392_v28 = vld [vmem:[#allocation3 + $0x14] sm:$0x1]  ;;  %v2121_v48 = vrot.slane %v2086_v3, 5  ;;  %v1924_v36 = vld [vmem:[#allocation3 + $0x10] sm:$0xf] }
 0x1f0   : > { %1744 = vrot.lane.b32.xlu0 %v1657_v30, %s2892_s29  ;;  %v1934_v30 = vld [vmem:[#allocation3 + $0x38] sm:$0xf]  ;;  %v1780_v54 = vld [vmem:[#allocation3 + $0x14] sm:$0x1]  ;;  %v2230_v55 = vld [vmem:[#allocation3 + $0x10] sm:$0xf] }
 0x1f1   : > { %v1334_v41 = vpop.f32.mrf.mxu2  ;;  %v2023_v38 = vshrl.u32 %v1934_v30, 16  ;;  %v2026_v50 = vshll.u32 %v1934_v30, 16  ;;  %v1953_v63 = vshrl.u32 %v1924_v36, 16  ;;  %v1956_v13 = vshll.u32 %v1924_v36, 16  ;;  %v1602_v9 = vld [vmem:[#allocation3 + $0x28] sm:$0xf] }
 0x1f2   : > { %v1335_v20 = vadd.f32 %v3585_v26, %v1334_v41  ;;  %1611 = vst.msk [vmem:[#allocation4 + $0x14] sm:$0xf] %vm1524_vm10, %v1602_v9  ;;  %v1925_v25 = vld [vmem:[#allocation3 + $0x14] sm:$0x1]  ;;  %v1628_v29 = vld [vmem:[#allocation3 + $0x38] sm:$0xf] }
 0x1f3   : > { %v2028_v8 = vrot.slane %v2026_v50, 5  ;;  %v1962_v46 = vshll.u32 %v1925_v25, 16  ;;  %v1618_v3 = vld [vmem:[#allocation3 + $0x10] sm:$0xf]  ;;  %v1782_v9 = vld [vmem:[#allocation3 + $0x1c] sm:$0x1] }
 0x1f4   : > { %2147 = vrot.lane.b32.xlu2 %v2118_v35, %s2900_s23  ;;  %v1347_v52 = vmax.f32 %v1335_v20, 0.0  ;;  %v2425_v35 = vrot.slane %v2392_v28, 5  ;;  %v1779_v20 = vld [vmem:[#allocation3 + $0x10] sm:$0xe]  ;;  %v1662_v50 = vshll.u32 %v1618_v3, 16 }
 0x1f5   : > { %v2742_v59 = vrot.slane %v1779_v20, 9  ;;  %v1659_v20 = vshrl.u32 %v1618_v3, 16 }
 0x1f6   : > { %v1422_v58 = vpack.c.bf16 %v1347_v52, %v1347_v52  ;;  %v2749_v52 = vrot.slane %v2085_v40, 9  ;;  %v2426_v11 = vsel %vm3008_vm6, %v2756_v47, %v2425_v35  ;;  %v1729_v35 = vshrl.u32 %v1628_v29, 16 }
 0x1f7   : > { %2366 = vrot.lane.b32.xlu1 %v2315_v56, %s2902_s25  ;;  %v2747_v56 = vrot.slane %v1789_v53, 9  ;;  %v1732_v40 = vshll.u32 %v1628_v29, 16 }
 0x1f8   : > { %2465 = vrot.lane.b32.xlu0 %v2446_v57, %s2901_s24  ;;  %v1489_v42 = vshrl.u32 %v1422_v58, 16  ;;  %v1492_v61 = vshll.u32 %v1422_v58, 16  ;;  %v1837_v57 = vrot.slane %v1790_v51, 5  ;;  %v2025_v58 = vrot.slane %v2023_v38, 4 }
 0x1f9   : > { %v1336_v24 = vpop.f32.mrf.mxu2  ;;  %v1964_v38 = vrot.slane %v1962_v46, 5 }
 0x1fa   : > { %v1491_v1 = vrot.slane %v1489_v42, 7  ;;  %v1337_v4 = vadd.f32 %v3585_v26, %v1336_v24  ;;  %v1727_v26 = vsel %vm3044_vm7, %v1722_v19, %v1726_v15  ;;  %v1604_v42 = vld [vmem:[#allocation3 + $0x38] sm:$0xf]  ;;  %v2247_v24 = vshrl.u32 %v2230_v55, 16 }
 0x1fb   : > { %1613 = vst.msk [vmem:[#allocation4 + $0x1c] sm:$0xf] %vm1524_vm10, %v1604_v42  ;;  %v1838_v19 = vsel %vm3008_vm6, %v2747_v56, %v1837_v57  ;;  %v1955_v15 = vrot.slane %v1953_v63, 4 }
 0x1fc   : > { %1901 = vrot.lane.b32.xlu2 %v1879_v37, %s2890_s27  ;;  %v1494_v12 = vor.u32 %v1492_v61, %v1491_v1  ;;  %v1495_v14 = vrot.slane %v1491_v1, 4  ;;  %v1348_v17 = vmax.f32 %v1337_v4, 0.0  ;;  %v1817_v61 = vrot.slane %v1780_v54, 5  ;;  %v1935_v37 = vld [vmem:[#allocation3 + $0x3c] sm:$0x1] }
 0x1fd   : > { %v1601_v1 = vld [vmem:[#allocation3 + $0x20] sm:$0xf]  ;;  %v2029_v4 = vor.u32 %v2028_v8, %v2025_v58  ;;  %v1734_v54 = vrot.slane %v1732_v40, 5  ;;  %v1629_v58 = vld [vmem:[#allocation3 + $0x3c] sm:$0x1]  ;;  %v1661_v8 = vrot.slane %v1659_v20, 4 }
 0x1fe   : > { %v1575_v45 = vsel %vm3596_vm11, %v1494_v12, %v1574_v5  ;;  %v1578_v18 = vsel %vm3555_vm5, %v1495_v14, %v1577_v7  ;;  %v1423_v21 = vpack.c.bf16 %v1348_v17, %v1348_v17  ;;  %v2250_v5 = vshll.u32 %v2230_v55, 16  ;;  %1610 = vst.msk [vmem:[#allocation4 + $0x10] sm:$0xf] %vm1524_vm10, %v1601_v1  ;;  %v2240_v7 = vld [vmem:[#allocation3 + $0x38] sm:$0xf] }
 0x1ff   : > { %1576 = vst [vmem:[#allocation3 + $0x40] sm:$0xf] %v1575_v45  ;;  %1754 = vrot.lane.b32.xlu1 %v1727_v26, %s2892_s29  ;;  %v2032_v12 = vshll.u32 %v1935_v37, 16  ;;  %v1818_v14 = vsel %vm3008_vm6, %v2742_v59, %v1817_v61  ;;  %v1958_v17 = vrot.slane %v1956_v13, 5  ;;  %v2030_v45 = vrot.slane %v2029_v4, 4 }
 0x200   : > { %2050 = vrot.lane.b32.xlu0 %v1951_v60, %s2897_s9  ;;  %1579 = vst [vmem:[#allocation3 + $0x44] sm:$0x1] %v1578_v18  ;;  %v1497_v16 = vshrl.u32 %v1423_v21, 16  ;;  %v1500_v2 = vshll.u32 %v1423_v21, 16  ;;  %v2249_v60 = vrot.slane %v2247_v24, 4  ;;  %v2252_v18 = vrot.slane %v2250_v5, 5 }
 0x201   : > { %v2317_v26 = vshrl.u32 %v2240_v7, 16  ;;  %v2320_v21 = vshll.u32 %v2240_v7, 16  ;;  %v2034_v23 = vrot.slane %v2032_v12, 5  ;;  %v1664_v59 = vrot.slane %v1662_v50, 5  ;;  %v1619_v37 = vld [vmem:[#allocation3 + $0x14] sm:$0x1] }
 0x202   : > { %v1499_v10 = vrot.slane %v1497_v16, 7  ;;  %v2231_v16 = vld [vmem:[#allocation3 + $0x14] sm:$0x1]  ;;  %v2253_v27 = vor.u32 %v2252_v18, %v2249_v60  ;;  %v1738_v24 = vshll.u32 %v1629_v58, 16  ;;  %v1668_v12 = vshll.u32 %v1619_v37, 16 }
 0x203   : > { %v2319_v28 = vrot.slane %v2317_v26, 4  ;;  %v1665_v1 = vor.u32 %v1664_v59, %v1661_v8  ;;  %v2232_v18 = vld [vmem:[#allocation3 + $0x18] sm:$0xf]  ;;  %v1621_v59 = vld [vmem:[#allocation3 + $0x1c] sm:$0x1] }
 0x204   : > { %1891 = vrot.lane.b32.xlu2 %v1874_v0, %s2890_s27  ;;  %v1502_v33 = vor.u32 %v1500_v2, %v1499_v10  ;;  %v1503_v34 = vrot.slane %v1499_v10, 4  ;;  %v1959_v0 = vor.u32 %v1958_v17, %v1955_v15  ;;  %v2035_v2 = vsel %vm3044_vm7, %v2030_v45, %v2034_v23 }
 0x205   : > { %v2322_v10 = vrot.slane %v2320_v21, 5  ;;  %v1740_v15 = vrot.slane %v1738_v24, 5  ;;  %v1666_v17 = vrot.slane %v1665_v1, 4  ;;  %v1821_v45 = vrot.slane %v1782_v9, 5 }
 0x206   : > { %v1581_v41 = vsel %vm3596_vm11, %v1502_v33, %v1580_v31  ;;  %v1584_v43 = vsel %vm3555_vm5, %v1503_v34, %v1583_v32  ;;  %v1880_v39 = vld [vmem:[#allocation3 + $0x40] sm:$0xf]  ;;  %v2256_v31 = vshll.u32 %v2231_v16, 16  ;;  %v1960_v32 = vrot.slane %v1959_v0, 4  ;;  %v2241_v33 = vld [vmem:[#allocation3 + $0x3c] sm:$0x1] }
 0x207   : > { %1582 = vst [vmem:[#allocation3 + $0x48] sm:$0xf] %v1581_v41  ;;  %2197 = vrot.lane.b32.xlu1 %v2181_v22, %s2899_s22  ;;  %v2187_v30 = vld [vmem:[#allocation3 + $0x40] sm:$0xf]  ;;  %v2254_v34 = vrot.slane %v2253_v27, 4  ;;  %v2323_v47 = vor.u32 %v2322_v10, %v2319_v28  ;;  %v2261_v0 = vshrl.u32 %v2232_v18, 16 }
 0x208   : > { %2159 = vrot.lane.b32.xlu0 %v2142_v44, %s2900_s23  ;;  %1585 = vst [vmem:[#allocation3 + $0x4c] sm:$0x1] %v1584_v43  ;;  %v2258_v41 = vrot.slane %v2256_v31, 5  ;;  %v2326_v43 = vshll.u32 %v2241_v33, 16  ;;  %v1965_v22 = vsel %vm3044_vm7, %v1960_v32, %v1964_v38  ;;  %v2393_v44 = vld [vmem:[#allocation3 + $0x18] sm:$0xe] }
 0x209   : > { %1595 = vst.msk [vmem:[#allocation3 + $0x48] sm:$0xf] %vm1524_vm10, %v2898_v62  ;;  %v2324_v51 = vrot.slane %v2323_v47, 4  ;;  %v2098_v36 = vld [vmem:[#allocation3 + $0x44] sm:$0x1]  ;;  %v2757_v56 = vrot.slane %v2393_v44, 9 }
 0x20a   : > { %1596 = vst.msk [vmem:[#allocation3 + $0x4c] sm:$0x1] %vm1349_vm0, %v2898_v62  ;;  %v2122_v62 = vsel %vm3008_vm6, %v2749_v52, %v2121_v48  ;;  %v2259_v53 = vsel %vm3044_vm7, %v2254_v34, %v2258_v41  ;;  %v2394_v52 = vld [vmem:[#allocation3 + $0x1c] sm:$0x1]  ;;  %v1731_v48 = vrot.slane %v1729_v35, 4  ;;  %v2328_v55 = vrot.slane %v2326_v43, 5 }
 0x20b   : > { %v2429_v57 = vrot.slane %v2394_v52, 5  ;;  %v2145_v63 = vrot.slane %v2098_v36, 5  ;;  %v2242_v25 = vld [vmem:[#allocation3 + $0x40] sm:$0xf]  ;;  %v2264_v28 = vshll.u32 %v2232_v18, 16  ;;  %v2263_v34 = vrot.slane %v2261_v0, 4  ;;  %v1840_v18 = vpop.permute.xlu0 %1839 }
 0x20c   : > { %2455 = vrot.lane.b32.xlu2 %v2426_v11, %s2901_s24  ;;  %v2097_v11 = vld [vmem:[#allocation3 + $0x40] sm:$0xe]  ;;  %v2329_v42 = vsel %vm3044_vm7, %v2324_v51, %v2328_v55  ;;  %v1735_v13 = vor.u32 %v1734_v54, %v1731_v48  ;;  %v1620_v10 = vld [vmem:[#allocation3 + $0x18] sm:$0xf]  ;;  %v2404_v46 = vld [vmem:[#allocation3 + $0x44] sm:$0x1] }
 0x20d   : > { %v2755_v61 = vrot.slane %v2097_v11, 9  ;;  %v2430_v5 = vsel %vm3008_vm6, %v2757_v56, %v2429_v57  ;;  %v2403_v27 = vld [vmem:[#allocation3 + $0x40] sm:$0xe]  ;;  %v2331_v31 = vshrl.u32 %v2242_v25, 16  ;;  %v2334_v32 = vshll.u32 %v2242_v25, 16 }
 0x20e   : > { %v1736_v7 = vrot.slane %v1735_v13, 4  ;;  %v1937_v33 = vld [vmem:[#allocation3 + $0x44] sm:$0x1]  ;;  %v1673_v47 = vshrl.u32 %v1620_v10, 16  ;;  %v2762_v35 = vrot.slane %v2403_v27, 9  ;;  %v2449_v40 = vrot.slane %v2404_v46, 5 }
 0x20f   : > { %1853 = vrot.lane.b32.xlu1 %v1838_v19, %s2895_s7  ;;  %v1781_v19 = vld [vmem:[#allocation3 + $0x18] sm:$0xe]  ;;  %v2146_v4 = vsel %vm3008_vm6, %v2755_v61, %v2145_v63  ;;  %v2266_v3 = vrot.slane %v2264_v28, 5  ;;  %v1676_v38 = vshll.u32 %v1620_v10, 16  ;;  %v2333_v44 = vrot.slane %v2331_v31, 4 }
 0x210   : > { %2149 = vrot.lane.b32.xlu0 %v2122_v62, %s2900_s23  ;;  %v1597_v62 = vld [vmem:[#allocation3] sm:$0xf]  ;;  %v2743_v60 = vrot.slane %v1781_v19, 9  ;;  %v1741_v26 = vsel %vm3044_vm7, %v1736_v7, %v1740_v15  ;;  %v2182_v41 = vld [vmem:[#allocation3 + $0x18] sm:$0xf]  ;;  %v2336_v20 = vrot.slane %v2334_v32, 5  ;;  %v2450_v52 = vsel %vm3008_vm6, %v2762_v35, %v2449_v40 }
 0x211   : > { %1606 = vst.msk [vmem:[#allocation4] sm:$0xf] %vm1524_vm10, %v1597_v62  ;;  %v2243_v50 = vld [vmem:[#allocation3 + $0x44] sm:$0x1]  ;;  %v2233_v48 = vld [vmem:[#allocation3 + $0x1c] sm:$0x1]  ;;  %v2267_v54 = vor.u32 %v2266_v3, %v2263_v34 }
 0x212   : > { %v1675_v11 = vrot.slane %v1673_v47, 4  ;;  %v1678_v36 = vrot.slane %v1676_v38, 5  ;;  %v2337_v57 = vor.u32 %v2336_v20, %v2333_v44  ;;  %v2340_v58 = vshll.u32 %v2243_v50, 16  ;;  %v2244_v61 = vld [vmem:[#allocation3 + $0x48] sm:$0xf] }
 0x213   : > { %v2270_v8 = vshll.u32 %v2233_v48, 16  ;;  %v2268_v13 = vrot.slane %v2267_v54, 4  ;;  %v1682_v1 = vshll.u32 %v1621_v59, 16  ;;  %v1624_v19 = vld [vmem:[#allocation3 + $0x28] sm:$0xf]  ;;  %vm2556_vm0 = vcmask 588800  }
 0x214   : > { %1843 = vrot.lane.b32.xlu2 %v1818_v14, %s2895_s7  ;;  %v1936_v14 = vld [vmem:[#allocation3 + $0x40] sm:$0xf]  ;;  %v2338_v24 = vrot.slane %v2337_v57, 4  ;;  %v2342_v37 = vrot.slane %v2340_v58, 5  ;;  %v2406_v27 = vld [vmem:[#allocation3 + $0x4c] sm:$0x1] }
 0x215   : > { %v2037_v21 = vshrl.u32 %v1936_v14, 16  ;;  %v2040_v23 = vshll.u32 %v1936_v14, 16  ;;  %v2272_v62 = vrot.slane %v2270_v8, 5  ;;  %v1783_v15 = vld [vmem:[#allocation3 + $0x20] sm:$0xe] }
 0x216   : > { %v2343_v14 = vsel %vm3044_vm7, %v2338_v24, %v2342_v37  ;;  %v2245_v28 = vld [vmem:[#allocation3 + $0x4c] sm:$0x1]  ;;  %v1877_v3 = vld [vmem:[#allocation3 + $0x28] sm:$0xf]  ;;  %v1623_v44 = vld [vmem:[#allocation3 + $0x24] sm:$0x1] }
 0x217   : > { %2062 = vrot.lane.b32.xlu1 %v2035_v2, %s2897_s9  ;;  %v1822_v2 = vsel %vm3008_vm6, %v2743_v60, %v1821_v45  ;;  %v2039_v29 = vrot.slane %v2037_v21, 4  ;;  %v1701_v60 = vshrl.u32 %v1624_v19, 16  ;;  %v1704_v45 = vshll.u32 %v1624_v19, 16  ;;  %v1622_v21 = vld [vmem:[#allocation3 + $0x20] sm:$0xf] }
 0x218   : > { %1903 = vrot.lane.b32.xlu0 %v1880_v39, %s2890_s27  ;;  %v1670_v39 = vrot.slane %v1668_v12, 5  ;;  %v2273_v12 = vsel %vm3044_vm7, %v2268_v13, %v2272_v62  ;;  %v1625_v32 = vld [vmem:[#allocation3 + $0x2c] sm:$0x1]  ;;  %v2354_v47 = vshll.u32 %v2245_v28, 16  ;;  %v2091_v8 = vld [vmem:[#allocation3 + $0x28] sm:$0xe] }
 0x219   : > { %v1703_v10 = vrot.slane %v1701_v60, 4  ;;  %v1706_v46 = vrot.slane %v1704_v45, 5  ;;  %v2092_v13 = vld [vmem:[#allocation3 + $0x2c] sm:$0x1]  ;;  %v1930_v37 = vld [vmem:[#allocation3 + $0x28] sm:$0xf] }
 0x21a   : > { %v1671_v16 = vsel %vm3044_vm7, %v1666_v17, %v1670_v39  ;;  %v1784_v17 = vld [vmem:[#allocation3 + $0x24] sm:$0x1]  ;;  %v1998_v60 = vshll.u32 %v1930_v37, 16  ;;  %v1931_v28 = vld [vmem:[#allocation3 + $0x2c] sm:$0x1] }
 0x21b   : > { %v1707_v38 = vor.u32 %v1706_v46, %v1703_v10  ;;  %v1929_v45 = vld [vmem:[#allocation3 + $0x24] sm:$0x1] }
 0x21c   : > { %2209 = vrot.lane.b32.xlu2 %v2187_v30, %s2899_s22  ;;  %v2042_v30 = vrot.slane %v2040_v23, 5  ;;  %v2405_v23 = vld [vmem:[#allocation3 + $0x48] sm:$0xe] }
 0x21d   : > { %v2763_v31 = vrot.slane %v2405_v23, 9  ;;  %v1708_v54 = vrot.slane %v1707_v38, 4 }
 0x21e   : > { %v2043_v43 = vor.u32 %v2042_v30, %v2039_v29  ;;  %v1687_v29 = vshrl.u32 %v1622_v21, 16  ;;  %v1690_v30 = vshll.u32 %v1622_v21, 16  ;;  %v1875_v21 = vld [vmem:[#allocation3 + $0x18] sm:$0xf] }
 0x21f   : > { %2052 = vrot.lane.b32.xlu1 %v1965_v22, %s2897_s9  ;;  %v2046_v22 = vshll.u32 %v1937_v33, 16  ;;  %v2453_v33 = vrot.slane %v2406_v27, 5  ;;  %v1926_v27 = vld [vmem:[#allocation3 + $0x18] sm:$0xf] }
 0x220   : > { %2358 = vrot.lane.b32.xlu0 %v2259_v53, %s2902_s25  ;;  %v2188_v53 = vld [vmem:[#allocation3 + $0x48] sm:$0xf]  ;;  %v2044_v55 = vrot.slane %v2043_v43, 4  ;;  %v1689_v43 = vrot.slane %v1687_v29, 4 }
 0x221   : > { %v2048_v56 = vrot.slane %v2046_v22, 5  ;;  %v1692_v22 = vrot.slane %v1690_v30, 5  ;;  %v2454_v20 = vsel %vm3008_vm6, %v2763_v31, %v2453_v33  ;;  %v1967_v30 = vshrl.u32 %v1926_v27, 16 }
 0x222   : > { %v1970_v31 = vshll.u32 %v1926_v27, 16 }
 0x223   : > { %v2049_v63 = vsel %vm3044_vm7, %v2044_v55, %v2048_v56  ;;  %v1696_v55 = vshll.u32 %v1623_v44, 16  ;;  %v1928_v56 = vld [vmem:[#allocation3 + $0x20] sm:$0xf]  ;;  %v1969_v38 = vrot.slane %v1967_v30, 4 }
 0x224   : > { %2368 = vrot.lane.b32.xlu2 %v2329_v42, %s2902_s25  ;;  %v1679_v42 = vor.u32 %v1678_v36, %v1675_v11  ;;  %v1693_v36 = vor.u32 %v1692_v22, %v1689_v43  ;;  %v1981_v59 = vshrl.u32 %v1928_v56, 16  ;;  %v1984_v24 = vshll.u32 %v1928_v56, 16  ;;  %v1876_v22 = vld [vmem:[#allocation3 + $0x20] sm:$0xf] }
 0x226   : > { %v1680_v9 = vrot.slane %v1679_v42, 4 }
 0x227   : > { %2161 = vrot.lane.b32.xlu1 %v2146_v4, %s2900_s23  ;;  %v2345_v4 = vshrl.u32 %v2244_v61, 16 }
 0x228   : > { %2457 = vrot.lane.b32.xlu0 %v2430_v5, %s2901_s24  ;;  %v2348_v5 = vshll.u32 %v2244_v61, 16  ;;  %v1694_v61 = vrot.slane %v1693_v36, 4 }
 0x229   : > { %v2347_v39 = vrot.slane %v2345_v4, 4  ;;  %v2133_v4 = vrot.slane %v2092_v13, 5  ;;  %v2237_v13 = vld [vmem:[#allocation3 + $0x2c] sm:$0x1] }
 0x22a   : > { %v2350_v25 = vrot.slane %v2348_v5, 5  ;;  %v1785_v5 = vld [vmem:[#allocation3 + $0x28] sm:$0xe] }
 0x22b   : > { %v2745_v23 = vrot.slane %v1785_v5, 9  ;;  %v2298_v5 = vshll.u32 %v2237_v13, 16  ;;  %v2817_v13 = vld [vmem:[%s4030_s3 + $0x18] sm:$0xff] }
 0x22c   : > { %1756 = vrot.lane.b32.xlu2 %v1741_v26, %s2892_s29  ;;  %v1684_v26 = vrot.slane %v1682_v1, 5  ;;  %v2351_v34 = vor.u32 %v2350_v25, %v2347_v39  ;;  %v2752_v1 = vrot.slane %v2091_v8, 9 }
 0x22e   : > { %v1685_v0 = vsel %vm3044_vm7, %v1680_v9, %v1684_v26  ;;  %v2352_v50 = vrot.slane %v2351_v34, 4  ;;  %v1786_v9 = vld [vmem:[#allocation3 + $0x2c] sm:$0x1]  ;;  %v2134_v26 = vsel %vm3008_vm6, %v2752_v1, %v2133_v4 }
 0x22f   : > { %1746 = vrot.lane.b32.xlu1 %v1671_v16, %s2892_s29  ;;  %v2744_v16 = vrot.slane %v1783_v15, 9  ;;  %v1986_v15 = vrot.slane %v1984_v24, 5  ;;  %v1829_v39 = vrot.slane %v1786_v9, 5 }
 0x230   : > { %1845 = vrot.lane.b32.xlu0 %v1822_v2, %s2895_s7  ;;  %v1825_v2 = vrot.slane %v1784_v17, 5  ;;  %v1995_v17 = vshrl.u32 %v1930_v37, 16 }
 0x231   : > { %v1830_v29 = vsel %vm3008_vm6, %v2745_v23, %v1829_v39  ;;  %v2090_v39 = vld [vmem:[#allocation3 + $0x24] sm:$0x1] }
 0x232   : > { %v1826_v40 = vsel %vm3008_vm6, %v2744_v16, %v1825_v2  ;;  %v1997_v16 = vrot.slane %v1995_v17, 4  ;;  %v2000_v2 = vrot.slane %v1998_v60, 5 }
 0x234   : > { %2199 = vrot.lane.b32.xlu2 %v2182_v41, %s2899_s22  ;;  %v1710_v41 = vshll.u32 %v1625_v32, 16  ;;  %v2001_v34 = vor.u32 %v2000_v2, %v1997_v16  ;;  %v2395_v2 = vld [vmem:[#allocation3 + $0x20] sm:$0xe] }
 0x236   : > { %v3798_v51 = vpop.permute.xlu2 %2157  ;;  %v1712_v11 = vrot.slane %v1710_v41, 5  ;;  %v1972_v41 = vrot.slane %v1970_v31, 5  ;;  %v2235_v31 = vld [vmem:[#allocation3 + $0x24] sm:$0x1] }
 0x237   : > { %2467 = vrot.lane.b32.xlu1 %v2450_v52, %s2901_s24 }
 0x238   : > { %2211 = vrot.lane.b32.xlu0 %v2188_v53, %s2899_s22  ;;  %v2356_v53 = vrot.slane %v2354_v47, 5  ;;  %v1713_v42 = vsel %vm3044_vm7, %v1708_v54, %v1712_v11  ;;  %v2004_v47 = vshll.u32 %v1931_v28, 16  ;;  %v2088_v54 = vld [vmem:[#allocation3 + $0x1c] sm:$0x1]  ;;  %v2129_v28 = vrot.slane %v2090_v39, 5 }
 0x239   : > { %v1927_v11 = vld [vmem:[#allocation3 + $0x1c] sm:$0x1] }
 0x23a   : > { %v2357_v57 = vsel %vm3044_vm7, %v2352_v50, %v2356_v53  ;;  %v2006_v50 = vrot.slane %v2004_v47, 5 }
 0x23c   : > { %2064 = vrot.lane.b32.xlu2 %v2049_v63, %s2897_s9  ;;  %v1698_v63 = vrot.slane %v1696_v55, 5 }
 0x23e   : > { %v3807_v7 = vpop.permute.xlu2 %2463 }
 0x23f   : > { %2360 = vrot.lane.b32.xlu1 %v2273_v12, %s2902_s25  ;;  %v1983_v12 = vrot.slane %v1981_v59, 4  ;;  %v2125_v59 = vrot.slane %v2088_v54, 5 }
 0x240   : > { %2370 = vrot.lane.b32.xlu0 %v2343_v14, %s2902_s25  ;;  %v1699_v14 = vsel %vm3044_vm7, %v1694_v61, %v1698_v63  ;;  %v1976_v63 = vshll.u32 %v1927_v11, 16 }
 0x241   : > { %v1987_v25 = vor.u32 %v1986_v15, %v1983_v12  ;;  %v2234_v12 = vld [vmem:[#allocation3 + $0x20] sm:$0xf] }
 0x242   : > { %v1978_v9 = vrot.slane %v1976_v63, 5  ;;  %v2278_v23 = vshll.u32 %v2234_v12, 16 }
 0x243   : > { %v1988_v32 = vrot.slane %v1987_v25, 4 }
 0x244   : > { %1748 = vrot.lane.b32.xlu2 %v1685_v0, %s2892_s29  ;;  %v1990_v0 = vshll.u32 %v1929_v45, 16  ;;  %v2300_v45 = vrot.slane %v2298_v5, 5  ;;  %v2280_v30 = vrot.slane %v2278_v23, 5  ;;  %v2815_v5 = vld [vmem:[%s4030_s3 + $0x8] sm:$0xff] }
 0x246   : > { %v1743_v35 = vpop.permute.xlu2 %1742  ;;  %v1992_v33 = vrot.slane %v1990_v0, 5  ;;  %v2184_v0 = vld [vmem:[#allocation3 + $0x28] sm:$0xf] }
 0x247   : > { %1767 = vst.msk [vmem:[#allocation4] sm:$0xf] %vm1766_vm12, %v1743_v35  ;;  %1847 = vrot.lane.b32.xlu1 %v1826_v40, %s2895_s7  ;;  %v2236_v35 = vld [vmem:[#allocation3 + $0x28] sm:$0xf] }
 0x248   : > { %1897 = vrot.lane.b32.xlu0 %v1877_v3, %s2890_s27  ;;  %1864 = vst.msk [vmem:[#allocation4] sm:$0xf] %vm1863_vm13, %v1840_v18  ;;  %v2087_v3 = vld [vmem:[#allocation3 + $0x18] sm:$0xe]  ;;  %v2289_v43 = vshrl.u32 %v2236_v35, 16  ;;  %v1993_v44 = vsel %vm3044_vm7, %v1988_v32, %v1992_v33  ;;  %v2292_v53 = vshll.u32 %v2236_v35, 16 }
 0x249   : > { %v3826_v52 = vpop.permute.xlu1 %1899  ;;  %v2750_v56 = vrot.slane %v2087_v3, 9  ;;  %v2284_v3 = vshll.u32 %v2235_v31, 16 }
 0x24a   : > { %v3828_v48 = vpop.permute.xlu0 %2205  ;;  %v2294_v61 = vrot.slane %v2292_v53, 5 }
 0x24b   : > { %v2126_v1 = vsel %vm3008_vm6, %v2750_v56, %v2125_v59  ;;  %v2504_v59 = vld [vmem:[%s4030_s3 + $0x20] sm:$0xf] }
 0x24c   : > { %2469 = vrot.lane.b32.xlu2 %v2454_v20, %s2901_s24  ;;  %v2002_v20 = vrot.slane %v2001_v34, 4  ;;  %v2758_v34 = vrot.slane %v2395_v2, 9 }
 0x24e   : > { %v3833_v58 = vpop.permute.xlu2 %2147  ;;  %v2007_v8 = vsel %vm3044_vm7, %v2002_v20, %v2006_v50  ;;  %v2397_v20 = vld [vmem:[#allocation3 + $0x28] sm:$0xe]  ;;  %v2398_v50 = vld [vmem:[#allocation3 + $0x2c] sm:$0x1] }
 0x24f   : > { %2372 = vrot.lane.b32.xlu1 %v2357_v57, %s2902_s25  ;;  %v1973_v57 = vor.u32 %v1972_v41, %v1969_v38  ;;  %v2759_v54 = vrot.slane %v2397_v20, 9 }
 0x250   : > { %1752 = vrot.lane.b32.xlu0 %v1713_v42, %s2892_s29  ;;  %v2291_v42 = vrot.slane %v2289_v43, 4 }
 0x251   : > { %v1890_v19 = vpop.permute.xlu1 %1889  ;;  %v1974_v37 = vrot.slane %v1973_v57, 4 }
 0x252   : > { %v3839_v62 = vpop.permute.xlu0 %1851  ;;  %1914 = vst.msk [vmem:[#allocation4] sm:$0xf] %vm1913_vm14, %v1890_v19  ;;  %v2183_v19 = vld [vmem:[#allocation3 + $0x20] sm:$0xf]  ;;  %v2295_v4 = vor.u32 %v2294_v61, %v2291_v42  ;;  %v2546_v42 = vunpack.c.l.b16 %v2504_v59 }
 0x253   : > { %v1979_v17 = vsel %vm3044_vm7, %v1974_v37, %v1978_v9 }
 0x254   : > { %1750 = vrot.lane.b32.xlu2 %v1699_v14, %s2892_s29  ;;  %v2296_v60 = vrot.slane %v2295_v4, 4  ;;  %v2551_v61 = vpack.c.b16 %v2546_v42, %v2546_v42  ;;  %v2816_v4 = vld [vmem:[%s4030_s3 + $0x10] sm:$0xff] }
 0x256   : > { %v3845_v18 = vpop.permute.xlu2 %1901  ;;  %v2301_v27 = vsel %vm3044_vm7, %v2296_v60, %v2300_v45 }
 0x257   : > { %2155 = vrot.lane.b32.xlu1 %v2134_v26, %s2900_s23  ;;  %v2089_v26 = vld [vmem:[#allocation3 + $0x20] sm:$0xe] }
 0x258   : > { %1893 = vrot.lane.b32.xlu0 %v1875_v21, %s2890_s27  ;;  %v2275_v21 = vshrl.u32 %v2234_v12, 16  ;;  %v2751_v16 = vrot.slane %v2089_v26, 9 }
 0x259   : > { %v1842_v10 = vpop.permute.xlu1 %1841 }
 0x25a   : > { %v3851_v46 = vpop.permute.xlu0 %2060  ;;  %v2130_v35 = vsel %vm3008_vm6, %v2751_v16, %v2129_v28 }
 0x25c   : > { %1849 = vrot.lane.b32.xlu2 %v1830_v29, %s2895_s7  ;;  %v2277_v29 = vrot.slane %v2275_v21, 4 }
 0x25e   : > { %v1892_v40 = vpop.permute.xlu2 %1891 }
 0x25f   : > { %1895 = vrot.lane.b32.xlu1 %v1876_v22, %s2890_s27  ;;  %v2286_v22 = vrot.slane %v2284_v3, 5 }
 0x260   : > { %2056 = vrot.lane.b32.xlu0 %v1993_v44, %s2897_s9 }
 0x261   : > { %v3860_v36 = vpop.permute.xlu1 %2207 }
 0x262   : > { %v1745_v55 = vpop.permute.xlu0 %1744 }
 0x263   : > { %1768 = vst.msk [vmem:[#allocation4 + $0x4] sm:$0xf] %vm1766_vm12, %v1745_v55 }
 0x264   : > { %1865 = vst.msk [vmem:[#allocation4 + $0x4] sm:$0xf] %vm1863_vm13, %v1842_v10  ;;  %2058 = vrot.lane.b32.xlu2 %v2007_v8, %s2897_s9  ;;  %v2396_v10 = vld [vmem:[#allocation3 + $0x24] sm:$0x1] }
 0x265   : > { %1915 = vst.msk [vmem:[#allocation4 + $0x4] sm:$0xf] %vm1913_vm14, %v1892_v40  ;;  %v2433_v47 = vrot.slane %v2396_v10, 5  ;;  %v2281_v40 = vor.u32 %v2280_v30, %v2277_v29 }
 0x266   : > { %v3868_v24 = vpop.permute.xlu2 %2455 }
 0x267   : > { %2151 = vrot.lane.b32.xlu1 %v2126_v1, %s2900_s23  ;;  %v2434_v41 = vsel %vm3008_vm6, %v2758_v34, %v2433_v47  ;;  %v2282_v43 = vrot.slane %v2281_v40, 4 }
 0x268   : > { %2201 = vrot.lane.b32.xlu0 %v2183_v19, %s2899_s22 }
 0x269   : > { %v3874_v14 = vpop.permute.xlu1 %2366 }
 0x26a   : > { %v3876_v15 = vpop.permute.xlu0 %2465 }
 0x26c   : > { %2054 = vrot.lane.b32.xlu2 %v1979_v17, %s2897_s9  ;;  %v2814_v17 = vld [vmem:[%s4030_s3] sm:$0xff] }
 0x26e   : > { %v3881_v25 = vpop.permute.xlu2 %1843 }
 0x26f   : > { %2203 = vrot.lane.b32.xlu1 %v2184_v0, %s2899_s22 }
 0x270   : > { %2364 = vrot.lane.b32.xlu0 %v2301_v27, %s2902_s25 }
 0x271   : > { %v1755_v32 = vpop.permute.xlu1 %1754 }
 0x272   : > { %v2051_v33 = vpop.permute.xlu0 %2050  ;;  %1773 = vst.msk [vmem:[#allocation4 + $0x18] sm:$0xf] %vm1766_vm12, %v1755_v32 }
 0x273   : > { %1870 = vst.msk [vmem:[#allocation4 + $0x18] sm:$0xf] %vm1863_vm13, %v3839_v62 }
 0x274   : > { %2153 = vrot.lane.b32.xlu2 %v2130_v35, %s2900_s23  ;;  %1920 = vst.msk [vmem:[#allocation4 + $0x18] sm:$0xf] %vm1913_vm14, %v3845_v18  ;;  %v2287_v18 = vsel %vm3044_vm7, %v2282_v43, %v2286_v22  ;;  %vm2382_vm7 = vcmask 519616  }
 0x275   : > { %2075 = vst.msk [vmem:[#allocation4] sm:$0xf] %vm2074_vm15, %v2051_v33 }
 0x276   : > { %v2210_v38 = vpop.permute.xlu2 %2209  ;;  %2172 = vst.msk [vmem:[#allocation4] sm:$0xf] %vm2171_vm2, %v3833_v58  ;;  %v2437_v58 = vrot.slane %v2398_v50, 5 }
 0x277   : > { %2459 = vrot.lane.b32.xlu1 %v2434_v41, %s2901_s24 }
 0x278   : > { %v2438_v56 = vsel %vm3008_vm6, %v2759_v54, %v2437_v58  ;;  %vm2569_vm6 = vcmask 1043456  }
 0x279   : > { %v2198_v62 = vpop.permute.xlu1 %2197  ;;  %v2571_v63 = vsel %vm2569_vm6, %v2551_v61, 0 }
 0x27a   : > { %v2160_v44 = vpop.permute.xlu0 %2159  ;;  %2222 = vst.msk [vmem:[#allocation4] sm:$0xf] %vm2221_vm3, %v2198_v62  ;;  %2576 = vmatpush.bf16.msra.mxu1 %v2571_v63  ;;  %2821 = vmatpush.bf16.msra.mxu3 %v2571_v63 }
 0x27c   : > { %2362 = vrot.lane.b32.xlu2 %v2287_v18, %s2902_s25 }
 0x27e   : > { %v3905_v53 = vpop.permute.xlu2 %2368  ;;  %2577 = vmatpush.bf16.msra.mxu1 %v2817_v13  ;;  %2822 = vmatpush.bf16.msra.mxu3 %v2817_v13 }
 0x281   : > { %v1854_v11 = vpop.permute.xlu1 %1853 }
 0x282   : > { %v2150_v55 = vpop.permute.xlu0 %2149  ;;  %2578 = vmatpush.bf16.msra.mxu1 %v2816_v4  ;;  %2823 = vmatpush.bf16.msra.mxu3 %v2816_v4 }
 0x284   : > { %2461 = vrot.lane.b32.xlu2 %v2438_v56, %s2901_s24 }
 0x286   : > { %v1757_v57 = vpop.permute.xlu2 %1756  ;;  %2579 = vmatpush.bf16.msra.mxu1 %v2815_v5  ;;  %2824 = vmatpush.bf16.msra.mxu3 %v2815_v5 }
 0x287   : > { %1774 = vst.msk [vmem:[#allocation4 + $0x1c] sm:$0xf] %vm1766_vm12, %v1757_v57 }
 0x288   : > { %1871 = vst.msk [vmem:[#allocation4 + $0x1c] sm:$0xf] %vm1863_vm13, %v1854_v11 }
 0x289   : > { %v2063_v49 = vpop.permute.xlu1 %2062 }
 0x28a   : > { %v1904_v8 = vpop.permute.xlu0 %1903  ;;  %2081 = vst.msk [vmem:[#allocation4 + $0x18] sm:$0xf] %vm2074_vm15, %v2063_v49  ;;  %2580 = vmatpush.bf16.msra.mxu1 %v2814_v17  ;;  %2825 = vmatpush.bf16.msra.mxu3 %v2814_v17 }
 0x28b   : > { %2178 = vst.msk [vmem:[#allocation4 + $0x18] sm:$0xf] %vm2171_vm2, %v2160_v44 }
 0x28c   : > { %2228 = vst.msk [vmem:[#allocation4 + $0x18] sm:$0xf] %vm2221_vm3, %v2210_v38  ;;  %v2865_v38 = vld [vmem:[%s4031_s4] ss:$0 sm:$0xff] }
 0x28d   : > { %1921 = vst.msk [vmem:[#allocation4 + $0x1c] sm:$0xf] %vm1913_vm14, %v1904_v8 }
 0x28e   : > { %v2200_v6 = vpop.permute.xlu2 %2199 }
 0x291   : > { %v2053_v37 = vpop.permute.xlu1 %2052 }
 0x292   : > { %v2359_v1 = vpop.permute.xlu0 %2358  ;;  %2076 = vst.msk [vmem:[#allocation4 + $0x4] sm:$0xf] %vm2074_vm15, %v2053_v37 }
 0x293   : > { %2173 = vst.msk [vmem:[#allocation4 + $0x4] sm:$0xf] %vm2171_vm2, %v2150_v55 }
 0x294   : > { %2223 = vst.msk [vmem:[#allocation4 + $0x4] sm:$0xf] %vm2221_vm3, %v2200_v6 }
 0x295   : > { %2383 = vst.msk [vmem:[#allocation4] sm:$0xf] %vm2382_vm7, %v2359_v1 }
 0x296   : > { %v2065_v19 = vpop.permute.xlu2 %2064  ;;  %2480 = vst.msk [vmem:[#allocation4] sm:$0xf] %vm2479_vm4, %v3868_v24 }
 0x297   : > { %2082 = vst.msk [vmem:[#allocation4 + $0x1c] sm:$0xf] %vm2074_vm15, %v2065_v19 }
 0x299   : > { %v2162_v9 = vpop.permute.xlu1 %2161 }
 0x29a   : > { %v2458_v12 = vpop.permute.xlu0 %2457  ;;  %2179 = vst.msk [vmem:[#allocation4 + $0x1c] sm:$0xf] %vm2171_vm2, %v2162_v9 }
 0x29e   : > { %v1749_v60 = vpop.permute.xlu2 %1748 }
 0x29f   : > { %1770 = vst.msk [vmem:[#allocation4 + $0xc] sm:$0xf] %vm1766_vm12, %v1749_v60 }
 0x2a1   : > { %v1747_v24 = vpop.permute.xlu1 %1746 }
 0x2a2   : > { %v1846_v45 = vpop.permute.xlu0 %1845  ;;  %1769 = vst.msk [vmem:[#allocation4 + $0x8] sm:$0xf] %vm1766_vm12, %v1747_v24 }
 0x2a3   : > { %1866 = vst.msk [vmem:[#allocation4 + $0x8] sm:$0xf] %vm1863_vm13, %v3881_v25 }
 0x2a4   : > { %1867 = vst.msk [vmem:[#allocation4 + $0xc] sm:$0xf] %vm1863_vm13, %v1846_v45 }
 0x2a6   : > { %v2470_v26 = vpop.permute.xlu2 %2469 }
 0x2a9   : > { %v2468_v21 = vpop.permute.xlu1 %2467 }
 0x2aa   : > { %v2212_v23 = vpop.permute.xlu0 %2211 }
 0x2ab   : > { %2229 = vst.msk [vmem:[#allocation4 + $0x1c] sm:$0xf] %vm2221_vm3, %v2212_v23 }
 0x2ae   : > { %v1751_v39 = vpop.permute.xlu2 %1750 }
 0x2af   : > { %1771 = vst.msk [vmem:[#allocation4 + $0x10] sm:$0xf] %vm1766_vm12, %v1751_v39 }
 0x2b1   : > { %v2361_v0 = vpop.permute.xlu1 %2360 }
 0x2b2   : > { %v2371_v16 = vpop.permute.xlu0 %2370  ;;  %2384 = vst.msk [vmem:[#allocation4 + $0x4] sm:$0xf] %vm2382_vm7, %v2361_v0 }
 0x2b3   : > { %2481 = vst.msk [vmem:[#allocation4 + $0x4] sm:$0xf] %vm2479_vm4, %v2458_v12 }
 0x2b4   : > { %2389 = vst.msk [vmem:[#allocation4 + $0x18] sm:$0xf] %vm2382_vm7, %v2371_v16 }
 0x2b5   : > { %2486 = vst.msk [vmem:[#allocation4 + $0x18] sm:$0xf] %vm2479_vm4, %v2468_v21 }
 0x2b6   : > { %v1850_v25 = vpop.permute.xlu2 %1849 }
 0x2b9   : > { %v1848_v2 = vpop.permute.xlu1 %1847 }
 0x2ba   : > { %v1898_v27 = vpop.permute.xlu0 %1897  ;;  %1868 = vst.msk [vmem:[#allocation4 + $0x10] sm:$0xf] %vm1863_vm13, %v1848_v2  ;;  %v2810_v28 = vld [vmem:[#allocation4] sm:$0xff] }
 0x2bb   : > { %1918 = vst.msk [vmem:[#allocation4 + $0x10] sm:$0xf] %vm1913_vm14, %v1898_v27  ;;  %2796 = vmatmul.msk.bf16.vlgmr.msra.gmra.mxu1 %vm2556_vm0, %v2810_v28 }
 0x2be   : > { %v2059_v10 = vpop.permute.xlu2 %2058 }
 0x2bf   : > { %2079 = vst.msk [vmem:[#allocation4 + $0x10] sm:$0xf] %vm2074_vm15, %v2059_v10 }
 0x2c1   : > { %v2373_v29 = vpop.permute.xlu1 %2372 }
 0x2c2   : > { %v1753_v30 = vpop.permute.xlu0 %1752  ;;  %2390 = vst.msk [vmem:[#allocation4 + $0x1c] sm:$0xf] %vm2382_vm7, %v2373_v29 }
 0x2c3   : > { %2487 = vst.msk [vmem:[#allocation4 + $0x1c] sm:$0xf] %vm2479_vm4, %v2470_v26 }
 0x2c4   : > { %1772 = vst.msk [vmem:[#allocation4 + $0x14] sm:$0xf] %vm1766_vm12, %v1753_v30 }
 0x2c5   : > { %1869 = vst.msk [vmem:[#allocation4 + $0x14] sm:$0xf] %vm1863_vm13, %v1850_v25 }
 0x2c6   : > { %v2055_v31 = vpop.permute.xlu2 %2054  ;;  %1919 = vst.msk [vmem:[#allocation4 + $0x14] sm:$0xf] %vm1913_vm14, %v3826_v52 }
 0x2c7   : > { %2080 = vst.msk [vmem:[#allocation4 + $0x14] sm:$0xf] %vm2074_vm15, %v3851_v46 }
 0x2c8   : > { %2177 = vst.msk [vmem:[#allocation4 + $0x14] sm:$0xf] %vm2171_vm2, %v3798_v51 }
 0x2c9   : > { %2227 = vst.msk [vmem:[#allocation4 + $0x14] sm:$0xf] %vm2221_vm3, %v3860_v36  ;;  %v2156_v32 = vpop.permute.xlu1 %2155 }
 0x2ca   : > { %v1894_v33 = vpop.permute.xlu0 %1893  ;;  %2388 = vst.msk [vmem:[#allocation4 + $0x14] sm:$0xf] %vm2382_vm7, %v3905_v53  ;;  %v2813_v35 = vld [vmem:[#allocation4 + $0x18] sm:$0xff] }
 0x2cb   : > { %2485 = vst.msk [vmem:[#allocation4 + $0x14] sm:$0xf] %vm2479_vm4, %v3876_v15 }
 0x2cc   : > { %2176 = vst.msk [vmem:[#allocation4 + $0x10] sm:$0xf] %vm2171_vm2, %v2156_v32 }
 0x2cd   : > { %2226 = vst.msk [vmem:[#allocation4 + $0x10] sm:$0xf] %vm2221_vm3, %v3828_v48 }
 0x2ce   : > { %2387 = vst.msk [vmem:[#allocation4 + $0x10] sm:$0xf] %vm2382_vm7, %v3874_v14  ;;  %v2154_v51 = vpop.permute.xlu2 %2153 }
 0x2cf   : > { %2484 = vst.msk [vmem:[#allocation4 + $0x10] sm:$0xf] %vm2479_vm4, %v3807_v7 }
 0x2d0   : > { %1916 = vst.msk [vmem:[#allocation4 + $0x8] sm:$0xf] %vm1913_vm14, %v1894_v33 }
 0x2d1   : > { %2077 = vst.msk [vmem:[#allocation4 + $0x8] sm:$0xf] %vm2074_vm15, %v2055_v31  ;;  %v1896_v52 = vpop.permute.xlu1 %1895 }
 0x2d2   : > { %v2057_v46 = vpop.permute.xlu0 %2056  ;;  %1917 = vst.msk [vmem:[#allocation4 + $0xc] sm:$0xf] %vm1913_vm14, %v1896_v52 }
 0x2d3   : > { %2078 = vst.msk [vmem:[#allocation4 + $0xc] sm:$0xf] %vm2074_vm15, %v2057_v46 }
 0x2d4   : > { %2175 = vst.msk [vmem:[#allocation4 + $0xc] sm:$0xf] %vm2171_vm2, %v2154_v51 }
 0x2d6   : > { %v2812_v48 = vld [vmem:[#allocation4 + $0x10] sm:$0xff]  ;;  %v2363_v36 = vpop.permute.xlu2 %2362 }
 0x2d7   : > { %2798 = vmatmul.msk.bf16.vlgmr.msra.gmra.mxu3 %vm2556_vm0, %v2812_v48 }
 0x2d9   : > { %v2152_v14 = vpop.permute.xlu1 %2151 }
 0x2da   : > { %v2202_v15 = vpop.permute.xlu0 %2201  ;;  %2174 = vst.msk [vmem:[#allocation4 + $0x8] sm:$0xf] %vm2171_vm2, %v2152_v14 }
 0x2db   : > { %2224 = vst.msk [vmem:[#allocation4 + $0x8] sm:$0xf] %vm2221_vm3, %v2202_v15 }
 0x2dc   : > { %2385 = vst.msk [vmem:[#allocation4 + $0x8] sm:$0xf] %vm2382_vm7, %v2363_v36 }
 0x2de   : > { %v2462_v47 = vpop.permute.xlu2 %2461 }
 0x2e1   : > { %v2204_v7 = vpop.permute.xlu1 %2203 }
 0x2e2   : > { %v2365_v34 = vpop.permute.xlu0 %2364  ;;  %2225 = vst.msk [vmem:[#allocation4 + $0xc] sm:$0xf] %vm2221_vm3, %v2204_v7 }
 0x2e3   : > { %2386 = vst.msk [vmem:[#allocation4 + $0xc] sm:$0xf] %vm2382_vm7, %v2365_v34 }
 0x2e4   : > { %2483 = vst.msk [vmem:[#allocation4 + $0xc] sm:$0xf] %vm2479_vm4, %v2462_v47 }
 0x2e7   : > { %2799 = vmatmul.msk.bf16.gmra.mxu3 %vm2556_vm0, %v2813_v35 }
 0x2e9   : > { %v2460_v40 = vpop.permute.xlu1 %2459 }
 0x2ea   : > { %2482 = vst.msk [vmem:[#allocation4 + $0x8] sm:$0xf] %vm2479_vm4, %v2460_v40 }
 0x2f1   : > { %v2811_v3 = vld [vmem:[#allocation4 + $0x8] sm:$0xff] }
 0x2f2   : > { %2797 = vmatmul.msk.bf16.gmra.mxu1 %vm2556_vm0, %v2811_v3 }
 0x338   : > { %v2582_v41 = vpop.f32.mrf.mxu1 }
 0x339   : > { %v2583_v43 = vadd.f32 %v2865_v38, %v2582_v41 }
 0x33b   : > { %v2602_v22 = vmax.f32 %v2583_v43, 0.0 }
 0x33d   : > { %2611 = vst.msk [vmem:[%s4000_s16] sm:$0xff] %vm2610_vm1, %v2602_v22 }
 0x340   : > { %v2584_v62 = vpop.f32.mrf.mxu1 }
 0x341   : > { %v2585_v44 = vadd.f32 %v2865_v38, %v2584_v62 }
 0x343   : > { %v2603_v18 = vmax.f32 %v2585_v44, 0.0 }
 0x345   : > { %2612 = vst.msk [vmem:[%s4000_s16 + $0x8] sm:$0xff] %vm2610_vm1, %v2603_v18 }
 0x35a   : > { %v2592_v20 = vpop.f32.mrf.mxu3 }
 0x35b   : > { %v2593_v50 = vadd.f32 %v2865_v38, %v2592_v20 }
 0x35d   : > { %v2606_v53 = vmax.f32 %v2593_v50, 0.0 }
 0x35f   : > { %2615 = vst.msk [vmem:[%s4000_s16 + $0x20] sm:$0xff] %vm2610_vm1, %v2606_v53 }
 0x362   : > { %v2594_v54 = vpop.f32.mrf.mxu3 }
 0x363   : > { %v2595_v58 = vadd.f32 %v2865_v38, %v2594_v54 }
 0x365   : > { %v2607_v11 = vmax.f32 %v2595_v58, 0.0 }
 0x367   : > { %2616 = vst.msk [vmem:[%s4000_s16 + $0x28] sm:$0xff] %vm2610_vm1, %v2607_v11 }
 0x36a   : > { %v2597_v55 = vpop.f32.mrf.mxu3 }
 0x36b   : > { %v2598_v56 = vadd.f32 %v2865_v38, %v2597_v55 }
 0x36d   : > { %v2608_v57 = vmax.f32 %v2598_v56, 0.0 }
 0x36f   : > { %2617 = vst.msk [vmem:[%s4000_s16 + $0x30] sm:$0xff] %vm2610_vm1, %v2608_v57  ;;  %v2587_v49 = vpop.f32.mrf.mxu1 }
 0x370   : > { %v2588_v8 = vadd.f32 %v2865_v38, %v2587_v49 }
 0x372   : > { %v2604_v59 = vmax.f32 %v2588_v8, 0.0  ;;  %v2599_v42 = vpop.f32.mrf.mxu3 }
 0x373   : > { %v2600_v6 = vadd.f32 %v2865_v38, %v2599_v42 }
 0x374   : > { %2613 = vst.msk [vmem:[%s4000_s16 + $0x10] sm:$0xff] %vm2610_vm1, %v2604_v59 }
 0x375   : > { %v2609_v61 = vmax.f32 %v2600_v6, 0.0 }
 0x377   : > { %2618 = vst.msk [vmem:[%s4000_s16 + $0x38] sm:$0xff] %vm2610_vm1, %v2609_v61  ;;  %v2589_v63 = vpop.f32.mrf.mxu1 }
 0x378   : > { %v2590_v13 = vadd.f32 %v2865_v38, %v2589_v63 }
 0x37a   : > { %v2605_v37 = vmax.f32 %v2590_v13, 0.0 }
 0x37c   : > { %2614 = vst.msk [vmem:[%s4000_s16 + $0x18] sm:$0xff] %vm2610_vm1, %v2605_v37 }
 0x37d PF: > { %s15_s20 = sadd.s32 1, %s2888_s20   ;;  %s4043_s18 = smov %s2884_s19 }
 0x37e   : > { %p12_p6 = scmp.ge.s32.totalorder %s15_s20, 4   ;;  %s4044_s19 = smov %s4046_s21 }
 0x380   :  { %14 = sbr.rel (!%p12_p6) target bundleno = 2 (0x2), region = 77 }

</bundles_post_ra>
